<compile_context>
chip_gen: v7x
topology: tpu7x:2x2x1
jax: 0.10.0
libtpu: 0.0.40
codegen_flags: <defaults>
</compile_context>

<pallas_src>
import math
import functools

import jax
import jax.numpy as jnp
from jax.experimental import pallas as pl
from jax.experimental.pallas import tpu as pltpu

D_MODEL = 128

_WEIGHT_KEYS = ("wqkv", "bqkv", "wo", "bo", "ln1g", "ln1b",
                "w1", "b1", "w2", "b2", "ln2g", "ln2b")


# -----------------------------------------------------------------------------
# Fused Pallas kernel: pos/mod add + all transformer encoder layers
# -----------------------------------------------------------------------------
def fused_encoder_kernel(
    x_ref, pe_ref,
    wqkv_ref, bqkv_ref, wo_ref, bo_ref,
    ln1g_ref, ln1b_ref, w1_ref, b1_ref, w2_ref, b2_ref,
    ln2g_ref, ln2b_ref,
    o_ref, *, nhead, eps,
):
    # x_ref : (Bb, S, D) tile (block of batch elements)
    # pe_ref: (S, D) positional + modality embedding (shared across batch)
    Bb, S, D = x_ref.shape
    dh = D // nhead
    nlayers = wqkv_ref.shape[0]
    M = Bb * S
    bf = jnp.bfloat16
    f32 = jnp.float32

    # pos/mod add, then flatten batch into the M (row) axis for fat matmuls.
    x = (x_ref[...].astype(f32) + pe_ref[...][None]).reshape(M, D)

    for l in range(nlayers):                                # static layer loop
        # ---- per-layer params (resident in VMEM, read once per layer) ----
        wqkv = wqkv_ref[l]                                  # (D, 3D) bf16 (Q cols pre-scaled)
        bqkv = bqkv_ref[l]                                  # (1, 3D) f32
        wo = wo_ref[l]                                      # (D, D)  bf16
        bo = bo_ref[l]                                      # (1, D)  f32
        ln1g, ln1b = ln1g_ref[l], ln1b_ref[l]
        w1, b1 = w1_ref[l], b1_ref[l]
        w2, b2 = w2_ref[l], b2_ref[l]
        ln2g, ln2b = ln2g_ref[l], ln2b_ref[l]

        # ---- fused QKV projection over all Bb batch elements at once ----
        qkv = jnp.dot(x.astype(bf), wqkv,
                      preferred_element_type=f32) + bqkv            # (M, 3D)
        # split at 128-lane (vreg) boundaries; cast to bf16 once (opt #6)
        q_all = qkv[:, 0 * D:1 * D].astype(bf)
        k_all = qkv[:, 1 * D:2 * D].astype(bf)
        v_all = qkv[:, 2 * D:3 * D].astype(bf)

        # ---- per-(batch, head) attention scores (small S x S math) ----
        # TODO(synk): per-head lane slices at 32-lane offsets remain; a
        # head-leading weight layout would remove them (review opt #4).
        attn_rows = []
        for b in range(Bb):                                 # static, tiny
            rows = slice(b * S, (b + 1) * S)
            head_outs = []
            for h in range(nhead):                          # static head loop
                cols = slice(h * dh, (h + 1) * dh)
                qh = q_all[rows, cols]
                kh = k_all[rows, cols]
                vh = v_all[rows, cols]
                # NT contraction: no explicit kh.T materialisation.
                s = jnp.einsum("qd,kd->qk", qh, kh,
                               preferred_element_type=f32)          # (S, S)
                s = s - jnp.max(s, axis=-1, keepdims=True)
                p = jnp.exp(s)
                p = p * pl.reciprocal(jnp.sum(p, axis=-1, keepdims=True),
                                      approx=True)
                oh = jnp.dot(p.astype(bf), vh,
                             preferred_element_type=f32)            # (S, dh)
                head_outs.append(oh)
            attn_rows.append(jnp.concatenate(head_outs, axis=-1))   # (S, D) f32
        attn_cat = (attn_rows[0] if Bb == 1
                    else jnp.concatenate(attn_rows, axis=0))        # (M, D)

        # ---- single full-K output projection for the whole block (opt #2) ----
        attn = jnp.dot(attn_cat.astype(bf), wo,
                       preferred_element_type=f32) + bo             # (M, D)

        # ---- residual + layernorm 1 (post-norm, f32 stats) ----
        h1 = x + attn
        mu = jnp.mean(h1, axis=-1, keepdims=True)
        var = jnp.mean((h1 - mu) ** 2, axis=-1, keepdims=True)
        h1 = (h1 - mu) * jax.lax.rsqrt(var + eps) * ln1g + ln1b

        # ---- feed-forward (fat M rows) ----
        f = jnp.dot(h1.astype(bf), w1, preferred_element_type=f32) + b1
        f = jnp.maximum(f, 0.0)
        f = jnp.dot(f.astype(bf), w2, preferred_element_type=f32) + b2

        # ---- residual + layernorm 2 ----
        h2 = h1 + f
        mu2 = jnp.mean(h2, axis=-1, keepdims=True)
        var2 = jnp.mean((h2 - mu2) ** 2, axis=-1, keepdims=True)
        x = (h2 - mu2) * jax.lax.rsqrt(var2 + eps) * ln2g + ln2b

    o_ref[...] = x.reshape(Bb, S, D).astype(o_ref.dtype)


def _const_index_map(ndim):
    return lambda b: (0,) * ndim


def _largest_divisor_le(n, cap):
    for d in range(min(n, cap), 0, -1):
        if n % d == 0:
            return d
    return 1


def forward(audio, g2p, lm, params, nhead, eps=1e-5, block_b=None):
    """Full forward pass: one fused pallas_call over all layers."""
    sa, sg, sl_ = audio.shape[1], g2p.shape[1], lm.shape[1]
    pe_mod = build_pe_mod(params, sa, sg, sl_)          # plain jnp; XLA fuses
    x = jnp.concatenate([audio, g2p, lm], axis=1)
    B, S, D = x.shape
    weights = [params[k] for k in _WEIGHT_KEYS]

    if block_b is None:
        # Fold several batch elements per grid step (review opt #1).
        # NOTE (v7x): if B is large, prefer block_b <= B//2 so both TCs get work.
        block_b = _largest_divisor_le(B, 8)
    grid_b = B // block_b

    in_specs = [
        pl.BlockSpec((block_b, S, D), lambda b: (b, 0, 0)),   # batch-block activations
        pl.BlockSpec((S, D), lambda b: (0, 0)),               # shared pe+modality
    ]
    in_specs += [pl.BlockSpec(w.shape, _const_index_map(w.ndim)) for w in weights]

    # Explicit VMEM budget: weights (double-buffered) + activation blocks + headroom.
    weight_bytes = sum(int(w.size) * w.dtype.itemsize for w in weights)
    act_bytes = block_b * S * D * 4
    vmem_limit = int(min(64 * 1024 * 1024,
                         max(32 * 1024 * 1024,
                             2 * weight_bytes + 8 * act_bytes + (8 << 20))))

    kernel = functools.partial(fused_encoder_kernel, nhead=nhead, eps=eps)
    return pl.pallas_call(
        kernel,
        out_shape=jax.ShapeDtypeStruct((B, S, D), jnp.float32),
        grid=(grid_b,),
        in_specs=in_specs,
        out_specs=pl.BlockSpec((block_b, S, D), lambda b: (b, 0, 0)),
        compiler_params=pltpu.CompilerParams(
            dimension_semantics=("parallel",),
            vmem_limit_bytes=vmem_limit),
    )(x, pe_mod, *weights)


# -----------------------------------------------------------------------------
# Parameter construction (deterministic, matches module shapes)
# -----------------------------------------------------------------------------
def positional_embedding(max_len=512, d_model=D_MODEL):
    position = jnp.arange(max_len, dtype=jnp.float32)[:, None]
    div_term = jnp.exp(
        jnp.arange(0, d_model, 2, dtype=jnp.float32) * -(math.log(10000.0) / d_model)
    )
    pe = jnp.zeros((max_len, d_model), jnp.float32)
    pe = pe.at[:, 0::2].set(jnp.sin(position * div_term))
    pe = pe.at[:, 1::2].set(jnp.cos(position * div_term))
    return pe


def _xavier(key, shape):
    fan_in, fan_out = shape
    lim = math.sqrt(6.0 / (fan_in + fan_out))
    return jax.random.uniform(key, shape, jnp.float32, -lim, lim)


def init_params(key, d_model, nhead, dim_ff, nlayers):
    kmod, krest = jax.random.split(key)
    modality = 0.02 * jax.random.normal(kmod, (4, d_model), jnp.float32)
    modality = modality.at[0].set(0.0)          # padding_idx=0 (unused anyway)
    pe = positional_embedding(512, d_model)

    lkeys = jax.random.split(krest, nlayers)
    acc = {k: [] for k in _WEIGHT_KEYS}
    for l in range(nlayers):
        k = jax.random.split(lkeys[l], 12)
        acc["wqkv"].append(_xavier(k[0], (d_model, 3 * d_model)))
        acc["wo"].append(_xavier(k[1], (d_model, d_model)))
        acc["w1"].append(_xavier(k[2], (d_model, dim_ff)))
        acc["w2"].append(_xavier(k[3], (dim_ff, d_model)))
        acc["bqkv"].append(0.02 * jax.random.normal(k[4], (1, 3 * d_model), jnp.float32))
        acc["bo"].append(0.02 * jax.random.normal(k[5], (1, d_model), jnp.float32))
        acc["b1"].append(0.02 * jax.random.normal(k[6], (1, dim_ff), jnp.float32))
        acc["b2"].append(0.02 * jax.random.normal(k[7], (1, d_model), jnp.float32))
        acc["ln1g"].append(1.0 + 0.02 * jax.random.normal(k[8], (1, d_model), jnp.float32))
        acc["ln1b"].append(0.02 * jax.random.normal(k[9], (1, d_model), jnp.float32))
        acc["ln2g"].append(1.0 + 0.02 * jax.random.normal(k[10], (1, d_model), jnp.float32))
        acc["ln2b"].append(0.02 * jax.random.normal(k[11], (1, d_model), jnp.float32))

    params = dict(modality=modality, pe=pe)
    bf16_keys = ("wqkv", "wo", "w1", "w2")
    # Fold the softmax 1/sqrt(dh) scale into the Q columns (and Q bias) BEFORE
    # the bf16 cast (review opt #5).  Mathematically identical to scaling the
    # attention scores at runtime.
    scale = 1.0 / math.sqrt(d_model / nhead)
    for k in _WEIGHT_KEYS:
        stacked = jnp.stack(acc[k], axis=0)
        if k in ("wqkv", "bqkv"):
            stacked = stacked.at[:, :, :d_model].multiply(scale)
        params[k] = stacked.astype(jnp.bfloat16) if k in bf16_keys else stacked
    return params


def build_pe_mod(params, sa, sg, sl_):
    pe, mod = params["pe"], params["modality"]
    return jnp.concatenate(
        [pe[:sa] + mod[1], pe[:sg] + mod[2], pe[:sl_] + mod[3]], axis=0
    )


# -----------------------------------------------------------------------------
# Pure-JAX reference (mirrors the kernel's bf16 cast points exactly).
# Note: the softmax scale is already folded into params["wqkv"]/["bqkv"].
# -----------------------------------------------------------------------------
def _layer_norm(x, g, b, eps):
    mu = jnp.mean(x, axis=-1, keepdims=True)
    var = jnp.mean((x - mu) ** 2, axis=-1, keepdims=True)
    return (x - mu) * jax.lax.rsqrt(var + eps) * g + b


def forward_ref(audio, g2p, lm, params, nhead, eps=1e-5):
    sa, sg, sl_ = audio.shape[1], g2p.shape[1], lm.shape[1]
    x = (jnp.concatenate([audio, g2p, lm], axis=1)
         + build_pe_mod(params, sa, sg, sl_)[None]).astype(jnp.float32)
    B, S, D = x.shape
    dh = D // nhead
    nlayers = params["wqkv"].shape[0]
    bf, f32 = jnp.bfloat16, jnp.float32
    for l in range(nlayers):
        qkv = jnp.einsum("bsd,de->bse", x.astype(bf), params["wqkv"][l],
                         preferred_element_type=f32) + params["bqkv"][l]
        q = qkv[..., :D].reshape(B, S, nhead, dh).transpose(0, 2, 1, 3)
        k = qkv[..., D:2 * D].reshape(B, S, nhead, dh).transpose(0, 2, 1, 3)
        v = qkv[..., 2 * D:].reshape(B, S, nhead, dh).transpose(0, 2, 1, 3)
        s = jnp.einsum("bhqd,bhkd->bhqk", q.astype(bf), k.astype(bf),
                       preferred_element_type=f32)
        p = jax.nn.softmax(s, axis=-1)
        o = jnp.einsum("bhqk,bhkd->bhqd", p.astype(bf), v.astype(bf),
                       preferred_element_type=f32)
        o = o.transpose(0, 2, 1, 3).reshape(B, S, D)
        o = jnp.einsum("bsd,de->bse", o.astype(bf), params["wo"][l],
                       preferred_element_type=f32) + params["bo"][l]
        h = _layer_norm(x + o, params["ln1g"][l], params["ln1b"][l], eps)
        f = jnp.einsum("bsd,df->bsf", h.astype(bf), params["w1"][l],
                       preferred_element_type=f32) + params["b1"][l]
        f = jnp.maximum(f, 0.0)
        f = jnp.einsum("bsf,fd->bsd", f.astype(bf), params["w2"][l],
                       preferred_element_type=f32) + params["b2"][l]
        x = _layer_norm(h + f, params["ln2g"][l], params["ln2b"][l], eps)
    return x


# -----------------------------------------------------------------------------
if __name__ == "__main__":
    B, SA, SG, SL = 2, 8, 8, 8
    NHEAD, DIM_FF, NLAYERS = 4, 256, 2

    key = jax.random.PRNGKey(0)
    ka, kg, kl, kp = jax.random.split(key, 4)
    audio = jax.random.normal(ka, (B, SA, D_MODEL), jnp.float32)
    g2p = jax.random.normal(kg, (B, SG, D_MODEL), jnp.float32)
    lm = jax.random.normal(kl, (B, SL, D_MODEL), jnp.float32)

    params = init_params(kp, D_MODEL, NHEAD, DIM_FF, NLAYERS)

    fwd = jax.jit(functools.partial(forward, nhead=NHEAD))
    out = jax.block_until_ready(fwd(audio, g2p, lm, params))
    assert out.shape == (B, SA + SG + SL, D_MODEL), out.shape

    ref = jax.block_until_ready(forward_ref(audio, g2p, lm, params, NHEAD))
    max_err = float(jnp.max(jnp.abs(out - ref)))
    assert max_err < 2e-2, f"mismatch vs reference: {max_err}"

    print("KERNEL_OK")
</pallas_src>

<mosaic_0001>
module attributes {stable_mosaic.version = 11 : i64} {
  func.func @fused_encoder_kernel(%arg0: i32, %arg1: memref<2x24x128xf32, #tpu.memory_space<vmem>>, %arg2: memref<24x128xf32, #tpu.memory_space<vmem>>, %arg3: memref<2x128x384xbf16, #tpu.memory_space<vmem>>, %arg4: memref<2x1x384xf32, #tpu.memory_space<vmem>>, %arg5: memref<2x128x128xbf16, #tpu.memory_space<vmem>>, %arg6: memref<2x1x128xf32, #tpu.memory_space<vmem>>, %arg7: memref<2x1x128xf32, #tpu.memory_space<vmem>>, %arg8: memref<2x1x128xf32, #tpu.memory_space<vmem>>, %arg9: memref<2x128x256xbf16, #tpu.memory_space<vmem>>, %arg10: memref<2x1x256xf32, #tpu.memory_space<vmem>>, %arg11: memref<2x256x128xbf16, #tpu.memory_space<vmem>>, %arg12: memref<2x1x128xf32, #tpu.memory_space<vmem>>, %arg13: memref<2x1x128xf32, #tpu.memory_space<vmem>>, %arg14: memref<2x1x128xf32, #tpu.memory_space<vmem>>, %arg15: memref<2x24x128xf32, #tpu.memory_space<vmem>>) attributes {dimension_semantics = [#tpu.dimension_semantics<parallel>], iteration_bounds = array<i64: 1>, scalar_prefetch = 0 : i64, scratch_operands = 0 : i64, tpu.core_type = #tpu.core_type<tc>, window_params = [{transform_indices = @transform_0, window_bounds = array<i64: 2, 24, 128>}, {pipeline_mode = #tpu.pipeline_mode<synchronous>, transform_indices = @transform_1, window_bounds = array<i64: 24, 128>}, {pipeline_mode = #tpu.pipeline_mode<synchronous>, transform_indices = @transform_2, window_bounds = array<i64: 2, 128, 384>}, {pipeline_mode = #tpu.pipeline_mode<synchronous>, transform_indices = @transform_3, window_bounds = array<i64: 2, 1, 384>}, {pipeline_mode = #tpu.pipeline_mode<synchronous>, transform_indices = @transform_4, window_bounds = array<i64: 2, 128, 128>}, {pipeline_mode = #tpu.pipeline_mode<synchronous>, transform_indices = @transform_5, window_bounds = array<i64: 2, 1, 128>}, {pipeline_mode = #tpu.pipeline_mode<synchronous>, transform_indices = @transform_6, window_bounds = array<i64: 2, 1, 128>}, {pipeline_mode = #tpu.pipeline_mode<synchronous>, transform_indices = @transform_7, window_bounds = array<i64: 2, 1, 128>}, {pipeline_mode = #tpu.pipeline_mode<synchronous>, transform_indices = @transform_8, window_bounds = array<i64: 2, 128, 256>}, {pipeline_mode = #tpu.pipeline_mode<synchronous>, transform_indices = @transform_9, window_bounds = array<i64: 2, 1, 256>}, {pipeline_mode = #tpu.pipeline_mode<synchronous>, transform_indices = @transform_10, window_bounds = array<i64: 2, 256, 128>}, {pipeline_mode = #tpu.pipeline_mode<synchronous>, transform_indices = @transform_11, window_bounds = array<i64: 2, 1, 128>}, {pipeline_mode = #tpu.pipeline_mode<synchronous>, transform_indices = @transform_12, window_bounds = array<i64: 2, 1, 128>}, {pipeline_mode = #tpu.pipeline_mode<synchronous>, transform_indices = @transform_13, window_bounds = array<i64: 2, 1, 128>}, {transform_indices = @transform_14, window_bounds = array<i64: 2, 24, 128>}]} {
    %c0 = arith.constant 0 : index
    %c0_0 = arith.constant 0 : index
    %c0_1 = arith.constant 0 : index
    %0 = vector.load %arg1[%c0, %c0_0, %c0_1] : memref<2x24x128xf32, #tpu.memory_space<vmem>>, vector<2x24x128xf32>
    %c0_2 = arith.constant 0 : index
    %c0_3 = arith.constant 0 : index
    %1 = vector.load %arg2[%c0_2, %c0_3] : memref<24x128xf32, #tpu.memory_space<vmem>>, vector<24x128xf32>
    %2 = vector.shape_cast %1 : vector<24x128xf32> to vector<1x24x128xf32>
    %3 = vector.broadcast %2 : vector<1x24x128xf32> to vector<2x24x128xf32>
    %4 = arith.addf %0, %3 : vector<2x24x128xf32>
    %5 = vector.shape_cast %4 : vector<2x24x128xf32> to vector<48x128xf32>
    %c0_4 = arith.constant 0 : index
    %c0_5 = arith.constant 0 : index
    %c0_6 = arith.constant 0 : index
    %6 = vector.load %arg3[%c0_4, %c0_5, %c0_6] : memref<2x128x384xbf16, #tpu.memory_space<vmem>>, vector<1x128x384xbf16>
    %7 = vector.shape_cast %6 : vector<1x128x384xbf16> to vector<128x384xbf16>
    %c0_7 = arith.constant 0 : index
    %c0_8 = arith.constant 0 : index
    %c0_9 = arith.constant 0 : index
    %8 = vector.load %arg4[%c0_7, %c0_8, %c0_9] : memref<2x1x384xf32, #tpu.memory_space<vmem>>, vector<1x1x384xf32>
    %9 = vector.shape_cast %8 : vector<1x1x384xf32> to vector<1x384xf32>
    %c0_10 = arith.constant 0 : index
    %c0_11 = arith.constant 0 : index
    %c0_12 = arith.constant 0 : index
    %10 = vector.load %arg5[%c0_10, %c0_11, %c0_12] : memref<2x128x128xbf16, #tpu.memory_space<vmem>>, vector<1x128x128xbf16>
    %11 = vector.shape_cast %10 : vector<1x128x128xbf16> to vector<128x128xbf16>
    %c0_13 = arith.constant 0 : index
    %c0_14 = arith.constant 0 : index
    %c0_15 = arith.constant 0 : index
    %12 = vector.load %arg6[%c0_13, %c0_14, %c0_15] : memref<2x1x128xf32, #tpu.memory_space<vmem>>, vector<1x1x128xf32>
    %13 = vector.shape_cast %12 : vector<1x1x128xf32> to vector<1x128xf32>
    %c0_16 = arith.constant 0 : index
    %c0_17 = arith.constant 0 : index
    %c0_18 = arith.constant 0 : index
    %14 = vector.load %arg7[%c0_16, %c0_17, %c0_18] : memref<2x1x128xf32, #tpu.memory_space<vmem>>, vector<1x1x128xf32>
    %15 = vector.shape_cast %14 : vector<1x1x128xf32> to vector<1x128xf32>
    %c0_19 = arith.constant 0 : index
    %c0_20 = arith.constant 0 : index
    %c0_21 = arith.constant 0 : index
    %16 = vector.load %arg8[%c0_19, %c0_20, %c0_21] : memref<2x1x128xf32, #tpu.memory_space<vmem>>, vector<1x1x128xf32>
    %17 = vector.shape_cast %16 : vector<1x1x128xf32> to vector<1x128xf32>
    %c0_22 = arith.constant 0 : index
    %c0_23 = arith.constant 0 : index
    %c0_24 = arith.constant 0 : index
    %18 = vector.load %arg9[%c0_22, %c0_23, %c0_24] : memref<2x128x256xbf16, #tpu.memory_space<vmem>>, vector<1x128x256xbf16>
    %19 = vector.shape_cast %18 : vector<1x128x256xbf16> to vector<128x256xbf16>
    %c0_25 = arith.constant 0 : index
    %c0_26 = arith.constant 0 : index
    %c0_27 = arith.constant 0 : index
    %20 = vector.load %arg10[%c0_25, %c0_26, %c0_27] : memref<2x1x256xf32, #tpu.memory_space<vmem>>, vector<1x1x256xf32>
    %21 = vector.shape_cast %20 : vector<1x1x256xf32> to vector<1x256xf32>
    %c0_28 = arith.constant 0 : index
    %c0_29 = arith.constant 0 : index
    %c0_30 = arith.constant 0 : index
    %22 = vector.load %arg11[%c0_28, %c0_29, %c0_30] : memref<2x256x128xbf16, #tpu.memory_space<vmem>>, vector<1x256x128xbf16>
    %23 = vector.shape_cast %22 : vector<1x256x128xbf16> to vector<256x128xbf16>
    %c0_31 = arith.constant 0 : index
    %c0_32 = arith.constant 0 : index
    %c0_33 = arith.constant 0 : index
    %24 = vector.load %arg12[%c0_31, %c0_32, %c0_33] : memref<2x1x128xf32, #tpu.memory_space<vmem>>, vector<1x1x128xf32>
    %25 = vector.shape_cast %24 : vector<1x1x128xf32> to vector<1x128xf32>
    %c0_34 = arith.constant 0 : index
    %c0_35 = arith.constant 0 : index
    %c0_36 = arith.constant 0 : index
    %26 = vector.load %arg13[%c0_34, %c0_35, %c0_36] : memref<2x1x128xf32, #tpu.memory_space<vmem>>, vector<1x1x128xf32>
    %27 = vector.shape_cast %26 : vector<1x1x128xf32> to vector<1x128xf32>
    %c0_37 = arith.constant 0 : index
    %c0_38 = arith.constant 0 : index
    %c0_39 = arith.constant 0 : index
    %28 = vector.load %arg14[%c0_37, %c0_38, %c0_39] : memref<2x1x128xf32, #tpu.memory_space<vmem>>, vector<1x1x128xf32>
    %29 = vector.shape_cast %28 : vector<1x1x128xf32> to vector<1x128xf32>
    %30 = arith.truncf %5 : vector<48x128xf32> to vector<48x128xbf16>
    %cst = arith.constant dense<0.000000e+00> : vector<48x384xf32>
    %31 = tpu.matmul %30, %7, %cst {dimension_numbers = #tpu.dot_dimension_numbers<[1], [0], [0], [1], [0, 0, 1, 1], [], []>} : vector<48x128xbf16>, vector<128x384xbf16>, vector<48x384xf32> -> vector<48x384xf32>
    %32 = vector.broadcast %9 : vector<1x384xf32> to vector<48x384xf32>
    %33 = arith.addf %31, %32 : vector<48x384xf32>
    %34 = vector.extract_strided_slice %33 {offsets = [0, 0], sizes = [48, 128], strides = [1, 1]} : vector<48x384xf32> to vector<48x128xf32>
    %35 = arith.truncf %34 : vector<48x128xf32> to vector<48x128xbf16>
    %36 = vector.extract_strided_slice %33 {offsets = [0, 128], sizes = [48, 128], strides = [1, 1]} : vector<48x384xf32> to vector<48x128xf32>
    %37 = arith.truncf %36 : vector<48x128xf32> to vector<48x128xbf16>
    %38 = vector.extract_strided_slice %33 {offsets = [0, 256], sizes = [48, 128], strides = [1, 1]} : vector<48x384xf32> to vector<48x128xf32>
    %39 = arith.truncf %38 : vector<48x128xf32> to vector<48x128xbf16>
    %40 = vector.extract_strided_slice %35 {offsets = [0, 0], sizes = [24, 32], strides = [1, 1]} : vector<48x128xbf16> to vector<24x32xbf16>
    %41 = vector.extract_strided_slice %37 {offsets = [0, 0], sizes = [24, 32], strides = [1, 1]} : vector<48x128xbf16> to vector<24x32xbf16>
    %42 = vector.extract_strided_slice %39 {offsets = [0, 0], sizes = [24, 32], strides = [1, 1]} : vector<48x128xbf16> to vector<24x32xbf16>
    "tpu.trace_start"() <{level = 10 : i32, message = "qd,kd->qk"}> : () -> ()
    %cst_40 = arith.constant dense<0.000000e+00> : vector<24x24xf32>
    %43 = tpu.matmul %40, %41, %cst_40 {dimension_numbers = #tpu.dot_dimension_numbers<[1], [1], [0], [0], [0, 0, 1, 0], [], []>} : vector<24x32xbf16>, vector<24x32xbf16>, vector<24x24xf32> -> vector<24x24xf32>
    "tpu.trace_stop"() : () -> ()
    %cst_41 = arith.constant dense<0xFF800000> : vector<24xf32>
    %44 = vector.multi_reduction <maximumf>, %43, %cst_41 [1] : vector<24x24xf32> to vector<24xf32>
    %45 = vector.shape_cast %44 : vector<24xf32> to vector<24x1xf32>
    %46 = vector.broadcast %45 : vector<24x1xf32> to vector<24x24xf32>
    %47 = arith.subf %43, %46 : vector<24x24xf32>
    %48 = math.exp %47 : vector<24x24xf32>
    %cst_42 = arith.constant dense<0.000000e+00> : vector<24xf32>
    %49 = vector.multi_reduction <add>, %48, %cst_42 [1] : vector<24x24xf32> to vector<24xf32>
    %50 = vector.shape_cast %49 : vector<24xf32> to vector<24x1xf32>
    %51 = tpu.reciprocal %50 {approx = true} : vector<24x1xf32> -> vector<24x1xf32>
    %52 = vector.broadcast %51 : vector<24x1xf32> to vector<24x24xf32>
    %53 = arith.mulf %48, %52 : vector<24x24xf32>
    %54 = arith.truncf %53 : vector<24x24xf32> to vector<24x24xbf16>
    %cst_43 = arith.constant dense<0.000000e+00> : vector<24x32xf32>
    %55 = tpu.matmul %54, %42, %cst_43 {dimension_numbers = #tpu.dot_dimension_numbers<[1], [0], [0], [1], [0, 0, 1, 1], [], []>} : vector<24x24xbf16>, vector<24x32xbf16>, vector<24x32xf32> -> vector<24x32xf32>
    %56 = vector.extract_strided_slice %35 {offsets = [0, 32], sizes = [24, 32], strides = [1, 1]} : vector<48x128xbf16> to vector<24x32xbf16>
    %57 = vector.extract_strided_slice %37 {offsets = [0, 32], sizes = [24, 32], strides = [1, 1]} : vector<48x128xbf16> to vector<24x32xbf16>
    %58 = vector.extract_strided_slice %39 {offsets = [0, 32], sizes = [24, 32], strides = [1, 1]} : vector<48x128xbf16> to vector<24x32xbf16>
    "tpu.trace_start"() <{level = 10 : i32, message = "qd,kd->qk"}> : () -> ()
    %cst_44 = arith.constant dense<0.000000e+00> : vector<24x24xf32>
    %59 = tpu.matmul %56, %57, %cst_44 {dimension_numbers = #tpu.dot_dimension_numbers<[1], [1], [0], [0], [0, 0, 1, 0], [], []>} : vector<24x32xbf16>, vector<24x32xbf16>, vector<24x24xf32> -> vector<24x24xf32>
    "tpu.trace_stop"() : () -> ()
    %cst_45 = arith.constant dense<0xFF800000> : vector<24xf32>
    %60 = vector.multi_reduction <maximumf>, %59, %cst_45 [1] : vector<24x24xf32> to vector<24xf32>
    %61 = vector.shape_cast %60 : vector<24xf32> to vector<24x1xf32>
    %62 = vector.broadcast %61 : vector<24x1xf32> to vector<24x24xf32>
    %63 = arith.subf %59, %62 : vector<24x24xf32>
    %64 = math.exp %63 : vector<24x24xf32>
    %cst_46 = arith.constant dense<0.000000e+00> : vector<24xf32>
    %65 = vector.multi_reduction <add>, %64, %cst_46 [1] : vector<24x24xf32> to vector<24xf32>
    %66 = vector.shape_cast %65 : vector<24xf32> to vector<24x1xf32>
    %67 = tpu.reciprocal %66 {approx = true} : vector<24x1xf32> -> vector<24x1xf32>
    %68 = vector.broadcast %67 : vector<24x1xf32> to vector<24x24xf32>
    %69 = arith.mulf %64, %68 : vector<24x24xf32>
    %70 = arith.truncf %69 : vector<24x24xf32> to vector<24x24xbf16>
    %cst_47 = arith.constant dense<0.000000e+00> : vector<24x32xf32>
    %71 = tpu.matmul %70, %58, %cst_47 {dimension_numbers = #tpu.dot_dimension_numbers<[1], [0], [0], [1], [0, 0, 1, 1], [], []>} : vector<24x24xbf16>, vector<24x32xbf16>, vector<24x32xf32> -> vector<24x32xf32>
    %72 = vector.extract_strided_slice %35 {offsets = [0, 64], sizes = [24, 32], strides = [1, 1]} : vector<48x128xbf16> to vector<24x32xbf16>
    %73 = vector.extract_strided_slice %37 {offsets = [0, 64], sizes = [24, 32], strides = [1, 1]} : vector<48x128xbf16> to vector<24x32xbf16>
    %74 = vector.extract_strided_slice %39 {offsets = [0, 64], sizes = [24, 32], strides = [1, 1]} : vector<48x128xbf16> to vector<24x32xbf16>
    "tpu.trace_start"() <{level = 10 : i32, message = "qd,kd->qk"}> : () -> ()
    %cst_48 = arith.constant dense<0.000000e+00> : vector<24x24xf32>
    %75 = tpu.matmul %72, %73, %cst_48 {dimension_numbers = #tpu.dot_dimension_numbers<[1], [1], [0], [0], [0, 0, 1, 0], [], []>} : vector<24x32xbf16>, vector<24x32xbf16>, vector<24x24xf32> -> vector<24x24xf32>
    "tpu.trace_stop"() : () -> ()
    %cst_49 = arith.constant dense<0xFF800000> : vector<24xf32>
    %76 = vector.multi_reduction <maximumf>, %75, %cst_49 [1] : vector<24x24xf32> to vector<24xf32>
    %77 = vector.shape_cast %76 : vector<24xf32> to vector<24x1xf32>
    %78 = vector.broadcast %77 : vector<24x1xf32> to vector<24x24xf32>
    %79 = arith.subf %75, %78 : vector<24x24xf32>
    %80 = math.exp %79 : vector<24x24xf32>
    %cst_50 = arith.constant dense<0.000000e+00> : vector<24xf32>
    %81 = vector.multi_reduction <add>, %80, %cst_50 [1] : vector<24x24xf32> to vector<24xf32>
    %82 = vector.shape_cast %81 : vector<24xf32> to vector<24x1xf32>
    %83 = tpu.reciprocal %82 {approx = true} : vector<24x1xf32> -> vector<24x1xf32>
    %84 = vector.broadcast %83 : vector<24x1xf32> to vector<24x24xf32>
    %85 = arith.mulf %80, %84 : vector<24x24xf32>
    %86 = arith.truncf %85 : vector<24x24xf32> to vector<24x24xbf16>
    %cst_51 = arith.constant dense<0.000000e+00> : vector<24x32xf32>
    %87 = tpu.matmul %86, %74, %cst_51 {dimension_numbers = #tpu.dot_dimension_numbers<[1], [0], [0], [1], [0, 0, 1, 1], [], []>} : vector<24x24xbf16>, vector<24x32xbf16>, vector<24x32xf32> -> vector<24x32xf32>
    %88 = vector.extract_strided_slice %35 {offsets = [0, 96], sizes = [24, 32], strides = [1, 1]} : vector<48x128xbf16> to vector<24x32xbf16>
    %89 = vector.extract_strided_slice %37 {offsets = [0, 96], sizes = [24, 32], strides = [1, 1]} : vector<48x128xbf16> to vector<24x32xbf16>
    %90 = vector.extract_strided_slice %39 {offsets = [0, 96], sizes = [24, 32], strides = [1, 1]} : vector<48x128xbf16> to vector<24x32xbf16>
    "tpu.trace_start"() <{level = 10 : i32, message = "qd,kd->qk"}> : () -> ()
    %cst_52 = arith.constant dense<0.000000e+00> : vector<24x24xf32>
    %91 = tpu.matmul %88, %89, %cst_52 {dimension_numbers = #tpu.dot_dimension_numbers<[1], [1], [0], [0], [0, 0, 1, 0], [], []>} : vector<24x32xbf16>, vector<24x32xbf16>, vector<24x24xf32> -> vector<24x24xf32>
    "tpu.trace_stop"() : () -> ()
    %cst_53 = arith.constant dense<0xFF800000> : vector<24xf32>
    %92 = vector.multi_reduction <maximumf>, %91, %cst_53 [1] : vector<24x24xf32> to vector<24xf32>
    %93 = vector.shape_cast %92 : vector<24xf32> to vector<24x1xf32>
    %94 = vector.broadcast %93 : vector<24x1xf32> to vector<24x24xf32>
    %95 = arith.subf %91, %94 : vector<24x24xf32>
    %96 = math.exp %95 : vector<24x24xf32>
    %cst_54 = arith.constant dense<0.000000e+00> : vector<24xf32>
    %97 = vector.multi_reduction <add>, %96, %cst_54 [1] : vector<24x24xf32> to vector<24xf32>
    %98 = vector.shape_cast %97 : vector<24xf32> to vector<24x1xf32>
    %99 = tpu.reciprocal %98 {approx = true} : vector<24x1xf32> -> vector<24x1xf32>
    %100 = vector.broadcast %99 : vector<24x1xf32> to vector<24x24xf32>
    %101 = arith.mulf %96, %100 : vector<24x24xf32>
    %102 = arith.truncf %101 : vector<24x24xf32> to vector<24x24xbf16>
    %cst_55 = arith.constant dense<0.000000e+00> : vector<24x32xf32>
    %103 = tpu.matmul %102, %90, %cst_55 {dimension_numbers = #tpu.dot_dimension_numbers<[1], [0], [0], [1], [0, 0, 1, 1], [], []>} : vector<24x24xbf16>, vector<24x32xbf16>, vector<24x32xf32> -> vector<24x32xf32>
    %104 = tpu.concatenate %55, %71, %87, %103 in 1 : vector<24x32xf32>, vector<24x32xf32>, vector<24x32xf32>, vector<24x32xf32> -> vector<24x128xf32>
    %105 = vector.extract_strided_slice %35 {offsets = [24, 0], sizes = [24, 32], strides = [1, 1]} : vector<48x128xbf16> to vector<24x32xbf16>
    %106 = vector.extract_strided_slice %37 {offsets = [24, 0], sizes = [24, 32], strides = [1, 1]} : vector<48x128xbf16> to vector<24x32xbf16>
    %107 = vector.extract_strided_slice %39 {offsets = [24, 0], sizes = [24, 32], strides = [1, 1]} : vector<48x128xbf16> to vector<24x32xbf16>
    "tpu.trace_start"() <{level = 10 : i32, message = "qd,kd->qk"}> : () -> ()
    %cst_56 = arith.constant dense<0.000000e+00> : vector<24x24xf32>
    %108 = tpu.matmul %105, %106, %cst_56 {dimension_numbers = #tpu.dot_dimension_numbers<[1], [1], [0], [0], [0, 0, 1, 0], [], []>} : vector<24x32xbf16>, vector<24x32xbf16>, vector<24x24xf32> -> vector<24x24xf32>
    "tpu.trace_stop"() : () -> ()
    %cst_57 = arith.constant dense<0xFF800000> : vector<24xf32>
    %109 = vector.multi_reduction <maximumf>, %108, %cst_57 [1] : vector<24x24xf32> to vector<24xf32>
    %110 = vector.shape_cast %109 : vector<24xf32> to vector<24x1xf32>
    %111 = vector.broadcast %110 : vector<24x1xf32> to vector<24x24xf32>
    %112 = arith.subf %108, %111 : vector<24x24xf32>
    %113 = math.exp %112 : vector<24x24xf32>
    %cst_58 = arith.constant dense<0.000000e+00> : vector<24xf32>
    %114 = vector.multi_reduction <add>, %113, %cst_58 [1] : vector<24x24xf32> to vector<24xf32>
    %115 = vector.shape_cast %114 : vector<24xf32> to vector<24x1xf32>
    %116 = tpu.reciprocal %115 {approx = true} : vector<24x1xf32> -> vector<24x1xf32>
    %117 = vector.broadcast %116 : vector<24x1xf32> to vector<24x24xf32>
    %118 = arith.mulf %113, %117 : vector<24x24xf32>
    %119 = arith.truncf %118 : vector<24x24xf32> to vector<24x24xbf16>
    %cst_59 = arith.constant dense<0.000000e+00> : vector<24x32xf32>
    %120 = tpu.matmul %119, %107, %cst_59 {dimension_numbers = #tpu.dot_dimension_numbers<[1], [0], [0], [1], [0, 0, 1, 1], [], []>} : vector<24x24xbf16>, vector<24x32xbf16>, vector<24x32xf32> -> vector<24x32xf32>
    %121 = vector.extract_strided_slice %35 {offsets = [24, 32], sizes = [24, 32], strides = [1, 1]} : vector<48x128xbf16> to vector<24x32xbf16>
    %122 = vector.extract_strided_slice %37 {offsets = [24, 32], sizes = [24, 32], strides = [1, 1]} : vector<48x128xbf16> to vector<24x32xbf16>
    %123 = vector.extract_strided_slice %39 {offsets = [24, 32], sizes = [24, 32], strides = [1, 1]} : vector<48x128xbf16> to vector<24x32xbf16>
    "tpu.trace_start"() <{level = 10 : i32, message = "qd,kd->qk"}> : () -> ()
    %cst_60 = arith.constant dense<0.000000e+00> : vector<24x24xf32>
    %124 = tpu.matmul %121, %122, %cst_60 {dimension_numbers = #tpu.dot_dimension_numbers<[1], [1], [0], [0], [0, 0, 1, 0], [], []>} : vector<24x32xbf16>, vector<24x32xbf16>, vector<24x24xf32> -> vector<24x24xf32>
    "tpu.trace_stop"() : () -> ()
    %cst_61 = arith.constant dense<0xFF800000> : vector<24xf32>
    %125 = vector.multi_reduction <maximumf>, %124, %cst_61 [1] : vector<24x24xf32> to vector<24xf32>
    %126 = vector.shape_cast %125 : vector<24xf32> to vector<24x1xf32>
    %127 = vector.broadcast %126 : vector<24x1xf32> to vector<24x24xf32>
    %128 = arith.subf %124, %127 : vector<24x24xf32>
    %129 = math.exp %128 : vector<24x24xf32>
    %cst_62 = arith.constant dense<0.000000e+00> : vector<24xf32>
    %130 = vector.multi_reduction <add>, %129, %cst_62 [1] : vector<24x24xf32> to vector<24xf32>
    %131 = vector.shape_cast %130 : vector<24xf32> to vector<24x1xf32>
    %132 = tpu.reciprocal %131 {approx = true} : vector<24x1xf32> -> vector<24x1xf32>
    %133 = vector.broadcast %132 : vector<24x1xf32> to vector<24x24xf32>
    %134 = arith.mulf %129, %133 : vector<24x24xf32>
    %135 = arith.truncf %134 : vector<24x24xf32> to vector<24x24xbf16>
    %cst_63 = arith.constant dense<0.000000e+00> : vector<24x32xf32>
    %136 = tpu.matmul %135, %123, %cst_63 {dimension_numbers = #tpu.dot_dimension_numbers<[1], [0], [0], [1], [0, 0, 1, 1], [], []>} : vector<24x24xbf16>, vector<24x32xbf16>, vector<24x32xf32> -> vector<24x32xf32>
    %137 = vector.extract_strided_slice %35 {offsets = [24, 64], sizes = [24, 32], strides = [1, 1]} : vector<48x128xbf16> to vector<24x32xbf16>
    %138 = vector.extract_strided_slice %37 {offsets = [24, 64], sizes = [24, 32], strides = [1, 1]} : vector<48x128xbf16> to vector<24x32xbf16>
    %139 = vector.extract_strided_slice %39 {offsets = [24, 64], sizes = [24, 32], strides = [1, 1]} : vector<48x128xbf16> to vector<24x32xbf16>
    "tpu.trace_start"() <{level = 10 : i32, message = "qd,kd->qk"}> : () -> ()
    %cst_64 = arith.constant dense<0.000000e+00> : vector<24x24xf32>
    %140 = tpu.matmul %137, %138, %cst_64 {dimension_numbers = #tpu.dot_dimension_numbers<[1], [1], [0], [0], [0, 0, 1, 0], [], []>} : vector<24x32xbf16>, vector<24x32xbf16>, vector<24x24xf32> -> vector<24x24xf32>
    "tpu.trace_stop"() : () -> ()
    %cst_65 = arith.constant dense<0xFF800000> : vector<24xf32>
    %141 = vector.multi_reduction <maximumf>, %140, %cst_65 [1] : vector<24x24xf32> to vector<24xf32>
    %142 = vector.shape_cast %141 : vector<24xf32> to vector<24x1xf32>
    %143 = vector.broadcast %142 : vector<24x1xf32> to vector<24x24xf32>
    %144 = arith.subf %140, %143 : vector<24x24xf32>
    %145 = math.exp %144 : vector<24x24xf32>
    %cst_66 = arith.constant dense<0.000000e+00> : vector<24xf32>
    %146 = vector.multi_reduction <add>, %145, %cst_66 [1] : vector<24x24xf32> to vector<24xf32>
    %147 = vector.shape_cast %146 : vector<24xf32> to vector<24x1xf32>
    %148 = tpu.reciprocal %147 {approx = true} : vector<24x1xf32> -> vector<24x1xf32>
    %149 = vector.broadcast %148 : vector<24x1xf32> to vector<24x24xf32>
    %150 = arith.mulf %145, %149 : vector<24x24xf32>
    %151 = arith.truncf %150 : vector<24x24xf32> to vector<24x24xbf16>
    %cst_67 = arith.constant dense<0.000000e+00> : vector<24x32xf32>
    %152 = tpu.matmul %151, %139, %cst_67 {dimension_numbers = #tpu.dot_dimension_numbers<[1], [0], [0], [1], [0, 0, 1, 1], [], []>} : vector<24x24xbf16>, vector<24x32xbf16>, vector<24x32xf32> -> vector<24x32xf32>
    %153 = vector.extract_strided_slice %35 {offsets = [24, 96], sizes = [24, 32], strides = [1, 1]} : vector<48x128xbf16> to vector<24x32xbf16>
    %154 = vector.extract_strided_slice %37 {offsets = [24, 96], sizes = [24, 32], strides = [1, 1]} : vector<48x128xbf16> to vector<24x32xbf16>
    %155 = vector.extract_strided_slice %39 {offsets = [24, 96], sizes = [24, 32], strides = [1, 1]} : vector<48x128xbf16> to vector<24x32xbf16>
    "tpu.trace_start"() <{level = 10 : i32, message = "qd,kd->qk"}> : () -> ()
    %cst_68 = arith.constant dense<0.000000e+00> : vector<24x24xf32>
    %156 = tpu.matmul %153, %154, %cst_68 {dimension_numbers = #tpu.dot_dimension_numbers<[1], [1], [0], [0], [0, 0, 1, 0], [], []>} : vector<24x32xbf16>, vector<24x32xbf16>, vector<24x24xf32> -> vector<24x24xf32>
    "tpu.trace_stop"() : () -> ()
    %cst_69 = arith.constant dense<0xFF800000> : vector<24xf32>
    %157 = vector.multi_reduction <maximumf>, %156, %cst_69 [1] : vector<24x24xf32> to vector<24xf32>
    %158 = vector.shape_cast %157 : vector<24xf32> to vector<24x1xf32>
    %159 = vector.broadcast %158 : vector<24x1xf32> to vector<24x24xf32>
    %160 = arith.subf %156, %159 : vector<24x24xf32>
    %161 = math.exp %160 : vector<24x24xf32>
    %cst_70 = arith.constant dense<0.000000e+00> : vector<24xf32>
    %162 = vector.multi_reduction <add>, %161, %cst_70 [1] : vector<24x24xf32> to vector<24xf32>
    %163 = vector.shape_cast %162 : vector<24xf32> to vector<24x1xf32>
    %164 = tpu.reciprocal %163 {approx = true} : vector<24x1xf32> -> vector<24x1xf32>
    %165 = vector.broadcast %164 : vector<24x1xf32> to vector<24x24xf32>
    %166 = arith.mulf %161, %165 : vector<24x24xf32>
    %167 = arith.truncf %166 : vector<24x24xf32> to vector<24x24xbf16>
    %cst_71 = arith.constant dense<0.000000e+00> : vector<24x32xf32>
    %168 = tpu.matmul %167, %155, %cst_71 {dimension_numbers = #tpu.dot_dimension_numbers<[1], [0], [0], [1], [0, 0, 1, 1], [], []>} : vector<24x24xbf16>, vector<24x32xbf16>, vector<24x32xf32> -> vector<24x32xf32>
    %169 = tpu.concatenate %120, %136, %152, %168 in 1 : vector<24x32xf32>, vector<24x32xf32>, vector<24x32xf32>, vector<24x32xf32> -> vector<24x128xf32>
    %170 = tpu.concatenate %104, %169 in 0 : vector<24x128xf32>, vector<24x128xf32> -> vector<48x128xf32>
    %171 = arith.truncf %170 : vector<48x128xf32> to vector<48x128xbf16>
    %cst_72 = arith.constant dense<0.000000e+00> : vector<48x128xf32>
    %172 = tpu.matmul %171, %11, %cst_72 {dimension_numbers = #tpu.dot_dimension_numbers<[1], [0], [0], [1], [0, 0, 1, 1], [], []>} : vector<48x128xbf16>, vector<128x128xbf16>, vector<48x128xf32> -> vector<48x128xf32>
    %173 = vector.broadcast %13 : vector<1x128xf32> to vector<48x128xf32>
    %174 = arith.addf %172, %173 : vector<48x128xf32>
    %175 = arith.addf %5, %174 : vector<48x128xf32>
    %cst_73 = arith.constant dense<0.000000e+00> : vector<48xf32>
    %176 = vector.multi_reduction <add>, %175, %cst_73 [1] : vector<48x128xf32> to vector<48xf32>
    %177 = vector.shape_cast %176 : vector<48xf32> to vector<48x1xf32>
    %cst_74 = arith.constant 1.280000e+02 : f32
    %178 = vector.broadcast %cst_74 : f32 to vector<48x1xf32>
    %179 = arith.divf %177, %178 : vector<48x1xf32>
    %180 = vector.broadcast %179 : vector<48x1xf32> to vector<48x128xf32>
    %181 = arith.subf %175, %180 : vector<48x128xf32>
    %182 = arith.mulf %181, %181 : vector<48x128xf32>
    %cst_75 = arith.constant dense<0.000000e+00> : vector<48xf32>
    %183 = vector.multi_reduction <add>, %182, %cst_75 [1] : vector<48x128xf32> to vector<48xf32>
    %184 = vector.shape_cast %183 : vector<48xf32> to vector<48x1xf32>
    %cst_76 = arith.constant 1.280000e+02 : f32
    %185 = vector.broadcast %cst_76 : f32 to vector<48x1xf32>
    %186 = arith.divf %184, %185 : vector<48x1xf32>
    %187 = vector.broadcast %179 : vector<48x1xf32> to vector<48x128xf32>
    %188 = arith.subf %175, %187 : vector<48x128xf32>
    %cst_77 = arith.constant 9.99999974E-6 : f32
    %189 = vector.broadcast %cst_77 : f32 to vector<48x1xf32>
    %190 = arith.addf %186, %189 : vector<48x1xf32>
    %191 = math.rsqrt %190 : vector<48x1xf32>
    %192 = vector.broadcast %191 : vector<48x1xf32> to vector<48x128xf32>
    %193 = arith.mulf %188, %192 : vector<48x128xf32>
    %194 = vector.broadcast %15 : vector<1x128xf32> to vector<48x128xf32>
    %195 = arith.mulf %193, %194 : vector<48x128xf32>
    %196 = vector.broadcast %17 : vector<1x128xf32> to vector<48x128xf32>
    %197 = arith.addf %195, %196 : vector<48x128xf32>
    %198 = arith.truncf %197 : vector<48x128xf32> to vector<48x128xbf16>
    %cst_78 = arith.constant dense<0.000000e+00> : vector<48x256xf32>
    %199 = tpu.matmul %198, %19, %cst_78 {dimension_numbers = #tpu.dot_dimension_numbers<[1], [0], [0], [1], [0, 0, 1, 1], [], []>} : vector<48x128xbf16>, vector<128x256xbf16>, vector<48x256xf32> -> vector<48x256xf32>
    %200 = vector.broadcast %21 : vector<1x256xf32> to vector<48x256xf32>
    %201 = arith.addf %199, %200 : vector<48x256xf32>
    %cst_79 = arith.constant 0.000000e+00 : f32
    %202 = vector.broadcast %cst_79 : f32 to vector<48x256xf32>
    %203 = arith.maximumf %201, %202 : vector<48x256xf32>
    %204 = arith.truncf %203 : vector<48x256xf32> to vector<48x256xbf16>
    %cst_80 = arith.constant dense<0.000000e+00> : vector<48x128xf32>
    %205 = tpu.matmul %204, %23, %cst_80 {dimension_numbers = #tpu.dot_dimension_numbers<[1], [0], [0], [1], [0, 0, 1, 1], [], []>} : vector<48x256xbf16>, vector<256x128xbf16>, vector<48x128xf32> -> vector<48x128xf32>
    %206 = vector.broadcast %25 : vector<1x128xf32> to vector<48x128xf32>
    %207 = arith.addf %205, %206 : vector<48x128xf32>
    %208 = arith.addf %197, %207 : vector<48x128xf32>
    %cst_81 = arith.constant dense<0.000000e+00> : vector<48xf32>
    %209 = vector.multi_reduction <add>, %208, %cst_81 [1] : vector<48x128xf32> to vector<48xf32>
    %210 = vector.shape_cast %209 : vector<48xf32> to vector<48x1xf32>
    %cst_82 = arith.constant 1.280000e+02 : f32
    %211 = vector.broadcast %cst_82 : f32 to vector<48x1xf32>
    %212 = arith.divf %210, %211 : vector<48x1xf32>
    %213 = vector.broadcast %212 : vector<48x1xf32> to vector<48x128xf32>
    %214 = arith.subf %208, %213 : vector<48x128xf32>
    %215 = arith.mulf %214, %214 : vector<48x128xf32>
    %cst_83 = arith.constant dense<0.000000e+00> : vector<48xf32>
    %216 = vector.multi_reduction <add>, %215, %cst_83 [1] : vector<48x128xf32> to vector<48xf32>
    %217 = vector.shape_cast %216 : vector<48xf32> to vector<48x1xf32>
    %cst_84 = arith.constant 1.280000e+02 : f32
    %218 = vector.broadcast %cst_84 : f32 to vector<48x1xf32>
    %219 = arith.divf %217, %218 : vector<48x1xf32>
    %220 = vector.broadcast %212 : vector<48x1xf32> to vector<48x128xf32>
    %221 = arith.subf %208, %220 : vector<48x128xf32>
    %cst_85 = arith.constant 9.99999974E-6 : f32
    %222 = vector.broadcast %cst_85 : f32 to vector<48x1xf32>
    %223 = arith.addf %219, %222 : vector<48x1xf32>
    %224 = math.rsqrt %223 : vector<48x1xf32>
    %225 = vector.broadcast %224 : vector<48x1xf32> to vector<48x128xf32>
    %226 = arith.mulf %221, %225 : vector<48x128xf32>
    %227 = vector.broadcast %27 : vector<1x128xf32> to vector<48x128xf32>
    %228 = arith.mulf %226, %227 : vector<48x128xf32>
    %229 = vector.broadcast %29 : vector<1x128xf32> to vector<48x128xf32>
    %230 = arith.addf %228, %229 : vector<48x128xf32>
    %c1 = arith.constant 1 : index
    %c0_86 = arith.constant 0 : index
    %c0_87 = arith.constant 0 : index
    %231 = vector.load %arg3[%c1, %c0_86, %c0_87] : memref<2x128x384xbf16, #tpu.memory_space<vmem>>, vector<1x128x384xbf16>
    %232 = vector.shape_cast %231 : vector<1x128x384xbf16> to vector<128x384xbf16>
    %c1_88 = arith.constant 1 : index
    %c0_89 = arith.constant 0 : index
    %c0_90 = arith.constant 0 : index
    %233 = vector.load %arg4[%c1_88, %c0_89, %c0_90] : memref<2x1x384xf32, #tpu.memory_space<vmem>>, vector<1x1x384xf32>
    %234 = vector.shape_cast %233 : vector<1x1x384xf32> to vector<1x384xf32>
    %c1_91 = arith.constant 1 : index
    %c0_92 = arith.constant 0 : index
    %c0_93 = arith.constant 0 : index
    %235 = vector.load %arg5[%c1_91, %c0_92, %c0_93] : memref<2x128x128xbf16, #tpu.memory_space<vmem>>, vector<1x128x128xbf16>
    %236 = vector.shape_cast %235 : vector<1x128x128xbf16> to vector<128x128xbf16>
    %c1_94 = arith.constant 1 : index
    %c0_95 = arith.constant 0 : index
    %c0_96 = arith.constant 0 : index
    %237 = vector.load %arg6[%c1_94, %c0_95, %c0_96] : memref<2x1x128xf32, #tpu.memory_space<vmem>>, vector<1x1x128xf32>
    %238 = vector.shape_cast %237 : vector<1x1x128xf32> to vector<1x128xf32>
    %c1_97 = arith.constant 1 : index
    %c0_98 = arith.constant 0 : index
    %c0_99 = arith.constant 0 : index
    %239 = vector.load %arg7[%c1_97, %c0_98, %c0_99] : memref<2x1x128xf32, #tpu.memory_space<vmem>>, vector<1x1x128xf32>
    %240 = vector.shape_cast %239 : vector<1x1x128xf32> to vector<1x128xf32>
    %c1_100 = arith.constant 1 : index
    %c0_101 = arith.constant 0 : index
    %c0_102 = arith.constant 0 : index
    %241 = vector.load %arg8[%c1_100, %c0_101, %c0_102] : memref<2x1x128xf32, #tpu.memory_space<vmem>>, vector<1x1x128xf32>
    %242 = vector.shape_cast %241 : vector<1x1x128xf32> to vector<1x128xf32>
    %c1_103 = arith.constant 1 : index
    %c0_104 = arith.constant 0 : index
    %c0_105 = arith.constant 0 : index
    %243 = vector.load %arg9[%c1_103, %c0_104, %c0_105] : memref<2x128x256xbf16, #tpu.memory_space<vmem>>, vector<1x128x256xbf16>
    %244 = vector.shape_cast %243 : vector<1x128x256xbf16> to vector<128x256xbf16>
    %c1_106 = arith.constant 1 : index
    %c0_107 = arith.constant 0 : index
    %c0_108 = arith.constant 0 : index
    %245 = vector.load %arg10[%c1_106, %c0_107, %c0_108] : memref<2x1x256xf32, #tpu.memory_space<vmem>>, vector<1x1x256xf32>
    %246 = vector.shape_cast %245 : vector<1x1x256xf32> to vector<1x256xf32>
    %c1_109 = arith.constant 1 : index
    %c0_110 = arith.constant 0 : index
    %c0_111 = arith.constant 0 : index
    %247 = vector.load %arg11[%c1_109, %c0_110, %c0_111] : memref<2x256x128xbf16, #tpu.memory_space<vmem>>, vector<1x256x128xbf16>
    %248 = vector.shape_cast %247 : vector<1x256x128xbf16> to vector<256x128xbf16>
    %c1_112 = arith.constant 1 : index
    %c0_113 = arith.constant 0 : index
    %c0_114 = arith.constant 0 : index
    %249 = vector.load %arg12[%c1_112, %c0_113, %c0_114] : memref<2x1x128xf32, #tpu.memory_space<vmem>>, vector<1x1x128xf32>
    %250 = vector.shape_cast %249 : vector<1x1x128xf32> to vector<1x128xf32>
    %c1_115 = arith.constant 1 : index
    %c0_116 = arith.constant 0 : index
    %c0_117 = arith.constant 0 : index
    %251 = vector.load %arg13[%c1_115, %c0_116, %c0_117] : memref<2x1x128xf32, #tpu.memory_space<vmem>>, vector<1x1x128xf32>
    %252 = vector.shape_cast %251 : vector<1x1x128xf32> to vector<1x128xf32>
    %c1_118 = arith.constant 1 : index
    %c0_119 = arith.constant 0 : index
    %c0_120 = arith.constant 0 : index
    %253 = vector.load %arg14[%c1_118, %c0_119, %c0_120] : memref<2x1x128xf32, #tpu.memory_space<vmem>>, vector<1x1x128xf32>
    %254 = vector.shape_cast %253 : vector<1x1x128xf32> to vector<1x128xf32>
    %255 = arith.truncf %230 : vector<48x128xf32> to vector<48x128xbf16>
    %cst_121 = arith.constant dense<0.000000e+00> : vector<48x384xf32>
    %256 = tpu.matmul %255, %232, %cst_121 {dimension_numbers = #tpu.dot_dimension_numbers<[1], [0], [0], [1], [0, 0, 1, 1], [], []>} : vector<48x128xbf16>, vector<128x384xbf16>, vector<48x384xf32> -> vector<48x384xf32>
    %257 = vector.broadcast %234 : vector<1x384xf32> to vector<48x384xf32>
    %258 = arith.addf %256, %257 : vector<48x384xf32>
    %259 = vector.extract_strided_slice %258 {offsets = [0, 0], sizes = [48, 128], strides = [1, 1]} : vector<48x384xf32> to vector<48x128xf32>
    %260 = arith.truncf %259 : vector<48x128xf32> to vector<48x128xbf16>
    %261 = vector.extract_strided_slice %258 {offsets = [0, 128], sizes = [48, 128], strides = [1, 1]} : vector<48x384xf32> to vector<48x128xf32>
    %262 = arith.truncf %261 : vector<48x128xf32> to vector<48x128xbf16>
    %263 = vector.extract_strided_slice %258 {offsets = [0, 256], sizes = [48, 128], strides = [1, 1]} : vector<48x384xf32> to vector<48x128xf32>
    %264 = arith.truncf %263 : vector<48x128xf32> to vector<48x128xbf16>
    %265 = vector.extract_strided_slice %260 {offsets = [0, 0], sizes = [24, 32], strides = [1, 1]} : vector<48x128xbf16> to vector<24x32xbf16>
    %266 = vector.extract_strided_slice %262 {offsets = [0, 0], sizes = [24, 32], strides = [1, 1]} : vector<48x128xbf16> to vector<24x32xbf16>
    %267 = vector.extract_strided_slice %264 {offsets = [0, 0], sizes = [24, 32], strides = [1, 1]} : vector<48x128xbf16> to vector<24x32xbf16>
    "tpu.trace_start"() <{level = 10 : i32, message = "qd,kd->qk"}> : () -> ()
    %cst_122 = arith.constant dense<0.000000e+00> : vector<24x24xf32>
    %268 = tpu.matmul %265, %266, %cst_122 {dimension_numbers = #tpu.dot_dimension_numbers<[1], [1], [0], [0], [0, 0, 1, 0], [], []>} : vector<24x32xbf16>, vector<24x32xbf16>, vector<24x24xf32> -> vector<24x24xf32>
    "tpu.trace_stop"() : () -> ()
    %cst_123 = arith.constant dense<0xFF800000> : vector<24xf32>
    %269 = vector.multi_reduction <maximumf>, %268, %cst_123 [1] : vector<24x24xf32> to vector<24xf32>
    %270 = vector.shape_cast %269 : vector<24xf32> to vector<24x1xf32>
    %271 = vector.broadcast %270 : vector<24x1xf32> to vector<24x24xf32>
    %272 = arith.subf %268, %271 : vector<24x24xf32>
    %273 = math.exp %272 : vector<24x24xf32>
    %cst_124 = arith.constant dense<0.000000e+00> : vector<24xf32>
    %274 = vector.multi_reduction <add>, %273, %cst_124 [1] : vector<24x24xf32> to vector<24xf32>
    %275 = vector.shape_cast %274 : vector<24xf32> to vector<24x1xf32>
    %276 = tpu.reciprocal %275 {approx = true} : vector<24x1xf32> -> vector<24x1xf32>
    %277 = vector.broadcast %276 : vector<24x1xf32> to vector<24x24xf32>
    %278 = arith.mulf %273, %277 : vector<24x24xf32>
    %279 = arith.truncf %278 : vector<24x24xf32> to vector<24x24xbf16>
    %cst_125 = arith.constant dense<0.000000e+00> : vector<24x32xf32>
    %280 = tpu.matmul %279, %267, %cst_125 {dimension_numbers = #tpu.dot_dimension_numbers<[1], [0], [0], [1], [0, 0, 1, 1], [], []>} : vector<24x24xbf16>, vector<24x32xbf16>, vector<24x32xf32> -> vector<24x32xf32>
    %281 = vector.extract_strided_slice %260 {offsets = [0, 32], sizes = [24, 32], strides = [1, 1]} : vector<48x128xbf16> to vector<24x32xbf16>
    %282 = vector.extract_strided_slice %262 {offsets = [0, 32], sizes = [24, 32], strides = [1, 1]} : vector<48x128xbf16> to vector<24x32xbf16>
    %283 = vector.extract_strided_slice %264 {offsets = [0, 32], sizes = [24, 32], strides = [1, 1]} : vector<48x128xbf16> to vector<24x32xbf16>
    "tpu.trace_start"() <{level = 10 : i32, message = "qd,kd->qk"}> : () -> ()
    %cst_126 = arith.constant dense<0.000000e+00> : vector<24x24xf32>
    %284 = tpu.matmul %281, %282, %cst_126 {dimension_numbers = #tpu.dot_dimension_numbers<[1], [1], [0], [0], [0, 0, 1, 0], [], []>} : vector<24x32xbf16>, vector<24x32xbf16>, vector<24x24xf32> -> vector<24x24xf32>
    "tpu.trace_stop"() : () -> ()
    %cst_127 = arith.constant dense<0xFF800000> : vector<24xf32>
    %285 = vector.multi_reduction <maximumf>, %284, %cst_127 [1] : vector<24x24xf32> to vector<24xf32>
    %286 = vector.shape_cast %285 : vector<24xf32> to vector<24x1xf32>
    %287 = vector.broadcast %286 : vector<24x1xf32> to vector<24x24xf32>
    %288 = arith.subf %284, %287 : vector<24x24xf32>
    %289 = math.exp %288 : vector<24x24xf32>
    %cst_128 = arith.constant dense<0.000000e+00> : vector<24xf32>
    %290 = vector.multi_reduction <add>, %289, %cst_128 [1] : vector<24x24xf32> to vector<24xf32>
    %291 = vector.shape_cast %290 : vector<24xf32> to vector<24x1xf32>
    %292 = tpu.reciprocal %291 {approx = true} : vector<24x1xf32> -> vector<24x1xf32>
    %293 = vector.broadcast %292 : vector<24x1xf32> to vector<24x24xf32>
    %294 = arith.mulf %289, %293 : vector<24x24xf32>
    %295 = arith.truncf %294 : vector<24x24xf32> to vector<24x24xbf16>
    %cst_129 = arith.constant dense<0.000000e+00> : vector<24x32xf32>
    %296 = tpu.matmul %295, %283, %cst_129 {dimension_numbers = #tpu.dot_dimension_numbers<[1], [0], [0], [1], [0, 0, 1, 1], [], []>} : vector<24x24xbf16>, vector<24x32xbf16>, vector<24x32xf32> -> vector<24x32xf32>
    %297 = vector.extract_strided_slice %260 {offsets = [0, 64], sizes = [24, 32], strides = [1, 1]} : vector<48x128xbf16> to vector<24x32xbf16>
    %298 = vector.extract_strided_slice %262 {offsets = [0, 64], sizes = [24, 32], strides = [1, 1]} : vector<48x128xbf16> to vector<24x32xbf16>
    %299 = vector.extract_strided_slice %264 {offsets = [0, 64], sizes = [24, 32], strides = [1, 1]} : vector<48x128xbf16> to vector<24x32xbf16>
    "tpu.trace_start"() <{level = 10 : i32, message = "qd,kd->qk"}> : () -> ()
    %cst_130 = arith.constant dense<0.000000e+00> : vector<24x24xf32>
    %300 = tpu.matmul %297, %298, %cst_130 {dimension_numbers = #tpu.dot_dimension_numbers<[1], [1], [0], [0], [0, 0, 1, 0], [], []>} : vector<24x32xbf16>, vector<24x32xbf16>, vector<24x24xf32> -> vector<24x24xf32>
    "tpu.trace_stop"() : () -> ()
    %cst_131 = arith.constant dense<0xFF800000> : vector<24xf32>
    %301 = vector.multi_reduction <maximumf>, %300, %cst_131 [1] : vector<24x24xf32> to vector<24xf32>
    %302 = vector.shape_cast %301 : vector<24xf32> to vector<24x1xf32>
    %303 = vector.broadcast %302 : vector<24x1xf32> to vector<24x24xf32>
    %304 = arith.subf %300, %303 : vector<24x24xf32>
    %305 = math.exp %304 : vector<24x24xf32>
    %cst_132 = arith.constant dense<0.000000e+00> : vector<24xf32>
    %306 = vector.multi_reduction <add>, %305, %cst_132 [1] : vector<24x24xf32> to vector<24xf32>
    %307 = vector.shape_cast %306 : vector<24xf32> to vector<24x1xf32>
    %308 = tpu.reciprocal %307 {approx = true} : vector<24x1xf32> -> vector<24x1xf32>
    %309 = vector.broadcast %308 : vector<24x1xf32> to vector<24x24xf32>
    %310 = arith.mulf %305, %309 : vector<24x24xf32>
    %311 = arith.truncf %310 : vector<24x24xf32> to vector<24x24xbf16>
    %cst_133 = arith.constant dense<0.000000e+00> : vector<24x32xf32>
    %312 = tpu.matmul %311, %299, %cst_133 {dimension_numbers = #tpu.dot_dimension_numbers<[1], [0], [0], [1], [0, 0, 1, 1], [], []>} : vector<24x24xbf16>, vector<24x32xbf16>, vector<24x32xf32> -> vector<24x32xf32>
    %313 = vector.extract_strided_slice %260 {offsets = [0, 96], sizes = [24, 32], strides = [1, 1]} : vector<48x128xbf16> to vector<24x32xbf16>
    %314 = vector.extract_strided_slice %262 {offsets = [0, 96], sizes = [24, 32], strides = [1, 1]} : vector<48x128xbf16> to vector<24x32xbf16>
    %315 = vector.extract_strided_slice %264 {offsets = [0, 96], sizes = [24, 32], strides = [1, 1]} : vector<48x128xbf16> to vector<24x32xbf16>
    "tpu.trace_start"() <{level = 10 : i32, message = "qd,kd->qk"}> : () -> ()
    %cst_134 = arith.constant dense<0.000000e+00> : vector<24x24xf32>
    %316 = tpu.matmul %313, %314, %cst_134 {dimension_numbers = #tpu.dot_dimension_numbers<[1], [1], [0], [0], [0, 0, 1, 0], [], []>} : vector<24x32xbf16>, vector<24x32xbf16>, vector<24x24xf32> -> vector<24x24xf32>
    "tpu.trace_stop"() : () -> ()
    %cst_135 = arith.constant dense<0xFF800000> : vector<24xf32>
    %317 = vector.multi_reduction <maximumf>, %316, %cst_135 [1] : vector<24x24xf32> to vector<24xf32>
    %318 = vector.shape_cast %317 : vector<24xf32> to vector<24x1xf32>
    %319 = vector.broadcast %318 : vector<24x1xf32> to vector<24x24xf32>
    %320 = arith.subf %316, %319 : vector<24x24xf32>
    %321 = math.exp %320 : vector<24x24xf32>
    %cst_136 = arith.constant dense<0.000000e+00> : vector<24xf32>
    %322 = vector.multi_reduction <add>, %321, %cst_136 [1] : vector<24x24xf32> to vector<24xf32>
    %323 = vector.shape_cast %322 : vector<24xf32> to vector<24x1xf32>
    %324 = tpu.reciprocal %323 {approx = true} : vector<24x1xf32> -> vector<24x1xf32>
    %325 = vector.broadcast %324 : vector<24x1xf32> to vector<24x24xf32>
    %326 = arith.mulf %321, %325 : vector<24x24xf32>
    %327 = arith.truncf %326 : vector<24x24xf32> to vector<24x24xbf16>
    %cst_137 = arith.constant dense<0.000000e+00> : vector<24x32xf32>
    %328 = tpu.matmul %327, %315, %cst_137 {dimension_numbers = #tpu.dot_dimension_numbers<[1], [0], [0], [1], [0, 0, 1, 1], [], []>} : vector<24x24xbf16>, vector<24x32xbf16>, vector<24x32xf32> -> vector<24x32xf32>
    %329 = tpu.concatenate %280, %296, %312, %328 in 1 : vector<24x32xf32>, vector<24x32xf32>, vector<24x32xf32>, vector<24x32xf32> -> vector<24x128xf32>
    %330 = vector.extract_strided_slice %260 {offsets = [24, 0], sizes = [24, 32], strides = [1, 1]} : vector<48x128xbf16> to vector<24x32xbf16>
    %331 = vector.extract_strided_slice %262 {offsets = [24, 0], sizes = [24, 32], strides = [1, 1]} : vector<48x128xbf16> to vector<24x32xbf16>
    %332 = vector.extract_strided_slice %264 {offsets = [24, 0], sizes = [24, 32], strides = [1, 1]} : vector<48x128xbf16> to vector<24x32xbf16>
    "tpu.trace_start"() <{level = 10 : i32, message = "qd,kd->qk"}> : () -> ()
    %cst_138 = arith.constant dense<0.000000e+00> : vector<24x24xf32>
    %333 = tpu.matmul %330, %331, %cst_138 {dimension_numbers = #tpu.dot_dimension_numbers<[1], [1], [0], [0], [0, 0, 1, 0], [], []>} : vector<24x32xbf16>, vector<24x32xbf16>, vector<24x24xf32> -> vector<24x24xf32>
    "tpu.trace_stop"() : () -> ()
    %cst_139 = arith.constant dense<0xFF800000> : vector<24xf32>
    %334 = vector.multi_reduction <maximumf>, %333, %cst_139 [1] : vector<24x24xf32> to vector<24xf32>
    %335 = vector.shape_cast %334 : vector<24xf32> to vector<24x1xf32>
    %336 = vector.broadcast %335 : vector<24x1xf32> to vector<24x24xf32>
    %337 = arith.subf %333, %336 : vector<24x24xf32>
    %338 = math.exp %337 : vector<24x24xf32>
    %cst_140 = arith.constant dense<0.000000e+00> : vector<24xf32>
    %339 = vector.multi_reduction <add>, %338, %cst_140 [1] : vector<24x24xf32> to vector<24xf32>
    %340 = vector.shape_cast %339 : vector<24xf32> to vector<24x1xf32>
    %341 = tpu.reciprocal %340 {approx = true} : vector<24x1xf32> -> vector<24x1xf32>
    %342 = vector.broadcast %341 : vector<24x1xf32> to vector<24x24xf32>
    %343 = arith.mulf %338, %342 : vector<24x24xf32>
    %344 = arith.truncf %343 : vector<24x24xf32> to vector<24x24xbf16>
    %cst_141 = arith.constant dense<0.000000e+00> : vector<24x32xf32>
    %345 = tpu.matmul %344, %332, %cst_141 {dimension_numbers = #tpu.dot_dimension_numbers<[1], [0], [0], [1], [0, 0, 1, 1], [], []>} : vector<24x24xbf16>, vector<24x32xbf16>, vector<24x32xf32> -> vector<24x32xf32>
    %346 = vector.extract_strided_slice %260 {offsets = [24, 32], sizes = [24, 32], strides = [1, 1]} : vector<48x128xbf16> to vector<24x32xbf16>
    %347 = vector.extract_strided_slice %262 {offsets = [24, 32], sizes = [24, 32], strides = [1, 1]} : vector<48x128xbf16> to vector<24x32xbf16>
    %348 = vector.extract_strided_slice %264 {offsets = [24, 32], sizes = [24, 32], strides = [1, 1]} : vector<48x128xbf16> to vector<24x32xbf16>
    "tpu.trace_start"() <{level = 10 : i32, message = "qd,kd->qk"}> : () -> ()
    %cst_142 = arith.constant dense<0.000000e+00> : vector<24x24xf32>
    %349 = tpu.matmul %346, %347, %cst_142 {dimension_numbers = #tpu.dot_dimension_numbers<[1], [1], [0], [0], [0, 0, 1, 0], [], []>} : vector<24x32xbf16>, vector<24x32xbf16>, vector<24x24xf32> -> vector<24x24xf32>
    "tpu.trace_stop"() : () -> ()
    %cst_143 = arith.constant dense<0xFF800000> : vector<24xf32>
    %350 = vector.multi_reduction <maximumf>, %349, %cst_143 [1] : vector<24x24xf32> to vector<24xf32>
    %351 = vector.shape_cast %350 : vector<24xf32> to vector<24x1xf32>
    %352 = vector.broadcast %351 : vector<24x1xf32> to vector<24x24xf32>
    %353 = arith.subf %349, %352 : vector<24x24xf32>
    %354 = math.exp %353 : vector<24x24xf32>
    %cst_144 = arith.constant dense<0.000000e+00> : vector<24xf32>
    %355 = vector.multi_reduction <add>, %354, %cst_144 [1] : vector<24x24xf32> to vector<24xf32>
    %356 = vector.shape_cast %355 : vector<24xf32> to vector<24x1xf32>
    %357 = tpu.reciprocal %356 {approx = true} : vector<24x1xf32> -> vector<24x1xf32>
    %358 = vector.broadcast %357 : vector<24x1xf32> to vector<24x24xf32>
    %359 = arith.mulf %354, %358 : vector<24x24xf32>
    %360 = arith.truncf %359 : vector<24x24xf32> to vector<24x24xbf16>
    %cst_145 = arith.constant dense<0.000000e+00> : vector<24x32xf32>
    %361 = tpu.matmul %360, %348, %cst_145 {dimension_numbers = #tpu.dot_dimension_numbers<[1], [0], [0], [1], [0, 0, 1, 1], [], []>} : vector<24x24xbf16>, vector<24x32xbf16>, vector<24x32xf32> -> vector<24x32xf32>
    %362 = vector.extract_strided_slice %260 {offsets = [24, 64], sizes = [24, 32], strides = [1, 1]} : vector<48x128xbf16> to vector<24x32xbf16>
    %363 = vector.extract_strided_slice %262 {offsets = [24, 64], sizes = [24, 32], strides = [1, 1]} : vector<48x128xbf16> to vector<24x32xbf16>
    %364 = vector.extract_strided_slice %264 {offsets = [24, 64], sizes = [24, 32], strides = [1, 1]} : vector<48x128xbf16> to vector<24x32xbf16>
    "tpu.trace_start"() <{level = 10 : i32, message = "qd,kd->qk"}> : () -> ()
    %cst_146 = arith.constant dense<0.000000e+00> : vector<24x24xf32>
    %365 = tpu.matmul %362, %363, %cst_146 {dimension_numbers = #tpu.dot_dimension_numbers<[1], [1], [0], [0], [0, 0, 1, 0], [], []>} : vector<24x32xbf16>, vector<24x32xbf16>, vector<24x24xf32> -> vector<24x24xf32>
    "tpu.trace_stop"() : () -> ()
    %cst_147 = arith.constant dense<0xFF800000> : vector<24xf32>
    %366 = vector.multi_reduction <maximumf>, %365, %cst_147 [1] : vector<24x24xf32> to vector<24xf32>
    %367 = vector.shape_cast %366 : vector<24xf32> to vector<24x1xf32>
    %368 = vector.broadcast %367 : vector<24x1xf32> to vector<24x24xf32>
    %369 = arith.subf %365, %368 : vector<24x24xf32>
    %370 = math.exp %369 : vector<24x24xf32>
    %cst_148 = arith.constant dense<0.000000e+00> : vector<24xf32>
    %371 = vector.multi_reduction <add>, %370, %cst_148 [1] : vector<24x24xf32> to vector<24xf32>
    %372 = vector.shape_cast %371 : vector<24xf32> to vector<24x1xf32>
    %373 = tpu.reciprocal %372 {approx = true} : vector<24x1xf32> -> vector<24x1xf32>
    %374 = vector.broadcast %373 : vector<24x1xf32> to vector<24x24xf32>
    %375 = arith.mulf %370, %374 : vector<24x24xf32>
    %376 = arith.truncf %375 : vector<24x24xf32> to vector<24x24xbf16>
    %cst_149 = arith.constant dense<0.000000e+00> : vector<24x32xf32>
    %377 = tpu.matmul %376, %364, %cst_149 {dimension_numbers = #tpu.dot_dimension_numbers<[1], [0], [0], [1], [0, 0, 1, 1], [], []>} : vector<24x24xbf16>, vector<24x32xbf16>, vector<24x32xf32> -> vector<24x32xf32>
    %378 = vector.extract_strided_slice %260 {offsets = [24, 96], sizes = [24, 32], strides = [1, 1]} : vector<48x128xbf16> to vector<24x32xbf16>
    %379 = vector.extract_strided_slice %262 {offsets = [24, 96], sizes = [24, 32], strides = [1, 1]} : vector<48x128xbf16> to vector<24x32xbf16>
    %380 = vector.extract_strided_slice %264 {offsets = [24, 96], sizes = [24, 32], strides = [1, 1]} : vector<48x128xbf16> to vector<24x32xbf16>
    "tpu.trace_start"() <{level = 10 : i32, message = "qd,kd->qk"}> : () -> ()
    %cst_150 = arith.constant dense<0.000000e+00> : vector<24x24xf32>
    %381 = tpu.matmul %378, %379, %cst_150 {dimension_numbers = #tpu.dot_dimension_numbers<[1], [1], [0], [0], [0, 0, 1, 0], [], []>} : vector<24x32xbf16>, vector<24x32xbf16>, vector<24x24xf32> -> vector<24x24xf32>
    "tpu.trace_stop"() : () -> ()
    %cst_151 = arith.constant dense<0xFF800000> : vector<24xf32>
    %382 = vector.multi_reduction <maximumf>, %381, %cst_151 [1] : vector<24x24xf32> to vector<24xf32>
    %383 = vector.shape_cast %382 : vector<24xf32> to vector<24x1xf32>
    %384 = vector.broadcast %383 : vector<24x1xf32> to vector<24x24xf32>
    %385 = arith.subf %381, %384 : vector<24x24xf32>
    %386 = math.exp %385 : vector<24x24xf32>
    %cst_152 = arith.constant dense<0.000000e+00> : vector<24xf32>
    %387 = vector.multi_reduction <add>, %386, %cst_152 [1] : vector<24x24xf32> to vector<24xf32>
    %388 = vector.shape_cast %387 : vector<24xf32> to vector<24x1xf32>
    %389 = tpu.reciprocal %388 {approx = true} : vector<24x1xf32> -> vector<24x1xf32>
    %390 = vector.broadcast %389 : vector<24x1xf32> to vector<24x24xf32>
    %391 = arith.mulf %386, %390 : vector<24x24xf32>
    %392 = arith.truncf %391 : vector<24x24xf32> to vector<24x24xbf16>
    %cst_153 = arith.constant dense<0.000000e+00> : vector<24x32xf32>
    %393 = tpu.matmul %392, %380, %cst_153 {dimension_numbers = #tpu.dot_dimension_numbers<[1], [0], [0], [1], [0, 0, 1, 1], [], []>} : vector<24x24xbf16>, vector<24x32xbf16>, vector<24x32xf32> -> vector<24x32xf32>
    %394 = tpu.concatenate %345, %361, %377, %393 in 1 : vector<24x32xf32>, vector<24x32xf32>, vector<24x32xf32>, vector<24x32xf32> -> vector<24x128xf32>
    %395 = tpu.concatenate %329, %394 in 0 : vector<24x128xf32>, vector<24x128xf32> -> vector<48x128xf32>
    %396 = arith.truncf %395 : vector<48x128xf32> to vector<48x128xbf16>
    %cst_154 = arith.constant dense<0.000000e+00> : vector<48x128xf32>
    %397 = tpu.matmul %396, %236, %cst_154 {dimension_numbers = #tpu.dot_dimension_numbers<[1], [0], [0], [1], [0, 0, 1, 1], [], []>} : vector<48x128xbf16>, vector<128x128xbf16>, vector<48x128xf32> -> vector<48x128xf32>
    %398 = vector.broadcast %238 : vector<1x128xf32> to vector<48x128xf32>
    %399 = arith.addf %397, %398 : vector<48x128xf32>
    %400 = arith.addf %230, %399 : vector<48x128xf32>
    %cst_155 = arith.constant dense<0.000000e+00> : vector<48xf32>
    %401 = vector.multi_reduction <add>, %400, %cst_155 [1] : vector<48x128xf32> to vector<48xf32>
    %402 = vector.shape_cast %401 : vector<48xf32> to vector<48x1xf32>
    %cst_156 = arith.constant 1.280000e+02 : f32
    %403 = vector.broadcast %cst_156 : f32 to vector<48x1xf32>
    %404 = arith.divf %402, %403 : vector<48x1xf32>
    %405 = vector.broadcast %404 : vector<48x1xf32> to vector<48x128xf32>
    %406 = arith.subf %400, %405 : vector<48x128xf32>
    %407 = arith.mulf %406, %406 : vector<48x128xf32>
    %cst_157 = arith.constant dense<0.000000e+00> : vector<48xf32>
    %408 = vector.multi_reduction <add>, %407, %cst_157 [1] : vector<48x128xf32> to vector<48xf32>
    %409 = vector.shape_cast %408 : vector<48xf32> to vector<48x1xf32>
    %cst_158 = arith.constant 1.280000e+02 : f32
    %410 = vector.broadcast %cst_158 : f32 to vector<48x1xf32>
    %411 = arith.divf %409, %410 : vector<48x1xf32>
    %412 = vector.broadcast %404 : vector<48x1xf32> to vector<48x128xf32>
    %413 = arith.subf %400, %412 : vector<48x128xf32>
    %cst_159 = arith.constant 9.99999974E-6 : f32
    %414 = vector.broadcast %cst_159 : f32 to vector<48x1xf32>
    %415 = arith.addf %411, %414 : vector<48x1xf32>
    %416 = math.rsqrt %415 : vector<48x1xf32>
    %417 = vector.broadcast %416 : vector<48x1xf32> to vector<48x128xf32>
    %418 = arith.mulf %413, %417 : vector<48x128xf32>
    %419 = vector.broadcast %240 : vector<1x128xf32> to vector<48x128xf32>
    %420 = arith.mulf %418, %419 : vector<48x128xf32>
    %421 = vector.broadcast %242 : vector<1x128xf32> to vector<48x128xf32>
    %422 = arith.addf %420, %421 : vector<48x128xf32>
    %423 = arith.truncf %422 : vector<48x128xf32> to vector<48x128xbf16>
    %cst_160 = arith.constant dense<0.000000e+00> : vector<48x256xf32>
    %424 = tpu.matmul %423, %244, %cst_160 {dimension_numbers = #tpu.dot_dimension_numbers<[1], [0], [0], [1], [0, 0, 1, 1], [], []>} : vector<48x128xbf16>, vector<128x256xbf16>, vector<48x256xf32> -> vector<48x256xf32>
    %425 = vector.broadcast %246 : vector<1x256xf32> to vector<48x256xf32>
    %426 = arith.addf %424, %425 : vector<48x256xf32>
    %cst_161 = arith.constant 0.000000e+00 : f32
    %427 = vector.broadcast %cst_161 : f32 to vector<48x256xf32>
    %428 = arith.maximumf %426, %427 : vector<48x256xf32>
    %429 = arith.truncf %428 : vector<48x256xf32> to vector<48x256xbf16>
    %cst_162 = arith.constant dense<0.000000e+00> : vector<48x128xf32>
    %430 = tpu.matmul %429, %248, %cst_162 {dimension_numbers = #tpu.dot_dimension_numbers<[1], [0], [0], [1], [0, 0, 1, 1], [], []>} : vector<48x256xbf16>, vector<256x128xbf16>, vector<48x128xf32> -> vector<48x128xf32>
    %431 = vector.broadcast %250 : vector<1x128xf32> to vector<48x128xf32>
    %432 = arith.addf %430, %431 : vector<48x128xf32>
    %433 = arith.addf %422, %432 : vector<48x128xf32>
    %cst_163 = arith.constant dense<0.000000e+00> : vector<48xf32>
    %434 = vector.multi_reduction <add>, %433, %cst_163 [1] : vector<48x128xf32> to vector<48xf32>
    %435 = vector.shape_cast %434 : vector<48xf32> to vector<48x1xf32>
    %cst_164 = arith.constant 1.280000e+02 : f32
    %436 = vector.broadcast %cst_164 : f32 to vector<48x1xf32>
    %437 = arith.divf %435, %436 : vector<48x1xf32>
    %438 = vector.broadcast %437 : vector<48x1xf32> to vector<48x128xf32>
    %439 = arith.subf %433, %438 : vector<48x128xf32>
    %440 = arith.mulf %439, %439 : vector<48x128xf32>
    %cst_165 = arith.constant dense<0.000000e+00> : vector<48xf32>
    %441 = vector.multi_reduction <add>, %440, %cst_165 [1] : vector<48x128xf32> to vector<48xf32>
    %442 = vector.shape_cast %441 : vector<48xf32> to vector<48x1xf32>
    %cst_166 = arith.constant 1.280000e+02 : f32
    %443 = vector.broadcast %cst_166 : f32 to vector<48x1xf32>
    %444 = arith.divf %442, %443 : vector<48x1xf32>
    %445 = vector.broadcast %437 : vector<48x1xf32> to vector<48x128xf32>
    %446 = arith.subf %433, %445 : vector<48x128xf32>
    %cst_167 = arith.constant 9.99999974E-6 : f32
    %447 = vector.broadcast %cst_167 : f32 to vector<48x1xf32>
    %448 = arith.addf %444, %447 : vector<48x1xf32>
    %449 = math.rsqrt %448 : vector<48x1xf32>
    %450 = vector.broadcast %449 : vector<48x1xf32> to vector<48x128xf32>
    %451 = arith.mulf %446, %450 : vector<48x128xf32>
    %452 = vector.broadcast %252 : vector<1x128xf32> to vector<48x128xf32>
    %453 = arith.mulf %451, %452 : vector<48x128xf32>
    %454 = vector.broadcast %254 : vector<1x128xf32> to vector<48x128xf32>
    %455 = arith.addf %453, %454 : vector<48x128xf32>
    %456 = vector.shape_cast %455 : vector<48x128xf32> to vector<2x24x128xf32>
    %c0_168 = arith.constant 0 : index
    %c0_169 = arith.constant 0 : index
    %c0_170 = arith.constant 0 : index
    %457 = vector.load %arg15[%c0_168, %c0_169, %c0_170] : memref<2x24x128xf32, #tpu.memory_space<vmem>>, vector<2x24x128xf32>
    tpu.vector_store %arg15[%c0_168, %c0_169, %c0_170], %456 {strides = array<i32>} : memref<2x24x128xf32, #tpu.memory_space<vmem>>, vector<2x24x128xf32>,
    return
  }
  func.func @transform_0(%arg0: i32) -> (i32, i32, i32) {
    %c0_i32 = arith.constant 0 : i32
    %c0_i32_0 = arith.constant 0 : i32
    %c0_i32_1 = arith.constant 0 : i32
    return %arg0, %c0_i32, %c0_i32_0 : i32, i32, i32
  }
  func.func @transform_1(%arg0: i32) -> (i32, i32) {
    %c0_i32 = arith.constant 0 : i32
    %c0_i32_0 = arith.constant 0 : i32
    %c0_i32_1 = arith.constant 0 : i32
    return %c0_i32, %c0_i32_0 : i32, i32
  }
  func.func @transform_2(%arg0: i32) -> (i32, i32, i32) {
    %c0_i32 = arith.constant 0 : i32
    %c0_i32_0 = arith.constant 0 : i32
    %c0_i32_1 = arith.constant 0 : i32
    %c0_i32_2 = arith.constant 0 : i32
    return %c0_i32, %c0_i32_0, %c0_i32_1 : i32, i32, i32
  }
  func.func @transform_3(%arg0: i32) -> (i32, i32, i32) {
    %c0_i32 = arith.constant 0 : i32
    %c0_i32_0 = arith.constant 0 : i32
    %c0_i32_1 = arith.constant 0 : i32
    %c0_i32_2 = arith.constant 0 : i32
    return %c0_i32, %c0_i32_0, %c0_i32_1 : i32, i32, i32
  }
  func.func @transform_4(%arg0: i32) -> (i32, i32, i32) {
    %c0_i32 = arith.constant 0 : i32
    %c0_i32_0 = arith.constant 0 : i32
    %c0_i32_1 = arith.constant 0 : i32
    %c0_i32_2 = arith.constant 0 : i32
    return %c0_i32, %c0_i32_0, %c0_i32_1 : i32, i32, i32
  }
  func.func @transform_5(%arg0: i32) -> (i32, i32, i32) {
    %c0_i32 = arith.constant 0 : i32
    %c0_i32_0 = arith.constant 0 : i32
    %c0_i32_1 = arith.constant 0 : i32
    %c0_i32_2 = arith.constant 0 : i32
    return %c0_i32, %c0_i32_0, %c0_i32_1 : i32, i32, i32
  }
  func.func @transform_6(%arg0: i32) -> (i32, i32, i32) {
    %c0_i32 = arith.constant 0 : i32
    %c0_i32_0 = arith.constant 0 : i32
    %c0_i32_1 = arith.constant 0 : i32
    %c0_i32_2 = arith.constant 0 : i32
    return %c0_i32, %c0_i32_0, %c0_i32_1 : i32, i32, i32
  }
  func.func @transform_7(%arg0: i32) -> (i32, i32, i32) {
    %c0_i32 = arith.constant 0 : i32
    %c0_i32_0 = arith.constant 0 : i32
    %c0_i32_1 = arith.constant 0 : i32
    %c0_i32_2 = arith.constant 0 : i32
    return %c0_i32, %c0_i32_0, %c0_i32_1 : i32, i32, i32
  }
  func.func @transform_8(%arg0: i32) -> (i32, i32, i32) {
    %c0_i32 = arith.constant 0 : i32
    %c0_i32_0 = arith.constant 0 : i32
    %c0_i32_1 = arith.constant 0 : i32
    %c0_i32_2 = arith.constant 0 : i32
    return %c0_i32, %c0_i32_0, %c0_i32_1 : i32, i32, i32
  }
  func.func @transform_9(%arg0: i32) -> (i32, i32, i32) {
    %c0_i32 = arith.constant 0 : i32
    %c0_i32_0 = arith.constant 0 : i32
    %c0_i32_1 = arith.constant 0 : i32
    %c0_i32_2 = arith.constant 0 : i32
    return %c0_i32, %c0_i32_0, %c0_i32_1 : i32, i32, i32
  }
  func.func @transform_10(%arg0: i32) -> (i32, i32, i32) {
    %c0_i32 = arith.constant 0 : i32
    %c0_i32_0 = arith.constant 0 : i32
    %c0_i32_1 = arith.constant 0 : i32
    %c0_i32_2 = arith.constant 0 : i32
    return %c0_i32, %c0_i32_0, %c0_i32_1 : i32, i32, i32
  }
  func.func @transform_11(%arg0: i32) -> (i32, i32, i32) {
    %c0_i32 = arith.constant 0 : i32
    %c0_i32_0 = arith.constant 0 : i32
    %c0_i32_1 = arith.constant 0 : i32
    %c0_i32_2 = arith.constant 0 : i32
    return %c0_i32, %c0_i32_0, %c0_i32_1 : i32, i32, i32
  }
  func.func @transform_12(%arg0: i32) -> (i32, i32, i32) {
    %c0_i32 = arith.constant 0 : i32
    %c0_i32_0 = arith.constant 0 : i32
    %c0_i32_1 = arith.constant 0 : i32
    %c0_i32_2 = arith.constant 0 : i32
    return %c0_i32, %c0_i32_0, %c0_i32_1 : i32, i32, i32
  }
  func.func @transform_13(%arg0: i32) -> (i32, i32, i32) {
    %c0_i32 = arith.constant 0 : i32
    %c0_i32_0 = arith.constant 0 : i32
    %c0_i32_1 = arith.constant 0 : i32
    %c0_i32_2 = arith.constant 0 : i32
    return %c0_i32, %c0_i32_0, %c0_i32_1 : i32, i32, i32
  }
  func.func @transform_14(%arg0: i32) -> (i32, i32, i32) {
    %c0_i32 = arith.constant 0 : i32
    %c0_i32_0 = arith.constant 0 : i32
    %c0_i32_1 = arith.constant 0 : i32
    return %arg0, %c0_i32, %c0_i32_0 : i32, i32, i32
  }
}

</mosaic_0001>

<bundles_post_ra>
// kernel: forward.1
= control target key start
LH: loop header
LB: loop body
LE: loop exit
PB: predicated region body
PF: predicated region fallthrough
CT: control target
= control target key end

     0   :  { %19 = vsyncpa [#allocation3], 0  ;;  %s8324_s0 = inlined_call_operand.vmem [shape: f32[2,24,128], index: 0, kind: input, shape index: {}]   ;;  %s8325_s1 = inlined_call_operand.vmem [shape: f32[24,128], index: 1, kind: input, shape index: {}]   ;;  %s8326_s2 = inlined_call_operand.hbm [shape: bf16[2,128,384], index: 2, kind: input, shape index: {}]   ;;  %s8327_s3 = inlined_call_operand.hbm [shape: f32[2,1,384], index: 3, kind: input, shape index: {}]   ;;  %s8328_s4 = inlined_call_operand.hbm [shape: bf16[2,128,128], index: 4, kind: input, shape index: {}]   ;;  %s8329_s5 = inlined_call_operand.hbm [shape: f32[2,1,128], index: 5, kind: input, shape index: {}]   ;;  %s8330_s6 = inlined_call_operand.hbm [shape: f32[2,1,128], index: 6, kind: input, shape index: {}]   ;;  %s8331_s7 = inlined_call_operand.hbm [shape: f32[2,1,128], index: 7, kind: input, shape index: {}]   ;;  %s8332_s8 = inlined_call_operand.vmem [shape: bf16[2,128,256], index: 8, kind: input, shape index: {}]   ;;  %s8333_s9 = inlined_call_operand.hbm [shape: f32[2,1,256], index: 9, kind: input, shape index: {}]   ;;  %s8334_s10 = inlined_call_operand.hbm [shape: bf16[2,256,128], index: 10, kind: input, shape index: {}]   ;;  %s8335_s11 = inlined_call_operand.hbm [shape: f32[2,1,128], index: 11, kind: input, shape index: {}]   ;;  %s8336_s12 = inlined_call_operand.hbm [shape: f32[2,1,128], index: 12, kind: input, shape index: {}]   ;;  %s8337_s13 = inlined_call_operand.hbm [shape: f32[2,1,128], index: 13, kind: input, shape index: {}]   ;;  %s8338_s14 = inlined_call_operand.hbm [shape: f32[2,24,128], index: 14, kind: output, shape index: {}]  }
   0x1   :  { %20 = vsyncpa [#allocation6], 0 }
   0x2   :  { %21 = vsyncpa [#allocation9], 0 }
   0x3   :  { %22 = vsyncpa [#allocation12], 0 }
   0x4   :  { %23 = vsyncpa [#allocation15], 0 }
   0x5   :  { %24 = vsyncpa [#allocation18], 0 }
   0x6   :  { %25 = vsyncpa [#allocation4], 0  ;;  %s6778_s29 = smov [#allocation5]   ;;  %s6500_s17 = scalar_lea.hbm %s8327_s3, 96 }
   0x7   :  { %s47_s30 = sshll.u32 %s6778_s29, 4  ;;  %p6501_p0 = scmp.ne.s32.totalorder %s8327_s3, %s6500_s17  ;;  %s48_s30 = int_to_ptr.vmem [resolvable:$true] %s47_s30 }
   0x8   :  { %p6504_p1 = scmp.lt.u32.totalorder %s6500_s17, %s8327_s3 }
   0xa   :  { %p6506_p2 = pnand %p6504_p1, %p6501_p0 }
   0xc   :  { %6509 = shalt.err (!%p6506_p2)
}
   0xd   :  { %s6510_s22 = scalar_lea.vmem %s48_s30, 96  ;;  %p6515_p4 = scmp.lt.s32.totalorder %s48_s30, %s48_s30 }
   0xe   :  { %p6511_p3 = scmp.ne.s32.totalorder %s48_s30, %s6510_s22  ;;  %p6516_p5 = scmp.lt.s32.totalorder %s6510_s22, %s6510_s22 }
  0x10   :  { %p6517_p6 = por %p6516_p5, %p6515_p4 }
  0x12   :  { %p6518_p7 = pnand %p6517_p6, %p6511_p3 }
  0x14   :  { %6521 = shalt.err (!%p6518_p7)
}
  0x15   :  { %s6779_s23 = smov 48   ;;  %s6780_s24 = smov 3  }
  0x16   :  { %53 = dma.hbm_to_vmem [thread:$0]  %s8327_s3, 96, %s48_s30, [#allocation6], %s6779_s23, %s6779_s23, %s6780_s24  }
  0x17   :  { %s6781_s27 = smov [#allocation8]   ;;  %s6522_s16 = scalar_lea.hbm %s8329_s5, 32 }
  0x18   :  { %s71_s28 = sshll.u32 %s6781_s27, 4  ;;  %p6523_p8 = scmp.ne.s32.totalorder %s8329_s5, %s6522_s16  ;;  %s72_s28 = int_to_ptr.vmem [resolvable:$true] %s71_s28 }
  0x19   :  { %p6526_p9 = scmp.lt.u32.totalorder %s6522_s16, %s8329_s5 }
  0x1b   :  { %p6528_p10 = pnand %p6526_p9, %p6523_p8 }
  0x1d   :  { %6531 = shalt.err (!%p6528_p10)
}
  0x1e   :  { %s6532_s21 = scalar_lea.vmem %s72_s28, 32  ;;  %p6537_p12 = scmp.lt.s32.totalorder %s72_s28, %s72_s28 }
  0x1f   :  { %p6533_p11 = scmp.ne.s32.totalorder %s72_s28, %s6532_s21  ;;  %p6538_p13 = scmp.lt.s32.totalorder %s6532_s21, %s6532_s21 }
  0x21   :  { %p6539_p0 = por %p6538_p13, %p6537_p12 }
  0x23   :  { %p6540_p1 = pnand %p6539_p0, %p6533_p11 }
  0x25   :  { %6543 = shalt.err (!%p6540_p1)
}
  0x26   :  { %s6782_s3 = smov 16   ;;  %s6783_s30 = smov 1  }
  0x27   :  { %77 = dma.hbm_to_vmem [thread:$0]  %s8329_s5, 32, %s72_s28, [#allocation9], %s6782_s3, %s6782_s3, %s6783_s30  }
  0x28   :  { %s6784_s24 = smov [#allocation11]   ;;  %s6544_s29 = scalar_lea.hbm %s8331_s7, 32 }
  0x29   :  { %s95_s25 = sshll.u32 %s6784_s24, 4  ;;  %p6545_p2 = scmp.ne.s32.totalorder %s8331_s7, %s6544_s29  ;;  %s96_s25 = int_to_ptr.vmem [resolvable:$true] %s95_s25 }
  0x2a   :  { %p6548_p3 = scmp.lt.u32.totalorder %s6544_s29, %s8331_s7 }
  0x2c   :  { %p6550_p4 = pnand %p6548_p3, %p6545_p2 }
  0x2e   :  { %6553 = shalt.err (!%p6550_p4)
}
  0x2f   :  { %s6554_s19 = scalar_lea.vmem %s96_s25, 32  ;;  %p6559_p6 = scmp.lt.s32.totalorder %s96_s25, %s96_s25 }
  0x30   :  { %p6555_p5 = scmp.ne.s32.totalorder %s96_s25, %s6554_s19  ;;  %p6560_p7 = scmp.lt.s32.totalorder %s6554_s19, %s6554_s19 }
  0x32   :  { %p6561_p8 = por %p6560_p7, %p6559_p6 }
  0x34   :  { %p6562_p9 = pnand %p6561_p8, %p6555_p5 }
  0x36   :  { %6565 = shalt.err (!%p6562_p9)
}
  0x37   :  { %101 = dma.hbm_to_vmem [thread:$0]  %s8331_s7, 32, %s96_s25, [#allocation12], %s6782_s3, %s6782_s3, %s6783_s30  }
  0x38   :  { %s6785_s20 = smov [#allocation14]   ;;  %s6786_s22 = smov [#allocation17]  }
  0x39   :  { %s121_s21 = sshll.u32 %s6785_s20, 4  ;;  %s145_s23 = sshll.u32 %s6786_s22, 4  ;;  %s122_s21 = int_to_ptr.vmem [resolvable:$true] %s121_s21  ;;  %s146_s23 = int_to_ptr.vmem [resolvable:$true] %s145_s23 }
  0x3a   :  { %s6566_s27 = scalar_lea.hbm %s8334_s10, 4096 }
  0x3b   :  { %p6567_p10 = scmp.ne.s32.totalorder %s8334_s10, %s6566_s27  ;;  %p6570_p11 = scmp.lt.u32.totalorder %s6566_s27, %s8334_s10 }
  0x3d   :  { %p6572_p12 = pnand %p6570_p11, %p6567_p10 }
  0x3f   :  { %6575 = shalt.err (!%p6572_p12)
}
  0x40   :  { %s6576_s7 = scalar_lea.vmem %s122_s21, 4096  ;;  %p6581_p0 = scmp.lt.s32.totalorder %s122_s21, %s122_s21 }
  0x41   :  { %p6577_p13 = scmp.ne.s32.totalorder %s122_s21, %s6576_s7  ;;  %p6582_p1 = scmp.lt.s32.totalorder %s6576_s7, %s6576_s7 }
  0x43   :  { %p6583_p2 = por %p6582_p1, %p6581_p0 }
  0x45   :  { %p6584_p3 = pnand %p6583_p2, %p6577_p13 }
  0x47   :  { %6587 = shalt.err (!%p6584_p3)
}
  0x48   :  { %s6787_s25 = smov 64   ;;  %s6788_s18 = smov 4  }
  0x49   :  { %127 = dma.hbm_to_vmem [thread:$0]  %s8334_s10, 4096, %s122_s21, [#allocation15], %s6787_s25, %s6787_s25, %s6788_s18  }
  0x4a   :  { %s6588_s22 = scalar_lea.hbm %s8336_s12, 32 }
  0x4b   :  { %p6589_p4 = scmp.ne.s32.totalorder %s8336_s12, %s6588_s22  ;;  %p6592_p5 = scmp.lt.u32.totalorder %s6588_s22, %s8336_s12 }
  0x4d   :  { %p6594_p6 = pnand %p6592_p5, %p6589_p4 }
  0x4f   :  { %6597 = shalt.err (!%p6594_p6)
}
  0x50   :  { %s6598_s15 = scalar_lea.vmem %s146_s23, 32  ;;  %p6603_p8 = scmp.lt.s32.totalorder %s146_s23, %s146_s23 }
  0x51   :  { %p6599_p7 = scmp.ne.s32.totalorder %s146_s23, %s6598_s15  ;;  %p6604_p9 = scmp.lt.s32.totalorder %s6598_s15, %s6598_s15 }
  0x53   :  { %p6605_p10 = por %p6604_p9, %p6603_p8 }
  0x55   :  { %p6606_p11 = pnand %p6605_p10, %p6599_p7 }
  0x57   :  { %6609 = shalt.err (!%p6606_p11)
}
  0x58   :  { %151 = dma.hbm_to_vmem [thread:$0]  %s8336_s12, 32, %s146_s23, [#allocation18], %s6782_s3, %s6782_s3, %s6783_s30  }
  0x59   :  { %s6789_s16 = smov [#allocation2]   ;;  %s6610_s5 = scalar_lea.hbm %s8326_s2, 6144 }
  0x5a   :  { %s35_s17 = sshll.u32 %s6789_s16, 4  ;;  %p6611_p12 = scmp.ne.s32.totalorder %s8326_s2, %s6610_s5  ;;  %s36_s17 = int_to_ptr.vmem [resolvable:$true] %s35_s17 }
  0x5b   :  { %p6614_p13 = scmp.lt.u32.totalorder %s6610_s5, %s8326_s2 }
  0x5d   :  { %p6616_p0 = pnand %p6614_p13, %p6611_p12 }
  0x5f   :  { %6619 = shalt.err (!%p6616_p0)
}
  0x60   :  { %s6620_s26 = scalar_lea.vmem %s36_s17, 6144  ;;  %p6625_p2 = scmp.lt.s32.totalorder %s36_s17, %s36_s17 }
  0x61   :  { %p6621_p1 = scmp.ne.s32.totalorder %s36_s17, %s6620_s26  ;;  %p6626_p3 = scmp.lt.s32.totalorder %s6620_s26, %s6620_s26 }
  0x63   :  { %p6627_p4 = por %p6626_p3, %p6625_p2 }
  0x65   :  { %p6628_p5 = pnand %p6627_p4, %p6621_p1 }
  0x67   :  { %6631 = shalt.err (!%p6628_p5)
}
  0x68   :  { %s6790_s12 = smov 192   ;;  %s6791_s23 = smov 12  }
  0x69   :  { %41 = dma.hbm_to_vmem [thread:$0]  %s8326_s2, 6144, %s36_s17, [#allocation3], %s6790_s12, %s6790_s12, %s6791_s23  }
  0x6a   :  { %s6792_s15 = smov [#allocation7]   ;;  %s6793_s21 = smov [#allocation10]  }
  0x6b   :  { %s59_s10 = sshll.u32 %s6792_s15, 4  ;;  %s83_s16 = sshll.u32 %s6793_s21, 4  ;;  %s60_s10 = int_to_ptr.vmem [resolvable:$true] %s59_s10  ;;  %s6965_s16 = int_to_ptr.vmem [resolvable:$true] %s83_s16 }
  0x6c   :  { %s6632_s5 = scalar_lea.hbm %s8328_s4, 2048 }
  0x6d   :  { %p6633_p6 = scmp.ne.s32.totalorder %s8328_s4, %s6632_s5  ;;  %p6636_p7 = scmp.lt.u32.totalorder %s6632_s5, %s8328_s4 }
  0x6f   :  { %p6638_p8 = pnand %p6636_p7, %p6633_p6 }
  0x71   :  { %6641 = shalt.err (!%p6638_p8)
}
  0x72   :  { %s6642_s2 = scalar_lea.vmem %s60_s10, 2048  ;;  %p6647_p10 = scmp.lt.s32.totalorder %s60_s10, %s60_s10 }
  0x73   :  { %p6643_p9 = scmp.ne.s32.totalorder %s60_s10, %s6642_s2  ;;  %p6648_p11 = scmp.lt.s32.totalorder %s6642_s2, %s6642_s2 }
  0x75   :  { %p6649_p12 = por %p6648_p11, %p6647_p10 }
  0x77   :  { %p6650_p13 = pnand %p6649_p12, %p6643_p9 }
  0x79   :  { %6653 = shalt.err (!%p6650_p13)
}
  0x7a   :  { %65 = dma.hbm_to_vmem [thread:$0]  %s8328_s4, 2048, %s60_s10, [#allocation6], %s6787_s25, %s6787_s25, %s6788_s18  }
  0x7b   :  { %s6654_s27 = scalar_lea.hbm %s8330_s6, 32 }
  0x7c   :  { %p6655_p0 = scmp.ne.s32.totalorder %s8330_s6, %s6654_s27  ;;  %p6658_p1 = scmp.lt.u32.totalorder %s6654_s27, %s8330_s6 }
  0x7e   :  { %p6660_p2 = pnand %p6658_p1, %p6655_p0 }
  0x80   :  { %6663 = shalt.err (!%p6660_p2)
}
  0x81   :  { %s6664_s19 = scalar_lea.vmem %s6965_s16, 32  ;;  %p6669_p4 = scmp.lt.s32.totalorder %s6965_s16, %s6965_s16 }
  0x82   :  { %p6665_p3 = scmp.ne.s32.totalorder %s6965_s16, %s6664_s19  ;;  %p6670_p5 = scmp.lt.s32.totalorder %s6664_s19, %s6664_s19 }
  0x84   :  { %p6671_p6 = por %p6670_p5, %p6669_p4 }
  0x86   :  { %p6672_p7 = pnand %p6671_p6, %p6665_p3 }
  0x88   :  { %6675 = shalt.err (!%p6672_p7)
}
  0x89   :  { %89 = dma.hbm_to_vmem [thread:$0]  %s8330_s6, 32, %s6965_s16, [#allocation9], %s6782_s3, %s6782_s3, %s6783_s30  }
  0x8a   :  { %s6794_s10 = smov [#allocation13]   ;;  %s6676_s22 = scalar_lea.hbm %s8333_s9, 64 }
  0x8b   :  { %s109_s5 = sshll.u32 %s6794_s10, 4  ;;  %p6677_p8 = scmp.ne.s32.totalorder %s8333_s9, %s6676_s22  ;;  %s110_s5 = int_to_ptr.vmem [resolvable:$true] %s109_s5 }
  0x8c   :  { %p6680_p9 = scmp.lt.u32.totalorder %s6676_s22, %s8333_s9 }
  0x8e   :  { %p6682_p10 = pnand %p6680_p9, %p6677_p8 }
  0x90   :  { %6685 = shalt.err (!%p6682_p10)
}
  0x91   :  { %s6686_s12 = scalar_lea.vmem %s110_s5, 64  ;;  %p6691_p12 = scmp.lt.s32.totalorder %s110_s5, %s110_s5 }
  0x92   :  { %p6687_p11 = scmp.ne.s32.totalorder %s110_s5, %s6686_s12  ;;  %p6692_p13 = scmp.lt.s32.totalorder %s6686_s12, %s6686_s12 }
  0x94   :  { %p6693_p0 = por %p6692_p13, %p6691_p12 }
  0x96   :  { %p6694_p1 = pnand %p6693_p0, %p6687_p11 }
  0x98   :  { %6697 = shalt.err (!%p6694_p1)
}
  0x99   :  { %s6795_s6 = smov 32   ;;  %s6796_s16 = smov 2  }
  0x9a   :  { %115 = dma.hbm_to_vmem [thread:$0]  %s8333_s9, 64, %s110_s5, [#allocation12], %s6795_s6, %s6795_s6, %s6796_s16  }
  0x9b   :  { %s6797_s29 = smov [#allocation16]   ;;  %s6798_s21 = smov [#allocation19]  }
  0x9c   :  { %s133_s15 = sshll.u32 %s6797_s29, 4  ;;  %s157_s7 = sshll.u32 %s6798_s21, 4  ;;  %s134_s15 = int_to_ptr.vmem [resolvable:$true] %s133_s15  ;;  %s158_s7 = int_to_ptr.vmem [resolvable:$true] %s157_s7 }
  0x9d   :  { %s6698_s18 = scalar_lea.hbm %s8335_s11, 32 }
  0x9e   :  { %p6699_p2 = scmp.ne.s32.totalorder %s8335_s11, %s6698_s18  ;;  %p6702_p3 = scmp.lt.u32.totalorder %s6698_s18, %s8335_s11 }
  0xa0   :  { %p6704_p4 = pnand %p6702_p3, %p6699_p2 }
  0xa2   :  { %6707 = shalt.err (!%p6704_p4)
}
  0xa3   :  { %s6708_s9 = scalar_lea.vmem %s134_s15, 32  ;;  %p6713_p6 = scmp.lt.s32.totalorder %s134_s15, %s134_s15 }
  0xa4   :  { %p6709_p5 = scmp.ne.s32.totalorder %s134_s15, %s6708_s9  ;;  %p6714_p7 = scmp.lt.s32.totalorder %s6708_s9, %s6708_s9 }
  0xa6   :  { %p6715_p8 = por %p6714_p7, %p6713_p6 }
  0xa8   :  { %p6716_p9 = pnand %p6715_p8, %p6709_p5 }
  0xaa   :  { %6719 = shalt.err (!%p6716_p9)
}
  0xab   :  { %139 = dma.hbm_to_vmem [thread:$0]  %s8335_s11, 32, %s134_s15, [#allocation15], %s6782_s3, %s6782_s3, %s6783_s30  }
  0xac   :  { %s6720_s26 = scalar_lea.hbm %s8337_s13, 32 }
  0xad   :  { %p6721_p10 = scmp.ne.s32.totalorder %s8337_s13, %s6720_s26  ;;  %p6724_p11 = scmp.lt.u32.totalorder %s6720_s26, %s8337_s13 }
  0xaf   :  { %p6726_p12 = pnand %p6724_p11, %p6721_p10 }
  0xb1   :  { %6729 = shalt.err (!%p6726_p12)
}
  0xb2   :  { %s6730_s29 = scalar_lea.vmem %s158_s7, 32  ;;  %p6735_p0 = scmp.lt.s32.totalorder %s158_s7, %s158_s7 }
  0xb3   :  { %p6731_p13 = scmp.ne.s32.totalorder %s158_s7, %s6730_s29  ;;  %p6736_p1 = scmp.lt.s32.totalorder %s6730_s29, %s6730_s29 }
  0xb5   :  { %p6737_p2 = por %p6736_p1, %p6735_p0 }
  0xb7   :  { %p6738_p3 = pnand %p6737_p2, %p6731_p13 }
  0xb9   :  { %6741 = shalt.err (!%p6738_p3)
}
  0xba   :  { %163 = dma.hbm_to_vmem [thread:$0]  %s8337_s13, 32, %s158_s7, [#allocation18], %s6782_s3, %s6782_s3, %s6783_s30  }
  0xbb   :  { %6764 = dma.done.wait [#allocation3], 6144  }
  0xbc   :  { %6765 = vsyncadd [#allocation3], 4294961152 }
  0xbd   :  { %6766 = dma.done.wait [#allocation6], 2144  }
  0xbe   :  { %6767 = vsyncadd [#allocation6], 4294965152 }
  0xbf   :  { %6768 = dma.done.wait [#allocation9], 64  }
  0xc0   :  { %6769 = vsyncadd [#allocation9], 4294967232 }
  0xc1   :  { %6770 = dma.done.wait [#allocation12], 96  }
  0xc2   :  { %6771 = vsyncadd [#allocation12], 4294967200 }
  0xc3   :  { %6772 = dma.done.wait [#allocation15], 4128  }
  0xc4   :  { %6773 = vsyncadd [#allocation15], 4294963168 }
  0xc5   :  { %6774 = dma.done.wait [#allocation18], 64  }
  0xc6   :  { %6775 = vsyncadd [#allocation18], 4294967232  ;;  %v6799_v0 = vmov 0   ;;  %v6800_v1 = vmov 0.0   ;;  %vm6801_vm0 = vmmov 0   ;;  %v198_v19 = vld [vmem:[%s8324_s0] sm:$0xff]  ;;  %v321_v44 = vlaneseq }
  0xc7   :  { %496 = vmatprep.mubr.bf16.mxu0 %v6799_v0  ;;  %5566 = vmatprep.subr.bf16.mxu1 %v6800_v1  ;;  %v6100_v2 = vld [vmem:[#allocation2 + $0x4] ss:$12 sps:$4 sm:$0xff]   ;;  %v6102_v3 = vld [vmem:[#allocation2] ss:$12 sps:$4 sm:$0xff]   ;;  %v6103_v4 = vld [vmem:[#allocation2 + $0x1c] ss:$12 sps:$4 sm:$0xff]  }
  0xc8   :  { %5582 = vmatprep.mubr.msk.bf16.mxu1 %vm6801_vm0, %v6800_v1  ;;  %464 = vmatprep.subr.bf16.mxu0 %v6100_v2  ;;  %v6105_v5 = vld [vmem:[#allocation2 + $0x18] ss:$12 sps:$4 sm:$0xff]   ;;  %v6106_v6 = vld [vmem:[#allocation2 + $0x34] ss:$12 sps:$4 sm:$0xff]   ;;  %v6108_v7 = vld [vmem:[#allocation2 + $0x30] ss:$12 sps:$4 sm:$0xff]  }
  0xc9   :  { %465 = vmatpush1.bf16.msra.mxu0 %v6102_v3  ;;  %v6109_v8 = vld [vmem:[#allocation2 + $0x4c] ss:$12 sps:$4 sm:$0xff]   ;;  %v6111_v9 = vld [vmem:[#allocation2 + $0x48] ss:$12 sps:$4 sm:$0xff]   ;;  %v6112_v10 = vld [vmem:[#allocation2 + $0x64] ss:$12 sps:$4 sm:$0xff]  }
  0xca   :  { %466 = vmatprep.subr.bf16.mxu0 %v6103_v4  ;;  %v6114_v11 = vld [vmem:[#allocation2 + $0x60] ss:$12 sps:$4 sm:$0xff]   ;;  %v6124_v12 = vld [vmem:[#allocation2 + $0x8] ss:$12 sps:$4 sm:$0xff]   ;;  %v6117_v15 = vld [vmem:[#allocation2 + $0x78] ss:$12 sps:$4 sm:$0xff]  }
  0xcb   :  { %v6115_v13 = vld [vmem:[#allocation2 + $0x7c] ss:$12 sps:$4 sm:$0xff]   ;;  %5567 = vmatpush3.bf16.msra.mxu1 %v6124_v12  ;;  %v6125_v14 = vld [vmem:[#allocation2 + $0x20] ss:$12 sps:$4 sm:$0xff]   ;;  %v6126_v17 = vld [vmem:[#allocation2 + $0x38] ss:$12 sps:$4 sm:$0xff]  }
  0xcc   :  { %5568 = vmatprep.subr.bf16.mxu1 %v6800_v1  ;;  %v6118_v16 = vld [vmem:[#allocation2 + $0x94] ss:$12 sps:$4 sm:$0xff]   ;;  %v6120_v18 = vld [vmem:[#allocation2 + $0x90] ss:$12 sps:$4 sm:$0xff]   ;;  %v199_v20 = vld [vmem:[%s8324_s0 + $0x8] sm:$0xff]  ;;  %v7108_v45 = vshrl.u32 %v321_v44, 7 }
  0xcd   :  { %467 = vmatpush1.bf16.msra.mxu0 %v6105_v5  ;;  %v204_v21 = vld [vmem:[%s8325_s1] sm:$0xff]  ;;  %v205_v22 = vld [vmem:[%s8325_s1 + $0x8] sm:$0xff]  ;;  %v6127_v24 = vld [vmem:[#allocation2 + $0x50] ss:$12 sps:$4 sm:$0xff]   ;;  %vm593_vm1 = vcmask 261120   ;;  %vm696_vm2 = vcmask 1043456  }
  0xce   :  { %468 = vmatprep.subr.bf16.mxu0 %v6106_v6  ;;  %v6121_v23 = vld [vmem:[#allocation2 + $0xac] ss:$12 sps:$4 sm:$0xff]   ;;  %v6123_v25 = vld [vmem:[#allocation2 + $0xa8] ss:$12 sps:$4 sm:$0xff]   ;;  %v7065_v26 = vadd.f32 %v204_v21, %v198_v19  ;;  %v7067_v27 = vadd.f32 %v205_v22, %v199_v20  ;;  %v202_v37 = vld [vmem:[%s8324_s0 + $0x20] sm:$0xff]  ;;  %v7111_v46 = vsub.s32 0, %v7108_v45 }
  0xcf   :  { %5569 = vmatpush3.bf16.msra.mxu1 %v6125_v14  ;;  %v6128_v28 = vld [vmem:[#allocation2 + $0x68] ss:$12 sps:$4 sm:$0xff]   ;;  %v201_v30 = vld [vmem:[%s8324_s0 + $0x18] sm:$0xff]  ;;  %v6129_v33 = vld [vmem:[#allocation2 + $0x80] ss:$12 sps:$4 sm:$0xff]   ;;  %v7097_v41 = vadd.f32 %v205_v22, %v202_v37  ;;  %v7114_v48 = vsub.s32 1, %v7108_v45 }
  0xd0   :  { %5570 = vmatprep.subr.bf16.mxu1 %v6800_v1  ;;  %v200_v29 = vld [vmem:[%s8324_s0 + $0x10] sm:$0xff]  ;;  %v317_v32 = vpack.c.bf16 %v7067_v27, %v7065_v26  ;;  %v7084_v35 = vadd.f32 %v204_v21, %v201_v30  ;;  %v6130_v36 = vld [vmem:[#allocation2 + $0x98] ss:$12 sps:$4 sm:$0xff]   ;;  %v203_v38 = vld [vmem:[%s8324_s0 + $0x28] sm:$0xff]  ;;  %s6802_s0 = smov 96   ;;  %v331_v6 = vsub.s32 2, %v7108_v45 }
  0xd1   :  { %469 = vmatpush1.bf16.msra.mxu0 %v6108_v7  ;;  %v206_v31 = vld [vmem:[%s8325_s1 + $0x10] sm:$0xff]  ;;  %v245_v47 = vld [vmem:[#allocation5] sm:$0x7]  ;;  %vm654_vm3 = vcmask 195584   ;;  %vm1288_vm4 = vcmask 523264   ;;  %vm1292_vm5 = vcmask 785408  }
  0xd2   :  { %470 = vmatprep.subr.bf16.mxu0 %v6109_v8  ;;  %v7082_v34 = vadd.f32 %v206_v31, %v200_v29  ;;  %v6131_v40 = vld [vmem:[#allocation2 + $0xb0] ss:$12 sps:$4 sm:$0xff]   ;;  %v7099_v42 = vadd.f32 %v206_v31, %v203_v38  ;;  %v324_v49 = vrot.slane %v245_v47, %v7111_v46  ;;  %v328_v51 = vrot.slane %v245_v47, %v7114_v48 }
  0xd3   :  { %5571 = vmatpush3.bf16.msra.mxu1 %v6126_v17 }
  0xd4   :  { %5572 = vmatprep.subr.bf16.mxu1 %v6800_v1  ;;  %v318_v39 = vpack.c.bf16 %v7084_v35, %v7082_v34  ;;  %v319_v43 = vpack.c.bf16 %v7099_v42, %v7097_v41 }
  0xd5   :  { %471 = vmatpush1.bf16.msra.mxu0 %v6111_v9 }
  0xd6   :  { %472 = vmatprep.subr.bf16.mxu0 %v6112_v10  ;;  %v332_v10 = vrot.slane %v245_v47, %v331_v6 }
  0xd7   :  { %5573 = vmatpush3.bf16.msra.mxu1 %v6127_v24 }
  0xd8   :  { %5574 = vmatprep.subr.bf16.mxu1 %v6800_v1 }
  0xd9   :  { %473 = vmatpush1.bf16.msra.mxu0 %v6114_v11 }
  0xda   :  { %474 = vmatprep.subr.bf16.mxu0 %v6115_v13 }
  0xdb   :  { %5575 = vmatpush3.bf16.msra.mxu1 %v6128_v28 }
  0xdc   :  { %5576 = vmatprep.subr.bf16.mxu1 %v6800_v1 }
  0xdd   :  { %475 = vmatpush1.bf16.msra.mxu0 %v6117_v15 }
  0xde   :  { %476 = vmatprep.subr.bf16.mxu0 %v6118_v16 }
  0xdf   :  { %5577 = vmatpush3.bf16.msra.mxu1 %v6129_v33 }
  0xe0   :  { %5578 = vmatprep.subr.bf16.mxu1 %v6800_v1 }
  0xe1   :  { %477 = vmatpush1.bf16.msra.mxu0 %v6120_v18 }
  0xe2   :  { %478 = vmatprep.subr.bf16.mxu0 %v6121_v23 }
  0xe3   :  { %5579 = vmatpush3.bf16.msra.mxu1 %v6130_v36 }
  0xe4   :  { %5580 = vmatprep.subr.bf16.mxu1 %v6800_v1 }
  0xe5   :  { %479 = vmatpush1.bf16.msra.mxu0 %v6123_v25 }
  0xe7   :  { %5581 = vmatpush3.bf16.msra.mxu1 %v6131_v40 }
  0xe8   :  { %497 = vmatmul.mubr.bf16.vlgmr.msra.gmra.mrb[0].mxu0 %v317_v32 }
  0xe9   :  { %506 = vmatprep.mubr.bf16.mxu0 %v6799_v0 }
  0xea   :  { %5583 = vmatmul.mubr.bf16.vlgmr.msra.gmra.mrb[0].mxu1 %v317_v32 }
  0xeb   :  { %5586 = vmatprep.mubr.msk.bf16.mxu1 %vm6801_vm0, %v6800_v1 }
  0xf0   :  { %507 = vmatmul.mubr.bf16.gmra.mrb[4].mxu0 %v318_v39 }
  0xf1   :  { %516 = vmatprep.mubr.bf16.mxu0 %v6799_v0 }
  0xf2   :  { %5587 = vmatmul.mubr.bf16.gmra.mrb[4].mxu1 %v318_v39 }
  0xf3   :  { %5590 = vmatprep.mubr.msk.bf16.mxu1 %vm6801_vm0, %v6800_v1 }
  0xf8   :  { %517 = vmatmul.mubr.bf16.gmra.mrb[8].mxu0 %v319_v43 }
  0xfa   :  { %5591 = vmatmul.mubr.bf16.gmra.mrb[8].mxu1 %v319_v43 }
 0x1bb   :  { %v498_v50 = vpop.f32.mrb[0].mxu0 }
 0x1bc   :  { %v500_v52 = vpop.f32.mrb[1].mxu0  ;;  %v499_v54 = vadd.f32 %v498_v50, %v324_v49 }
 0x1bd   :  { %v502_v53 = vpop.f32.mrb[2].mxu0  ;;  %v501_v57 = vadd.f32 %v500_v52, %v328_v51  ;;  %v561_v11 = vpop.f32.mrb[0].mxu1 }
 0x1be   :  { %v503_v55 = vadd.f32 %v502_v53, %v324_v49  ;;  %v504_v56 = vpop.f32.mrb[3].mxu0  ;;  %v5584_v13 = vpop.f32.mrb[1].mxu1  ;;  %v562_v14 = vadd.f32 %v561_v11, %v332_v10 }
 0x1bf   :  { %v505_v58 = vadd.f32 %v504_v56, %v328_v51  ;;  %v564_v15 = vpop.f32.mrb[2].mxu1 }
 0x1c0   :  { %v7118_v59 = vpack.c.bf16 %v503_v55, %v499_v54  ;;  %v565_v18 = vadd.f32 %v564_v15, %v332_v10  ;;  %v5585_v19 = vpop.f32.mrb[3].mxu1 }
 0x1c1   :  { %v7120_v60 = vpack.c.bf16 %v505_v58, %v501_v57 }
 0x1c2   :  { %750 = vrot.lane.b32.xlu1 %v7118_v59, %s6802_s0  ;;  %5598 = vmatprep.mubr.msk.bf16.mxu1 %vm593_vm1, %v7118_v59  ;;  %v7151_v24 = vpack.c.bf16 %v565_v18, %v562_v14 }
 0x1c3   :  { %v508_v61 = vpop.f32.mrb[4].mxu0  ;;  %756 = vrot.lane.b32.xlu0 %v7120_v60, %s6802_s0  ;;  %5934 = vmatprep.subr.msk.bf16.mxu1 %vm593_vm1, %v7120_v60  ;;  %v601_v62 = vsel %vm593_vm1, %v7120_v60, 0 }
 0x1c4   :  { %v510_v63 = vpop.f32.mrb[5].mxu0  ;;  %5595 = vmatpush3.bf16.xpose.msra.mxu1 %v601_v62  ;;  %v509_v3 = vadd.f32 %v508_v61, %v324_v49 }
 0x1c5   :  { %v512_v2 = vpop.f32.mrb[6].mxu0  ;;  %v511_v7 = vadd.f32 %v510_v63, %v328_v51  ;;  %v569_v31 = vpop.f32.mrb[4].mxu1 }
 0x1c6   :  { %v513_v4 = vadd.f32 %v512_v2, %v324_v49  ;;  %v514_v5 = vpop.f32.mrb[7].mxu0  ;;  %v570_v33 = vadd.f32 %v569_v31, %v332_v10  ;;  %v5588_v36 = vpop.f32.mrb[5].mxu1 }
 0x1c7   :  { %v515_v8 = vadd.f32 %v514_v5, %v328_v51  ;;  %v572_v37 = vpop.f32.mrb[6].mxu1 }
 0x1c8   :  { %v7133_v9 = vpack.c.bf16 %v513_v4, %v509_v3  ;;  %v573_v38 = vadd.f32 %v572_v37, %v332_v10  ;;  %v5589_v39 = vpop.f32.mrb[7].mxu1 }
 0x1c9   :  { %v7137_v12 = vpack.c.bf16 %v515_v8, %v511_v7 }
 0x1ca   :  { %752 = vrot.lane.b32.xlu1 %v7133_v9, %s6802_s0  ;;  %v7165_v40 = vpack.c.bf16 %v573_v38, %v570_v33 }
 0x1cb   :  { %v518_v16 = vpop.f32.mrb[8].mxu0  ;;  %758 = vrot.lane.b32.xlu0 %v7137_v12, %s6802_s0  ;;  %5935 = vmatprep.subr.msk.bf16.mxu1 %vm593_vm1, %v7137_v12  ;;  %v604_v17 = vsel %vm593_vm1, %v7137_v12, 0 }
 0x1cc   :  { %v7147_v20 = vadd.f32 %v518_v16, %v324_v49  ;;  %v520_v21 = vpop.f32.mrb[9].mxu0  ;;  %5597 = vmatpush3.bf16.xpose.msra.mxu1 %v604_v17  ;;  %v698_v53 = vsel %vm696_vm2, %v7165_v40, 0 }
 0x1cd   :  { %v7149_v22 = vadd.f32 %v520_v21, %v328_v51  ;;  %v522_v23 = vpop.f32.mrb[10].mxu0  ;;  %5602 = vmatprep.subr.bf16.mxu1 %v7151_v24  ;;  %v577_v43 = vpop.f32.mrb[8].mxu1 }
 0x1ce   :  { %v7153_v25 = vadd.f32 %v522_v23, %v324_v49  ;;  %v524_v28 = vpop.f32.mrb[11].mxu0  ;;  %v7169_v44 = vadd.f32 %v577_v43, %v332_v10  ;;  %v5592_v47 = vpop.f32.mrb[9].mxu1 }
 0x1cf   :  { %v7155_v29 = vadd.f32 %v524_v28, %v328_v51  ;;  %v580_v49 = vpop.f32.mrb[10].mxu1 }
 0x1d0   :  { %v586_v30 = vpack.c.bf16 %v7153_v25, %v7147_v20  ;;  %v7171_v50 = vadd.f32 %v580_v49, %v332_v10  ;;  %v5593_v51 = vpop.f32.mrb[11].mxu1 }
 0x1d1   :  { %v589_v32 = vpack.c.bf16 %v7155_v29, %v7149_v22 }
 0x1d2   :  { %v592_v52 = vpack.c.bf16 %v7171_v50, %v7169_v44 }
 0x1d3   :  { %5599 = vmatmul.mubr.msk.bf16.vlgmr.msra.gmra.mrb[12].mxu1 %vm593_vm1, %v7133_v9 }
 0x1d4   :  { %5603 = vmatpush3.bf16.msra.mxu1 %v7151_v24 }
 0x1d5   :  { %5936 = vmatprep.subr.msk.bf16.mxu1 %vm696_vm2, %v7165_v40 }
 0x1d8   :  { %5605 = vmatpush3.bf16.msra.mxu1 %v698_v53 }
 0x234   :  { %v751_v54 = vpop.permute.xlu1 %750 }
 0x235   :  { %v757_v55 = vpop.permute.xlu0 %756  ;;  %5614 = vmatprep.mubr.msk.bf16.mxu0 %vm593_vm1, %v751_v54 }
 0x236   :  { %5937 = vmatprep.subr.msk.bf16.mxu0 %vm593_vm1, %v757_v55  ;;  %v767_v56 = vsel %vm593_vm1, %v757_v55, 0 }
 0x237   :  { %5611 = vmatpush3.bf16.xpose.msra.mxu0 %v767_v56 }
 0x23c   :  { %v753_v61 = vpop.permute.xlu1 %752 }
 0x23d   :  { %v759_v57 = vpop.permute.xlu0 %758 }
 0x23e   :  { %5938 = vmatprep.subr.msk.bf16.mxu0 %vm593_vm1, %v759_v57  ;;  %v770_v58 = vsel %vm593_vm1, %v759_v57, 0 }
 0x23f   :  { %5613 = vmatpush3.bf16.xpose.msra.mxu0 %v770_v58 }
 0x246   :  { %5615 = vmatmul.mubr.msk.bf16.vlgmr.msra.gmra.mrb[12].mxu0 %vm593_vm1, %v753_v61 }
 0x2a6   :  { %v5600_v62 = vpop.f32.mrb[12].mxu1 }
 0x2a7   :  { %v640_v63 = vpop.f32.mrb[13].mxu1  ;;  %v661_v7 = vsel %vm654_vm3, %v5600_v62, -inf }
 0x2a8   :  { %v5601_v2 = vpop.f32.mrb[14].mxu1  ;;  %v655_v3 = vsel %vm654_vm3, %v640_v63, -inf }
 0x2a9   :  { %656 = vmax.xlane.f32.xlu0 %v655_v3  ;;  %v643_v4 = vpop.f32.mrb[15].mxu1 }
 0x2aa   :  { %v658_v5 = vsel %vm654_vm3, %v643_v4, -inf }
 0x2ab   :  { %659 = vmax.xlane.f32.xlu1 %v658_v5 }
 0x2ad   :  { %662 = vmax.xlane.f32.xlu0 %v661_v7 }
 0x319   :  { %v5616_v8 = vpop.f32.mrb[12].mxu0 }
 0x31a   :  { %v806_v10 = vpop.f32.mrb[13].mxu0  ;;  %v826_v16 = vsel %vm654_vm3, %v5616_v8, -inf }
 0x31b   :  { %v5617_v11 = vpop.f32.mrb[14].mxu0  ;;  %v820_v13 = vsel %vm654_vm3, %v806_v10, -inf }
 0x31c   :  { %v809_v14 = vpop.f32.mrb[15].mxu0  ;;  %821 = vmax.xlane.f32.xlu0 %v820_v13 }
 0x31d   :  { %v823_v15 = vsel %vm654_vm3, %v809_v14, -inf }
 0x31e   :  { %824 = vmax.xlane.f32.xlu1 %v823_v15 }
 0x320   :  { %827 = vmax.xlane.f32.xlu0 %v826_v16 }
 0x336   :  { %v657_v17 = vpop.xlane.xlu0 %656 }
 0x337   :  { %v664_v19 = vsub.f32 %v640_v63, %v657_v17 }
 0x338   :  { %v660_v18 = vpop.xlane.xlu1 %659 }
 0x339   :  { %v665_v21 = vsub.f32 %v643_v4, %v660_v18  ;;  %v667_v33 = vmul.f32 1.442695, %v664_v19 }
 0x33a   :  { %v663_v23 = vpop.xlane.xlu0 %662 }
 0x33b   :  { %v669_v28 = vmul.f32 1.442695, %v665_v21  ;;  %v666_v31 = vsub.f32 %v5600_v62, %v663_v23 }
 0x33d   :  { %6260 = vpow2.f32 %v669_v28  ;;  %v671_v36 = vmul.f32 1.442695, %v666_v31 }
 0x33f   :  { %6262 = vpow2.f32 %v671_v36 }
 0x340   :  { %6264 = vpow2.f32 %v667_v33 }
 0x347   :  { %v6261_v37 = vpop.eup %6260 }
 0x348   :  { %v676_v38 = vsel %vm654_vm3, %v6261_v37, 0.0 }
 0x349   :  { %v6263_v39 = vpop.eup %6262  ;;  %677 = vadd.xlane.f32.xlu0 %v676_v38 }
 0x34a   :  { %v679_v43 = vsel %vm654_vm3, %v6263_v39, 0.0  ;;  %v6265_v47 = vpop.eup %6264 }
 0x34b   :  { %680 = vadd.xlane.f32.xlu1 %v679_v43  ;;  %v673_v49 = vsel %vm654_vm3, %v6265_v47, 0.0 }
 0x34f   :  { %674 = vadd.xlane.f32.xlu1 %v673_v49 }
 0x360   :  { %857 = vrot.lane.b32.xlu1 %v7151_v24, %s6802_s0 }
 0x3a9   :  { %v822_v51 = vpop.xlane.xlu0 %821 }
 0x3aa   :  { %v829_v54 = vsub.f32 %v806_v10, %v822_v51 }
 0x3ab   :  { %v825_v53 = vpop.xlane.xlu1 %824 }
 0x3ac   :  { %v830_v55 = vsub.f32 %v809_v14, %v825_v53  ;;  %v832_v61 = vmul.f32 1.442695, %v829_v54 }
 0x3ad   :  { %v828_v56 = vpop.xlane.xlu0 %827 }
 0x3ae   :  { %v834_v57 = vmul.f32 1.442695, %v830_v55  ;;  %v831_v58 = vsub.f32 %v5616_v8, %v828_v56 }
 0x3b0   :  { %6266 = vpow2.f32 %v834_v57  ;;  %v836_v62 = vmul.f32 1.442695, %v831_v58 }
 0x3b2   :  { %6268 = vpow2.f32 %v836_v62 }
 0x3b3   :  { %6270 = vpow2.f32 %v832_v61 }
 0x3ba   :  { %v6267_v63 = vpop.eup %6266 }
 0x3bb   :  { %v841_v2 = vsel %vm654_vm3, %v6267_v63, 0.0 }
 0x3bc   :  { %v6269_v3 = vpop.eup %6268  ;;  %842 = vadd.xlane.f32.xlu1 %v841_v2 }
 0x3bd   :  { %v844_v4 = vsel %vm654_vm3, %v6269_v3, 0.0  ;;  %v6271_v5 = vpop.eup %6270 }
 0x3be   :  { %845 = vadd.xlane.f32.xlu0 %v844_v4  ;;  %v838_v7 = vsel %vm654_vm3, %v6271_v5, 0.0 }
 0x3c2   :  { %839 = vadd.xlane.f32.xlu0 %v838_v7 }
 0x3cd   :  { %923 = vrot.lane.b32.xlu1 %v7120_v60, %s6787_s25 }
 0x3d1   :  { %925 = vrot.lane.b32.xlu1 %v7137_v12, %s6787_s25 }
 0x3d5   :  { %921 = vrot.lane.b32.xlu1 %v7133_v9, %s6787_s25 }
 0x3d6   :  { %v678_v8 = vpop.xlane.xlu0 %677 }
 0x3d8   :  { %859 = vrot.lane.b32.xlu0 %v7165_v40, %s6802_s0  ;;  %v681_v10 = vpop.xlane.xlu1 %680 }
 0x3d9   :  { %6272 = vrcp.f32 %v681_v10 }
 0x3da   :  { %6274 = vrcp.f32 %v678_v8 }
 0x3dc   :  { %919 = vrot.lane.b32.xlu0 %v7118_v59, %s6787_s25  ;;  %v675_v11 = vpop.xlane.xlu1 %674 }
 0x3dd   :  { %6276 = vrcp.f32 %v675_v11 }
 0x3e0   :  { %v858_v13 = vpop.permute.xlu1 %857 }
 0x3e1   :  { %5618 = vmatprep.subr.bf16.mxu1 %v858_v13 }
 0x3e3   :  { %v6273_v14 = vpop.eup %6272 }
 0x3e4   :  { %v6275_v15 = vpop.eup %6274  ;;  %v687_v17 = vmul.f32 %v6273_v14, %v6263_v39 }
 0x3e5   :  { %v686_v19 = vmul.f32 %v6275_v15, %v6261_v37 }
 0x3e6   :  { %v689_v23 = vpack.c.bf16 %v687_v17, %v687_v17 }
 0x3e7   :  { %v6277_v16 = vpop.eup %6276 }
 0x3e8   :  { %v685_v18 = vmul.f32 %v6277_v16, %v6265_v47 }
 0x3ea   :  { %v688_v21 = vpack.c.bf16 %v686_v19, %v685_v18 }
 0x3ec   :  { %5606 = vmatprep.mubr.msk.bf16.mxu1 %vm654_vm3, %v688_v21 }
 0x3ed   :  { %5607 = vmatmul.mubr.msk.bf16.vlgmr.msra.gmra.mrb[16].mxu1 %vm654_vm3, %v689_v23 }
 0x3ee   :  { %5619 = vmatpush3.bf16.msra.mxu1 %v858_v13 }
 0x449   :  { %v843_v28 = vpop.xlane.xlu1 %842 }
 0x44b   :  { %v846_v31 = vpop.xlane.xlu0 %845 }
 0x44c   :  { %6278 = vrcp.f32 %v846_v31 }
 0x44d   :  { %6280 = vrcp.f32 %v843_v28  ;;  %v924_v39 = vpop.permute.xlu1 %923 }
 0x44e   :  { %v934_v57 = vsel %vm593_vm1, %v924_v39, 0 }
 0x44f   :  { %v840_v33 = vpop.xlane.xlu0 %839 }
 0x450   :  { %6282 = vrcp.f32 %v840_v33 }
 0x451   :  { %v926_v58 = vpop.permute.xlu1 %925 }
 0x452   :  { %v937_v61 = vsel %vm593_vm1, %v926_v58, 0 }
 0x453   :  { %v860_v36 = vpop.permute.xlu0 %859 }
 0x454   :  { %5939 = vmatprep.subr.msk.bf16.mxu1 %vm696_vm2, %v860_v36  ;;  %v869_v38 = vsel %vm696_vm2, %v860_v36, 0 }
 0x455   :  { %5621 = vmatpush3.bf16.msra.mxu1 %v869_v38  ;;  %v922_v62 = vpop.permute.xlu1 %921 }
 0x456   :  { %5940 = vmatprep.subr.msk.bf16.mxu1 %vm593_vm1, %v924_v39  ;;  %v6279_v37 = vpop.eup %6278 }
 0x457   :  { %v6281_v43 = vpop.eup %6280  ;;  %v852_v49 = vmul.f32 %v6279_v37, %v6269_v3  ;;  %v920_v56 = vpop.permute.xlu0 %919 }
 0x458   :  { %v851_v53 = vmul.f32 %v6281_v43, %v6267_v63 }
 0x459   :  { %v854_v55 = vpack.c.bf16 %v852_v49, %v852_v49 }
 0x45a   :  { %v6283_v47 = vpop.eup %6282 }
 0x45b   :  { %v850_v51 = vmul.f32 %v6283_v47, %v6271_v5 }
 0x45d   :  { %v853_v54 = vpack.c.bf16 %v851_v53, %v850_v51 }
 0x45f   :  { %5622 = vmatprep.mubr.msk.bf16.mxu1 %vm654_vm3, %v853_v54 }
 0x460   :  { %5623 = vmatmul.mubr.msk.bf16.vlgmr.msra.gmra.mrb[20].mxu1 %vm654_vm3, %v854_v55 }
 0x461   :  { %5627 = vmatpush3.bf16.xpose.msra.mxu1 %v934_v57  ;;  %5630 = vmatprep.mubr.msk.bf16.mxu1 %vm593_vm1, %v920_v56 }
 0x462   :  { %5941 = vmatprep.subr.msk.bf16.mxu1 %vm593_vm1, %v926_v58 }
 0x469   :  { %5629 = vmatpush3.bf16.xpose.msra.mxu1 %v937_v61 }
 0x470   :  { %5631 = vmatmul.mubr.msk.bf16.vlgmr.msra.gmra.mrb[24].mxu1 %vm593_vm1, %v922_v62 }
 0x4c0   :  { %v7219_v63 = vpop.f32.mrb[16].mxu1 }
 0x4c1   :  { %v7221_v2 = vpop.f32.mrb[17].mxu1 }
 0x4c2   :  { %v5609_v3 = vpop.f32.mrb[18].mxu1 }
 0x4c3   :  { %v7223_v4 = vpop.f32.mrb[19].mxu1 }
 0x533   :  { %v7225_v5 = vpop.f32.mrb[20].mxu1 }
 0x534   :  { %v7227_v7 = vpop.f32.mrb[21].mxu1 }
 0x535   :  { %v5625_v8 = vpop.f32.mrb[22].mxu1 }
 0x536   :  { %v7229_v10 = vpop.f32.mrb[23].mxu1 }
 0x537   :  { %v6010_v11 = vpack.i.bf16 %v7229_v10, %v7227_v7 }
 0x543   :  { %v5632_v13 = vpop.f32.mrb[24].mxu1 }
 0x544   :  { %v973_v14 = vpop.f32.mrb[25].mxu1  ;;  %v993_v19 = vsel %vm654_vm3, %v5632_v13, -inf }
 0x545   :  { %v5633_v15 = vpop.f32.mrb[26].mxu1  ;;  %v987_v16 = vsel %vm654_vm3, %v973_v14, -inf }
 0x546   :  { %988 = vmax.xlane.f32.xlu0 %v987_v16  ;;  %v976_v17 = vpop.f32.mrb[27].mxu1 }
 0x547   :  { %v990_v18 = vsel %vm654_vm3, %v976_v17, -inf }
 0x548   :  { %991 = vmax.xlane.f32.xlu1 %v990_v18 }
 0x54a   :  { %994 = vmax.xlane.f32.xlu0 %v993_v19 }
 0x559   :  { %1022 = vrot.lane.b32.xlu1 %v7151_v24, %s6787_s25 }
 0x5d3   :  { %v989_v21 = vpop.xlane.xlu0 %988 }
 0x5d4   :  { %v996_v28 = vsub.f32 %v973_v14, %v989_v21 }
 0x5d5   :  { %v992_v23 = vpop.xlane.xlu1 %991 }
 0x5d6   :  { %v997_v31 = vsub.f32 %v976_v17, %v992_v23  ;;  %v999_v37 = vmul.f32 1.442695, %v996_v28  ;;  %v7262_v23 = vrot.slane %v592_v52, 4  ;;  %v1401_v28 = vrot.slane %v7165_v40, 4 }
 0x5d7   :  { %v995_v33 = vpop.xlane.xlu0 %994 }
 0x5d8   :  { %v1001_v36 = vmul.f32 1.442695, %v997_v31  ;;  %v998_v38 = vsub.f32 %v5632_v13, %v995_v33  ;;  %v7268_v33 = vsel %vm696_vm2, %v1401_v28, %v7262_v23  ;;  %v1412_v44 = vsel %vm696_vm2, %v7262_v23, 0 }
 0x5d9   :  { %v1023_v39 = vpop.permute.xlu1 %1022 }
 0x5da   :  { %6284 = vpow2.f32 %v1001_v36  ;;  %v1003_v43 = vmul.f32 1.442695, %v998_v38  ;;  %5634 = vmatprep.subr.bf16.mxu0 %v1023_v39 }
 0x5db   :  { %5635 = vmatpush3.bf16.msra.mxu0 %v1023_v39 }
 0x5dc   :  { %6286 = vpow2.f32 %v1003_v43 }
 0x5dd   :  { %6288 = vpow2.f32 %v999_v37 }
 0x5e4   :  { %v6285_v47 = vpop.eup %6284 }
 0x5e5   :  { %v1008_v49 = vsel %vm654_vm3, %v6285_v47, 0.0 }
 0x5e6   :  { %v6287_v51 = vpop.eup %6286  ;;  %1009 = vadd.xlane.f32.xlu1 %v1008_v49 }
 0x5e7   :  { %v1011_v53 = vsel %vm654_vm3, %v6287_v51, 0.0  ;;  %v6289_v54 = vpop.eup %6288 }
 0x5e8   :  { %1012 = vadd.xlane.f32.xlu0 %v1011_v53  ;;  %v1005_v55 = vsel %vm654_vm3, %v6289_v54, 0.0 }
 0x5ec   :  { %1006 = vadd.xlane.f32.xlu0 %v1005_v55 }
 0x5f7   :  { %1088 = vrot.lane.b32.xlu1 %v7120_v60, %s6795_s6 }
 0x5fb   :  { %1090 = vrot.lane.b32.xlu1 %v7137_v12, %s6795_s6 }
 0x5ff   :  { %1086 = vrot.lane.b32.xlu1 %v7133_v9, %s6795_s6 }
 0x602   :  { %1024 = vrot.lane.b32.xlu0 %v7165_v40, %s6787_s25 }
 0x606   :  { %1084 = vrot.lane.b32.xlu0 %v7118_v59, %s6795_s6 }
 0x673   :  { %v1010_v56 = vpop.xlane.xlu1 %1009 }
 0x675   :  { %v1013_v57 = vpop.xlane.xlu0 %1012 }
 0x676   :  { %6290 = vrcp.f32 %v1013_v57 }
 0x677   :  { %6292 = vrcp.f32 %v1010_v56  ;;  %v1089_v62 = vpop.permute.xlu1 %1088 }
 0x678   :  { %v1099_v19 = vsel %vm593_vm1, %v1089_v62, 0 }
 0x679   :  { %v1007_v58 = vpop.xlane.xlu0 %1006 }
 0x67a   :  { %6294 = vrcp.f32 %v1007_v58 }
 0x67b   :  { %v1091_v21 = vpop.permute.xlu1 %1090 }
 0x67c   :  { %v1102_v31 = vsel %vm593_vm1, %v1091_v21, 0 }
 0x67d   :  { %v1025_v61 = vpop.permute.xlu0 %1024 }
 0x67e   :  { %5942 = vmatprep.subr.msk.bf16.mxu0 %vm696_vm2, %v1025_v61  ;;  %v1034_v60 = vsel %vm696_vm2, %v1025_v61, 0 }
 0x67f   :  { %5637 = vmatpush3.bf16.msra.mxu0 %v1034_v60  ;;  %v1087_v36 = vpop.permute.xlu1 %1086 }
 0x680   :  { %5943 = vmatprep.subr.msk.bf16.mxu0 %vm593_vm1, %v1089_v62  ;;  %v6291_v3 = vpop.eup %6290 }
 0x681   :  { %v6293_v8 = vpop.eup %6292  ;;  %v1019_v14 = vmul.f32 %v6291_v3, %v6287_v51  ;;  %v1085_v18 = vpop.permute.xlu0 %1084 }
 0x682   :  { %v1018_v15 = vmul.f32 %v6293_v8, %v6285_v47 }
 0x683   :  { %v1021_v17 = vpack.c.bf16 %v1019_v14, %v1019_v14 }
 0x684   :  { %v6295_v13 = vpop.eup %6294 }
 0x685   :  { %v1017_v59 = vmul.f32 %v6295_v13, %v6289_v54 }
 0x687   :  { %v1020_v16 = vpack.c.bf16 %v1018_v15, %v1017_v59 }
 0x689   :  { %5638 = vmatprep.mubr.msk.bf16.mxu0 %vm654_vm3, %v1020_v16 }
 0x68a   :  { %5639 = vmatmul.mubr.msk.bf16.vlgmr.msra.gmra.mrb[16].mxu0 %vm654_vm3, %v1021_v17 }
 0x68b   :  { %5643 = vmatpush3.bf16.xpose.msra.mxu0 %v1099_v19  ;;  %5646 = vmatprep.mubr.msk.bf16.mxu0 %vm593_vm1, %v1085_v18 }
 0x68c   :  { %5944 = vmatprep.subr.msk.bf16.mxu0 %vm593_vm1, %v1091_v21 }
 0x693   :  { %5645 = vmatpush3.bf16.xpose.msra.mxu0 %v1102_v31 }
 0x694   :  { %5666 = vmatprep.subr.bf16.mxu0 %v7268_v33 }
 0x69a   :  { %5647 = vmatmul.mubr.msk.bf16.vlgmr.msra.gmra.mrb[20].mxu0 %vm593_vm1, %v1087_v36  ;;  %v7298_v36 = vrot.slane %v589_v32, 4 }
 0x69b   :  { %5667 = vmatpush3.bf16.msra.mxu0 %v7268_v33 }
 0x69c   :  { %5948 = vmatprep.subr.msk.bf16.mxu0 %vm696_vm2, %v7262_v23 }
 0x69f   :  { %5669 = vmatpush3.bf16.msra.mxu0 %v1412_v44 }
 0x75d   :  { %v7277_v50 = vpop.f32.mrb[16].mxu0 }
 0x75e   :  { %v7279_v52 = vpop.f32.mrb[17].mxu0 }
 0x75f   :  { %v5641_v38 = vpop.f32.mrb[18].mxu0 }
 0x760   :  { %v7281_v39 = vpop.f32.mrb[19].mxu0 }
 0x761   :  { %v6015_v37 = vpack.i.bf16 %v7281_v39, %v7279_v52 }
 0x76d   :  { %v5648_v43 = vpop.f32.mrb[20].mxu0 }
 0x76e   :  { %v1138_v47 = vpop.f32.mrb[21].mxu0  ;;  %v1158_v55 = vsel %vm654_vm3, %v5648_v43, -inf }
 0x76f   :  { %v5649_v49 = vpop.f32.mrb[22].mxu0  ;;  %v1152_v51 = vsel %vm654_vm3, %v1138_v47, -inf }
 0x770   :  { %1153 = vmax.xlane.f32.xlu0 %v1152_v51  ;;  %v1141_v53 = vpop.f32.mrb[23].mxu0 }
 0x771   :  { %v1155_v54 = vsel %vm654_vm3, %v1141_v53, -inf }
 0x772   :  { %1156 = vmax.xlane.f32.xlu1 %v1155_v54  ;;  %v1298_v54 = vrot.slane %v7133_v9, 4  ;;  %v1315_v9 = vsel %vm593_vm1, %v7298_v36, 0 }
 0x774   :  { %1159 = vmax.xlane.f32.xlu0 %v1158_v55 }
 0x7fd   :  { %v1154_v56 = vpop.xlane.xlu0 %1153 }
 0x7fe   :  { %v1161_v58 = vsub.f32 %v1138_v47, %v1154_v56 }
 0x7ff   :  { %v1157_v57 = vpop.xlane.xlu1 %1156 }
 0x800   :  { %v1162_v61 = vsub.f32 %v1141_v53, %v1157_v57  ;;  %v1164_v8 = vmul.f32 1.442695, %v1161_v58 }
 0x801   :  { %v1160_v60 = vpop.xlane.xlu0 %1159 }
 0x802   :  { %v1166_v62 = vmul.f32 1.442695, %v1162_v61  ;;  %v1163_v3 = vsub.f32 %v5648_v43, %v1160_v60 }
 0x804   :  { %6296 = vpow2.f32 %v1166_v62  ;;  %v1168_v13 = vmul.f32 1.442695, %v1163_v3 }
 0x806   :  { %6298 = vpow2.f32 %v1168_v13 }
 0x807   :  { %6300 = vpow2.f32 %v1164_v8 }
 0x80e   :  { %v6297_v14 = vpop.eup %6296 }
 0x80f   :  { %v1173_v59 = vsel %vm654_vm3, %v6297_v14, 0.0 }
 0x810   :  { %v6299_v15 = vpop.eup %6298  ;;  %1174 = vadd.xlane.f32.xlu1 %v1173_v59 }
 0x811   :  { %v1176_v16 = vsel %vm654_vm3, %v6299_v15, 0.0  ;;  %v6301_v17 = vpop.eup %6300 }
 0x812   :  { %1177 = vadd.xlane.f32.xlu0 %v1176_v16  ;;  %v1170_v18 = vsel %vm654_vm3, %v6301_v17, 0.0 }
 0x816   :  { %1171 = vadd.xlane.f32.xlu0 %v1170_v18 }
 0x821   :  { %1187 = vrot.lane.b32.xlu1 %v7151_v24, %s6795_s6  ;;  %v1302_v24 = vrot.slane %v7137_v12, 4  ;;  %v7312_v12 = vrot.slane %v586_v30, 4 }
 0x823   :  { %v7305_v38 = vsel %vm696_vm2, %v1302_v24, %v7298_v36  ;;  %v7321_v56 = vsel %vm696_vm2, %v1298_v54, %v7312_v12 }
 0x824   :  { %v1312_v55 = vsel %vm593_vm1, %v7305_v38, 0 }
 0x82c   :  { %1189 = vrot.lane.b32.xlu0 %v7165_v40, %s6795_s6 }
 0x89d   :  { %v1175_v19 = vpop.xlane.xlu1 %1174 }
 0x89f   :  { %v1178_v21 = vpop.xlane.xlu0 %1177 }
 0x8a0   :  { %6302 = vrcp.f32 %v1178_v21 }
 0x8a1   :  { %v1188_v28 = vpop.permute.xlu1 %1187  ;;  %6304 = vrcp.f32 %v1175_v19 }
 0x8a2   :  { %5650 = vmatprep.subr.bf16.mxu1 %v1188_v28 }
 0x8a3   :  { %v1172_v31 = vpop.xlane.xlu0 %1171  ;;  %5651 = vmatpush3.bf16.msra.mxu1 %v1188_v28 }
 0x8a4   :  { %6306 = vrcp.f32 %v1172_v31 }
 0x8a7   :  { %v1190_v44 = vpop.permute.xlu0 %1189 }
 0x8a8   :  { %5945 = vmatprep.subr.msk.bf16.mxu1 %vm696_vm2, %v1190_v44  ;;  %v1199_v40 = vsel %vm696_vm2, %v1190_v44, 0 }
 0x8a9   :  { %5653 = vmatpush3.bf16.msra.mxu1 %v1199_v40 }
 0x8aa   :  { %5946 = vmatprep.subr.msk.bf16.mxu1 %vm593_vm1, %v7305_v38  ;;  %v6303_v43 = vpop.eup %6302 }
 0x8ab   :  { %v6305_v47 = vpop.eup %6304  ;;  %v1184_v29 = vmul.f32 %v6303_v43, %v6299_v15 }
 0x8ac   :  { %v1183_v49 = vmul.f32 %v6305_v47, %v6297_v14 }
 0x8ad   :  { %v1186_v53 = vpack.c.bf16 %v1184_v29, %v1184_v29 }
 0x8ae   :  { %v6307_v22 = vpop.eup %6306 }
 0x8af   :  { %v1182_v32 = vmul.f32 %v6307_v22, %v6301_v17 }
 0x8b1   :  { %v1185_v51 = vpack.c.bf16 %v1183_v49, %v1182_v32 }
 0x8b3   :  { %5654 = vmatprep.mubr.msk.bf16.mxu1 %vm654_vm3, %v1185_v51 }
 0x8b4   :  { %5655 = vmatmul.mubr.msk.bf16.vlgmr.msra.gmra.mrb[28].mxu1 %vm654_vm3, %v1186_v53 }
 0x8b5   :  { %5659 = vmatpush3.bf16.xpose.msra.mxu1 %v1312_v55  ;;  %5662 = vmatprep.mubr.msk.bf16.mxu1 %vm593_vm1, %v7321_v56 }
 0x8b6   :  { %5947 = vmatprep.subr.msk.bf16.mxu1 %vm593_vm1, %v7298_v36 }
 0x8bd   :  { %5661 = vmatpush3.bf16.xpose.msra.mxu1 %v1315_v9 }
 0x8c4   :  { %5663 = vmatmul.mubr.msk.bf16.vlgmr.msra.gmra.mrb[32].mxu1 %vm593_vm1, %v7312_v12 }
 0x987   :  { %v7331_v20 = vpop.f32.mrb[28].mxu1 }
 0x988   :  { %v7333_v25 = vpop.f32.mrb[29].mxu1 }
 0x989   :  { %v5657_v30 = vpop.f32.mrb[30].mxu1 }
 0x98a   :  { %v7335_v57 = vpop.f32.mrb[31].mxu1 }
 0x98b   :  { %v6020_v58 = vpack.i.bf16 %v7335_v57, %v7333_v25 }
 0x997   :  { %v5664_v61 = vpop.f32.mrb[32].mxu1 }
 0x998   :  { %v1351_v60 = vpop.f32.mrb[33].mxu1  ;;  %v1371_v14 = vsel %vm654_vm3, %v5664_v61, -inf }
 0x999   :  { %v5665_v62 = vpop.f32.mrb[34].mxu1  ;;  %v1365_v3 = vsel %vm654_vm3, %v1351_v60, -inf }
 0x99a   :  { %1366 = vmax.xlane.f32.xlu1 %v1365_v3  ;;  %v1354_v8 = vpop.f32.mrb[35].mxu1 }
 0x99b   :  { %v1368_v13 = vsel %vm654_vm3, %v1354_v8, -inf }
 0x99c   :  { %1369 = vmax.xlane.f32.xlu0 %v1368_v13 }
 0x99e   :  { %1372 = vmax.xlane.f32.xlu1 %v1371_v14 }
 0xa27   :  { %v1367_v59 = vpop.xlane.xlu1 %1366 }
 0xa28   :  { %v1374_v15 = vsub.f32 %v1351_v60, %v1367_v59 }
 0xa29   :  { %v1370_v16 = vpop.xlane.xlu0 %1369 }
 0xa2a   :  { %v1377_v17 = vmul.f32 1.442695, %v1374_v15  ;;  %v1375_v18 = vsub.f32 %v1354_v8, %v1370_v16 }
 0xa2b   :  { %v1373_v19 = vpop.xlane.xlu1 %1372 }
 0xa2c   :  { %6308 = vpow2.f32 %v1377_v17  ;;  %v1379_v21 = vmul.f32 1.442695, %v1375_v18  ;;  %v1376_v28 = vsub.f32 %v5664_v61, %v1373_v19 }
 0xa2e   :  { %6310 = vpow2.f32 %v1379_v21  ;;  %v1381_v31 = vmul.f32 1.442695, %v1376_v28 }
 0xa30   :  { %6312 = vpow2.f32 %v1381_v31 }
 0xa36   :  { %v6309_v44 = vpop.eup %6308 }
 0xa37   :  { %v1383_v24 = vsel %vm654_vm3, %v6309_v44, 0.0 }
 0xa38   :  { %v6311_v40 = vpop.eup %6310  ;;  %1384 = vadd.xlane.f32.xlu0 %v1383_v24 }
 0xa39   :  { %v1386_v43 = vsel %vm654_vm3, %v6311_v40, 0.0 }
 0xa3a   :  { %v6313_v47 = vpop.eup %6312  ;;  %1387 = vadd.xlane.f32.xlu1 %v1386_v43 }
 0xa3b   :  { %v1389_v22 = vsel %vm654_vm3, %v6313_v47, 0.0 }
 0xa3c   :  { %1390 = vadd.xlane.f32.xlu0 %v1389_v22 }
 0xa4b   :  { %1466 = vrot.lane.b32.xlu1 %v7305_v38, %s6802_s0 }
 0xa4f   :  { %1462 = vrot.lane.b32.xlu1 %v7321_v56, %s6802_s0 }
 0xa52   :  { %1468 = vrot.lane.b32.xlu0 %v7298_v36, %s6802_s0 }
 0xa53   :  { %1464 = vrot.lane.b32.xlu1 %v7312_v12, %s6802_s0 }
 0xac5   :  { %v1385_v29 = vpop.xlane.xlu0 %1384 }
 0xac6   :  { %6314 = vrcp.f32 %v1385_v29 }
 0xac7   :  { %v1388_v32 = vpop.xlane.xlu1 %1387 }
 0xac8   :  { %6316 = vrcp.f32 %v1388_v32 }
 0xac9   :  { %v1391_v49 = vpop.xlane.xlu0 %1390 }
 0xaca   :  { %6318 = vrcp.f32 %v1391_v49 }
 0xacb   :  { %v1467_v51 = vpop.permute.xlu1 %1466 }
 0xacc   :  { %5949 = vmatprep.subr.msk.bf16.mxu0 %vm593_vm1, %v1467_v51  ;;  %v1477_v8 = vsel %vm593_vm1, %v1467_v51, 0 }
 0xacd   :  { %v1469_v13 = vpop.permute.xlu0 %1468 }
 0xace   :  { %v1480_v14 = vsel %vm593_vm1, %v1469_v13, 0 }
 0xacf   :  { %v1463_v3 = vpop.permute.xlu1 %1462 }
 0xad0   :  { %v6315_v53 = vpop.eup %6314 }
 0xad1   :  { %v1395_v55 = vmul.f32 %v6315_v53, %v6309_v44 }
 0xad2   :  { %v6317_v54 = vpop.eup %6316 }
 0xad3   :  { %v1396_v9 = vmul.f32 %v6317_v54, %v6311_v40  ;;  %v1465_v59 = vpop.permute.xlu1 %1464 }
 0xad4   :  { %v6319_v30 = vpop.eup %6318 }
 0xad5   :  { %v1398_v61 = vpack.c.bf16 %v1396_v9, %v1395_v55  ;;  %v1397_v60 = vmul.f32 %v6319_v30, %v6313_v47 }
 0xad7   :  { %5670 = vmatprep.mubr.msk.bf16.mxu0 %vm654_vm3, %v1398_v61  ;;  %v1399_v62 = vpack.c.bf16 %v1397_v60, %v1397_v60 }
 0xad9   :  { %5671 = vmatmul.mubr.msk.bf16.vlgmr.msra.gmra.mrb[24].mxu0 %vm654_vm3, %v1399_v62 }
 0xada   :  { %5675 = vmatpush3.bf16.xpose.msra.mxu0 %v1477_v8  ;;  %5678 = vmatprep.mubr.msk.bf16.mxu0 %vm593_vm1, %v1463_v3 }
 0xadb   :  { %5950 = vmatprep.subr.msk.bf16.mxu0 %vm593_vm1, %v1469_v13 }
 0xae2   :  { %5677 = vmatpush3.bf16.xpose.msra.mxu0 %v1480_v14 }
 0xae9   :  { %5679 = vmatmul.mubr.msk.bf16.vlgmr.msra.gmra.mrb[28].mxu0 %vm593_vm1, %v1465_v59 }
 0xbac   :  { %v7361_v15 = vpop.f32.mrb[24].mxu0 }
 0xbad   :  { %v7363_v16 = vpop.f32.mrb[25].mxu0 }
 0xbae   :  { %v5673_v17 = vpop.f32.mrb[26].mxu0 }
 0xbaf   :  { %v7365_v18 = vpop.f32.mrb[27].mxu0 }
 0xbbc   :  { %v5680_v19 = vpop.f32.mrb[28].mxu0 }
 0xbbd   :  { %v1516_v21 = vpop.f32.mrb[29].mxu0  ;;  %v1536_v40 = vsel %vm654_vm3, %v5680_v19, -inf }
 0xbbe   :  { %v5681_v28 = vpop.f32.mrb[30].mxu0  ;;  %v1530_v31 = vsel %vm654_vm3, %v1516_v21, -inf }
 0xbbf   :  { %1531 = vmax.xlane.f32.xlu0 %v1530_v31  ;;  %v1519_v44 = vpop.f32.mrb[31].mxu0 }
 0xbc0   :  { %v1533_v24 = vsel %vm654_vm3, %v1519_v44, -inf }
 0xbc1   :  { %1534 = vmax.xlane.f32.xlu1 %v1533_v24 }
 0xbc3   :  { %1537 = vmax.xlane.f32.xlu0 %v1536_v40 }
 0xbd2   :  { %1565 = vrot.lane.b32.xlu1 %v7268_v33, %s6802_s0 }
 0xc4c   :  { %v1532_v43 = vpop.xlane.xlu0 %1531 }
 0xc4d   :  { %v1539_v22 = vsub.f32 %v1516_v21, %v1532_v43 }
 0xc4e   :  { %v1535_v47 = vpop.xlane.xlu1 %1534 }
 0xc4f   :  { %v1540_v29 = vsub.f32 %v1519_v44, %v1535_v47  ;;  %v1542_v54 = vmul.f32 1.442695, %v1539_v22 }
 0xc50   :  { %v1538_v32 = vpop.xlane.xlu0 %1537 }
 0xc51   :  { %v1544_v49 = vmul.f32 1.442695, %v1540_v29  ;;  %v1541_v51 = vsub.f32 %v5680_v19, %v1538_v32 }
 0xc52   :  { %v1566_v53 = vpop.permute.xlu1 %1565 }
 0xc53   :  { %6320 = vpow2.f32 %v1544_v49  ;;  %v1546_v55 = vmul.f32 1.442695, %v1541_v51  ;;  %5682 = vmatprep.subr.bf16.mxu1 %v1566_v53 }
 0xc54   :  { %5683 = vmatpush3.bf16.msra.mxu1 %v1566_v53 }
 0xc55   :  { %6322 = vpow2.f32 %v1546_v55 }
 0xc56   :  { %6324 = vpow2.f32 %v1542_v54 }
 0xc5d   :  { %v6321_v9 = vpop.eup %6320 }
 0xc5e   :  { %v1551_v30 = vsel %vm654_vm3, %v6321_v9, 0.0 }
 0xc5f   :  { %v6323_v61 = vpop.eup %6322  ;;  %1552 = vadd.xlane.f32.xlu1 %v1551_v30 }
 0xc60   :  { %v1554_v60 = vsel %vm654_vm3, %v6323_v61, 0.0  ;;  %v6325_v62 = vpop.eup %6324 }
 0xc61   :  { %1555 = vadd.xlane.f32.xlu0 %v1554_v60  ;;  %v1548_v3 = vsel %vm654_vm3, %v6325_v62, 0.0 }
 0xc65   :  { %1549 = vadd.xlane.f32.xlu0 %v1548_v3 }
 0xc70   :  { %1631 = vrot.lane.b32.xlu1 %v7305_v38, %s6787_s25 }
 0xc74   :  { %1633 = vrot.lane.b32.xlu1 %v7298_v36, %s6787_s25 }
 0xc78   :  { %1629 = vrot.lane.b32.xlu1 %v7312_v12, %s6787_s25 }
 0xc7b   :  { %1567 = vrot.lane.b32.xlu0 %v7262_v23, %s6802_s0 }
 0xc7f   :  { %1627 = vrot.lane.b32.xlu0 %v7321_v56, %s6787_s25 }
 0xcec   :  { %v1553_v8 = vpop.xlane.xlu1 %1552 }
 0xcee   :  { %v1556_v13 = vpop.xlane.xlu0 %1555 }
 0xcef   :  { %6326 = vrcp.f32 %v1556_v13 }
 0xcf0   :  { %6328 = vrcp.f32 %v1553_v8  ;;  %v1632_v19 = vpop.permute.xlu1 %1631 }
 0xcf1   :  { %v1642_v29 = vsel %vm593_vm1, %v1632_v19, 0 }
 0xcf2   :  { %v1550_v14 = vpop.xlane.xlu0 %1549 }
 0xcf3   :  { %6330 = vrcp.f32 %v1550_v14 }
 0xcf4   :  { %v1634_v32 = vpop.permute.xlu1 %1633 }
 0xcf5   :  { %v1645_v49 = vsel %vm593_vm1, %v1634_v32, 0 }
 0xcf6   :  { %v1568_v59 = vpop.permute.xlu0 %1567 }
 0xcf7   :  { %5951 = vmatprep.subr.msk.bf16.mxu1 %vm696_vm2, %v1568_v59  ;;  %v1577_v17 = vsel %vm696_vm2, %v1568_v59, 0 }
 0xcf8   :  { %5685 = vmatpush3.bf16.msra.mxu1 %v1577_v17  ;;  %v1630_v51 = vpop.permute.xlu1 %1629 }
 0xcf9   :  { %5952 = vmatprep.subr.msk.bf16.mxu1 %vm593_vm1, %v1632_v19  ;;  %v6327_v21 = vpop.eup %6326 }
 0xcfa   :  { %v6329_v28 = vpop.eup %6328  ;;  %v1562_v44 = vmul.f32 %v6327_v21, %v6323_v61  ;;  %v1628_v22 = vpop.permute.xlu0 %1627 }
 0xcfb   :  { %v1561_v40 = vmul.f32 %v6329_v28, %v6321_v9 }
 0xcfc   :  { %v1564_v47 = vpack.c.bf16 %v1562_v44, %v1562_v44 }
 0xcfd   :  { %v6331_v31 = vpop.eup %6330 }
 0xcfe   :  { %v1560_v24 = vmul.f32 %v6331_v31, %v6325_v62 }
 0xd00   :  { %v1563_v43 = vpack.c.bf16 %v1561_v40, %v1560_v24 }
 0xd02   :  { %5686 = vmatprep.mubr.msk.bf16.mxu1 %vm654_vm3, %v1563_v43 }
 0xd03   :  { %5687 = vmatmul.mubr.msk.bf16.vlgmr.msra.gmra.mrb[36].mxu1 %vm654_vm3, %v1564_v47 }
 0xd04   :  { %5691 = vmatpush3.bf16.xpose.msra.mxu1 %v1642_v29  ;;  %5694 = vmatprep.mubr.msk.bf16.mxu1 %vm593_vm1, %v1628_v22 }
 0xd05   :  { %5953 = vmatprep.subr.msk.bf16.mxu1 %vm593_vm1, %v1634_v32 }
 0xd0c   :  { %5693 = vmatpush3.bf16.xpose.msra.mxu1 %v1645_v49 }
 0xd13   :  { %5695 = vmatmul.mubr.msk.bf16.vlgmr.msra.gmra.mrb[40].mxu1 %vm593_vm1, %v1630_v51 }
 0xdd6   :  { %v7395_v53 = vpop.f32.mrb[36].mxu1 }
 0xdd7   :  { %v7397_v54 = vpop.f32.mrb[37].mxu1 }
 0xdd8   :  { %v6025_v55 = vpack.i.bf16 %v7397_v54, %v7225_v5  ;;  %v5689_v9 = vpop.f32.mrb[38].mxu1 }
 0xdd9   :  { %v7401_v30 = vpop.f32.mrb[39].mxu1 }
 0xdda   :  { %v6040_v61 = vpack.i.bf16 %v7395_v53, %v7401_v30 }
 0xde6   :  { %v5696_v60 = vpop.f32.mrb[40].mxu1 }
 0xde7   :  { %v1681_v62 = vpop.f32.mrb[41].mxu1  ;;  %v1701_v59 = vsel %vm654_vm3, %v5696_v60, -inf }
 0xde8   :  { %v5697_v3 = vpop.f32.mrb[42].mxu1  ;;  %v1695_v8 = vsel %vm654_vm3, %v1681_v62, -inf }
 0xde9   :  { %1696 = vmax.xlane.f32.xlu0 %v1695_v8  ;;  %v1684_v13 = vpop.f32.mrb[43].mxu1 }
 0xdea   :  { %v1698_v14 = vsel %vm654_vm3, %v1684_v13, -inf }
 0xdeb   :  { %1699 = vmax.xlane.f32.xlu1 %v1698_v14 }
 0xded   :  { %1702 = vmax.xlane.f32.xlu0 %v1701_v59 }
 0xdfc   :  { %1730 = vrot.lane.b32.xlu1 %v7268_v33, %s6787_s25 }
 0xe76   :  { %v1697_v17 = vpop.xlane.xlu0 %1696 }
 0xe77   :  { %v1704_v21 = vsub.f32 %v1681_v62, %v1697_v17 }
 0xe78   :  { %v1700_v19 = vpop.xlane.xlu1 %1699 }
 0xe79   :  { %v1705_v28 = vsub.f32 %v1684_v13, %v1700_v19  ;;  %v1707_v43 = vmul.f32 1.442695, %v1704_v21 }
 0xe7a   :  { %v1703_v31 = vpop.xlane.xlu0 %1702 }
 0xe7b   :  { %v1709_v44 = vmul.f32 1.442695, %v1705_v28  ;;  %v1706_v24 = vsub.f32 %v5696_v60, %v1703_v31 }
 0xe7c   :  { %v1731_v40 = vpop.permute.xlu1 %1730 }
 0xe7d   :  { %6332 = vpow2.f32 %v1709_v44  ;;  %v1711_v47 = vmul.f32 1.442695, %v1706_v24  ;;  %5698 = vmatprep.subr.bf16.mxu0 %v1731_v40 }
 0xe7e   :  { %5699 = vmatpush3.bf16.msra.mxu0 %v1731_v40 }
 0xe7f   :  { %6334 = vpow2.f32 %v1711_v47 }
 0xe80   :  { %6336 = vpow2.f32 %v1707_v43 }
 0xe87   :  { %v6333_v22 = vpop.eup %6332 }
 0xe88   :  { %v1716_v29 = vsel %vm654_vm3, %v6333_v22, 0.0 }
 0xe89   :  { %v6335_v32 = vpop.eup %6334  ;;  %1717 = vadd.xlane.f32.xlu1 %v1716_v29 }
 0xe8a   :  { %v1719_v49 = vsel %vm654_vm3, %v6335_v32, 0.0  ;;  %v6337_v51 = vpop.eup %6336 }
 0xe8b   :  { %1720 = vadd.xlane.f32.xlu0 %v1719_v49  ;;  %v1713_v9 = vsel %vm654_vm3, %v6337_v51, 0.0 }
 0xe8f   :  { %1714 = vadd.xlane.f32.xlu0 %v1713_v9 }
 0xe9a   :  { %1796 = vrot.lane.b32.xlu1 %v7305_v38, %s6795_s6 }
 0xe9e   :  { %1798 = vrot.lane.b32.xlu1 %v7298_v36, %s6795_s6 }
 0xea2   :  { %1794 = vrot.lane.b32.xlu1 %v7312_v12, %s6795_s6 }
 0xea5   :  { %1732 = vrot.lane.b32.xlu0 %v7262_v23, %s6787_s25 }
 0xea9   :  { %1792 = vrot.lane.b32.xlu0 %v7321_v56, %s6795_s6 }
 0xf16   :  { %v1718_v60 = vpop.xlane.xlu1 %1717 }
 0xf18   :  { %v1721_v62 = vpop.xlane.xlu0 %1720 }
 0xf19   :  { %6338 = vrcp.f32 %v1721_v62 }
 0xf1a   :  { %6340 = vrcp.f32 %v1718_v60  ;;  %v1797_v38 = vpop.permute.xlu1 %1796 }
 0xf1b   :  { %v1807_v31 = vsel %vm593_vm1, %v1797_v38, 0 }
 0xf1c   :  { %v1715_v3 = vpop.xlane.xlu0 %1714 }
 0xf1d   :  { %6342 = vrcp.f32 %v1715_v3 }
 0xf1e   :  { %v1799_v44 = vpop.permute.xlu1 %1798 }
 0xf1f   :  { %v1810_v24 = vsel %vm593_vm1, %v1799_v44, 0 }
 0xf20   :  { %v1733_v8 = vpop.permute.xlu0 %1732 }
 0xf21   :  { %5954 = vmatprep.subr.msk.bf16.mxu0 %vm696_vm2, %v1733_v8  ;;  %v1742_v36 = vsel %vm696_vm2, %v1733_v8, 0 }
 0xf22   :  { %5701 = vmatpush3.bf16.msra.mxu0 %v1742_v36  ;;  %v1795_v40 = vpop.permute.xlu1 %1794 }
 0xf23   :  { %5955 = vmatprep.subr.msk.bf16.mxu0 %vm593_vm1, %v1797_v38  ;;  %v6339_v12 = vpop.eup %6338 }
 0xf24   :  { %v6341_v13 = vpop.eup %6340  ;;  %v1727_v59 = vmul.f32 %v6339_v12, %v6335_v32  ;;  %v1793_v28 = vpop.permute.xlu0 %1792 }
 0xf25   :  { %v1726_v17 = vmul.f32 %v6341_v13, %v6333_v22 }
 0xf26   :  { %v1729_v21 = vpack.c.bf16 %v1727_v59, %v1727_v59 }
 0xf27   :  { %v6343_v14 = vpop.eup %6342 }
 0xf28   :  { %v1725_v56 = vmul.f32 %v6343_v14, %v6337_v51 }
 0xf2a   :  { %v1728_v19 = vpack.c.bf16 %v1726_v17, %v1725_v56 }
 0xf2c   :  { %5702 = vmatprep.mubr.msk.bf16.mxu0 %vm654_vm3, %v1728_v19 }
 0xf2d   :  { %5703 = vmatmul.mubr.msk.bf16.vlgmr.msra.gmra.mrb[32].mxu0 %vm654_vm3, %v1729_v21 }
 0xf2e   :  { %5707 = vmatpush3.bf16.xpose.msra.mxu0 %v1807_v31  ;;  %5710 = vmatprep.mubr.msk.bf16.mxu0 %vm593_vm1, %v1793_v28 }
 0xf2f   :  { %5956 = vmatprep.subr.msk.bf16.mxu0 %vm593_vm1, %v1799_v44 }
 0xf36   :  { %5709 = vmatpush3.bf16.xpose.msra.mxu0 %v1810_v24 }
 0xf3d   :  { %5711 = vmatmul.mubr.msk.bf16.vlgmr.msra.gmra.mrb[36].mxu0 %vm593_vm1, %v1795_v40 }
 0xf3e   :  { %2339 = vmatprep.mubr.bf16.mxu0 %v6799_v0 }
0x1000   :  { %v7434_v43 = vpop.f32.mrb[32].mxu0 }
0x1001   :  { %v1778_v47 = vpop.f32.mrb[33].mxu0 }
0x1002   :  { %v6030_v22 = vpack.i.bf16 %v1778_v47, %v7277_v50  ;;  %v5705_v29 = vpop.f32.mrb[34].mxu0 }
0x1003   :  { %v7437_v32 = vpop.f32.mrb[35].mxu0 }
0x1004   :  { %v6045_v49 = vpack.i.bf16 %v7434_v43, %v7437_v32 }
0x1010   :  { %v5712_v51 = vpop.f32.mrb[36].mxu0 }
0x1011   :  { %v1846_v9 = vpop.f32.mrb[37].mxu0  ;;  %v1866_v36 = vsel %vm654_vm3, %v5712_v51, -inf }
0x1012   :  { %v5713_v60 = vpop.f32.mrb[38].mxu0  ;;  %v1860_v62 = vsel %vm654_vm3, %v1846_v9, -inf }
0x1013   :  { %1861 = vmax.xlane.f32.xlu0 %v1860_v62  ;;  %v1849_v3 = vpop.f32.mrb[39].mxu0 }
0x1014   :  { %v1863_v8 = vsel %vm654_vm3, %v1849_v3, -inf }
0x1015   :  { %1864 = vmax.xlane.f32.xlu1 %v1863_v8 }
0x1017   :  { %1867 = vmax.xlane.f32.xlu0 %v1866_v36 }
0x10a0   :  { %v1862_v50 = vpop.xlane.xlu0 %1861 }
0x10a1   :  { %v1869_v12 = vsub.f32 %v1846_v9, %v1862_v50 }
0x10a2   :  { %v1865_v38 = vpop.xlane.xlu1 %1864 }
0x10a3   :  { %v1870_v13 = vsub.f32 %v1849_v3, %v1865_v38  ;;  %v1872_v17 = vmul.f32 1.442695, %v1869_v12  ;;  %v6133_v12 = vld [vmem:[#allocation7 + $0x8] sm:$0xff]  }
0x10a4   :  { %v1868_v14 = vpop.xlane.xlu0 %1867 }
0x10a5   :  { %v1874_v59 = vmul.f32 1.442695, %v1870_v13  ;;  %v1871_v56 = vsub.f32 %v5712_v51, %v1868_v14  ;;  %v6134_v13 = vld [vmem:[#allocation7 + $0x10] sm:$0xff]   ;;  %v6135_v14 = vld [vmem:[#allocation7 + $0x18] sm:$0xff]  }
0x10a7   :  { %6344 = vpow2.f32 %v1874_v59  ;;  %v1876_v19 = vmul.f32 1.442695, %v1871_v56  ;;  %v6136_v59 = vld [vmem:[#allocation7 + $0x20] sm:$0xff]   ;;  %v6137_v56 = vld [vmem:[#allocation7 + $0x28] sm:$0xff]  }
0x10a9   :  { %6346 = vpow2.f32 %v1876_v19  ;;  %v6139_v19 = vld [vmem:[#allocation7 + $0x38] sm:$0xff]  }
0x10aa   :  { %6348 = vpow2.f32 %v1872_v17  ;;  %v6138_v17 = vld [vmem:[#allocation7 + $0x30] sm:$0xff]  }
0x10b1   :  { %v6345_v21 = vpop.eup %6344 }
0x10b2   :  { %v1881_v28 = vsel %vm654_vm3, %v6345_v21, 0.0 }
0x10b3   :  { %v6347_v31 = vpop.eup %6346  ;;  %1882 = vadd.xlane.f32.xlu1 %v1881_v28 }
0x10b4   :  { %v1884_v44 = vsel %vm654_vm3, %v6347_v31, 0.0  ;;  %v6349_v24 = vpop.eup %6348 }
0x10b5   :  { %1885 = vadd.xlane.f32.xlu0 %v1884_v44  ;;  %v1878_v40 = vsel %vm654_vm3, %v6349_v24, 0.0 }
0x10b9   :  { %1879 = vadd.xlane.f32.xlu0 %v1878_v40 }
0x10c4   :  { %1895 = vrot.lane.b32.xlu1 %v7268_v33, %s6795_s6 }
0x10c8   :  { %6011 = vrot.lane.b32.xlu1 %v6010_v11, %s6795_s6 }
0x10cc   :  { %6016 = vrot.lane.b32.xlu1 %v6015_v37, %s6787_s25 }
0x10cf   :  { %1897 = vrot.lane.b32.xlu0 %v7262_v23, %s6795_s6 }
0x10d0   :  { %6026 = vrot.lane.b32.xlu1 %v6025_v55, %s6795_s6 }
0x10d3   :  { %6021 = vrot.lane.b32.xlu0 %v6020_v58, %s6802_s0 }
0x10d7   :  { %6031 = vrot.lane.b32.xlu0 %v6030_v22, %s6787_s25 }
0x10db   :  { %6041 = vrot.lane.b32.xlu0 %v6040_v61, %s6795_s6 }
0x1140   :  { %v1883_v7 = vpop.xlane.xlu1 %1882 }
0x1142   :  { %v1886_v10 = vpop.xlane.xlu0 %1885 }
0x1143   :  { %6350 = vrcp.f32 %v1886_v10 }
0x1144   :  { %v1896_v11 = vpop.permute.xlu1 %1895  ;;  %6352 = vrcp.f32 %v1883_v7 }
0x1145   :  { %5714 = vmatprep.subr.bf16.mxu1 %v1896_v11 }
0x1146   :  { %v1880_v5 = vpop.xlane.xlu0 %1879  ;;  %5715 = vmatpush3.bf16.msra.mxu1 %v1896_v11  ;;  %v7503_v11 = vld [vmem:[#allocation8] ss:$0 sm:$0xff] }
0x1147   :  { %6354 = vrcp.f32 %v1880_v5 }
0x1148   :  { %v6012_v23 = vpop.permute.xlu1 %6011 }
0x1149   :  { %v6014_v33 = vunpack.i.h.bf16 %v6012_v23  ;;  %v6013_v52 = vunpack.i.l.bf16 %v6012_v23 }
0x114a   :  { %v1898_v39 = vpop.permute.xlu0 %1897 }
0x114b   :  { %5957 = vmatprep.subr.msk.bf16.mxu1 %vm696_vm2, %v1898_v39  ;;  %v1907_v37 = vsel %vm696_vm2, %v1898_v39, 0  ;;  %v1286_v54 = vsel %vm593_vm1, %v7223_v4, %v6014_v33  ;;  %v1285_v55 = vsel %vm593_vm1, %v7221_v2, %v6013_v52  ;;  %v6132_v2 = vld [vmem:[#allocation7] sm:$0xff]  }
0x114c   :  { %5717 = vmatpush3.bf16.msra.mxu1 %v1907_v37  ;;  %v6017_v25 = vpop.permute.xlu1 %6016 }
0x114d   :  { %v6019_v57 = vunpack.i.h.bf16 %v6017_v25  ;;  %v6018_v58 = vunpack.i.l.bf16 %v6017_v25  ;;  %5722 = vmatprep.subr.bf16.mxu1 %v6800_v1  ;;  %v6351_v53 = vpop.eup %6350 }
0x114e   :  { %v6022_v30 = vpop.permute.xlu0 %6021  ;;  %v6353_v61 = vpop.eup %6352  ;;  %v1892_v3 = vmul.f32 %v6351_v53, %v6347_v31 }
0x114f   :  { %v1289_v47 = vsel %vm1288_vm4, %v1285_v55, %v6018_v58  ;;  %v1290_v22 = vsel %vm1288_vm4, %v1286_v54, %v6019_v57  ;;  %v6024_v29 = vunpack.i.h.bf16 %v6022_v30  ;;  %v6023_v51 = vunpack.i.l.bf16 %v6022_v30 }
0x1150   :  { %v1891_v4 = vmul.f32 %v6353_v61, %v6345_v21  ;;  %v1894_v38 = vpack.c.bf16 %v1892_v3, %v1892_v3  ;;  %v6027_v37 = vpop.permute.xlu1 %6026 }
0x1151   :  { %v6355_v9 = vpop.eup %6354  ;;  %v1293_v60 = vsel %vm1292_vm5, %v1289_v47, %v6023_v51  ;;  %v1294_v62 = vsel %vm1292_vm5, %v1290_v22, %v6024_v29  ;;  %v6029_v43 = vunpack.i.h.bf16 %v6027_v37  ;;  %v6028_v32 = vunpack.i.l.bf16 %v6027_v37 }
0x1152   :  { %v1890_v8 = vmul.f32 %v6355_v9, %v6349_v24  ;;  %v2002_v36 = vpack.c.bf16 %v1294_v62, %v1293_v60  ;;  %v6032_v25 = vpop.permute.xlu0 %6031 }
0x1153   :  { %v6033_v57 = vunpack.i.l.bf16 %v6032_v25  ;;  %v1993_v58 = vsel %vm593_vm1, %v7363_v16, %v6029_v43  ;;  %v1287_v53 = vsel %vm593_vm1, %v7219_v63, %v6028_v32  ;;  %v6146_v43 = vld [vmem:[%s8332_s8 + $0x20] ss:$8 sps:$4 sm:$0xff]   ;;  %v6151_v32 = vld [vmem:[%s8332_s8 + $0x34] ss:$8 sps:$4 sm:$0xff]  }
0x1154   :  { %v1893_v50 = vpack.c.bf16 %v1891_v4, %v1890_v8 }
0x1156   :  { %5718 = vmatprep.mubr.msk.bf16.mxu1 %vm654_vm3, %v1893_v50  ;;  %v6042_v54 = vpop.permute.xlu0 %6041 }
0x1157   :  { %5719 = vmatmul.mubr.msk.bf16.vlgmr.msra.gmra.mrb[44].mxu1 %vm654_vm3, %v1894_v38  ;;  %v6044_v61 = vunpack.i.h.bf16 %v6042_v54  ;;  %v6043_v47 = vunpack.i.l.bf16 %v6042_v54  ;;  %v6155_v54 = vld [vmem:[%s8332_s8 + $0x50] ss:$8 sps:$4 sm:$0xff]  }
0x1158   :  { %5723 = vmatpush3.bf16.msra.mxu1 %v6132_v2  ;;  %5738 = vmatprep.mubr.msk.bf16.mxu1 %vm6801_vm0, %v6800_v1 }
0x1159   :  { %5724 = vmatprep.subr.bf16.mxu1 %v6800_v1  ;;  %v1995_v63 = vsel %vm593_vm1, %v7361_v15, %v6044_v61  ;;  %v1994_v8 = vsel %vm593_vm1, %v7365_v18, %v6043_v47  ;;  %v6140_v15 = vld [vmem:[%s8332_s8] ss:$8 sps:$4 sm:$0xff]   ;;  %v6142_v18 = vld [vmem:[%s8332_s8 + $0x4] ss:$8 sps:$4 sm:$0xff]   ;;  %v6161_v61 = vld [vmem:[%s8332_s8 + $0x70] ss:$8 sps:$4 sm:$0xff]  }
0x115a   :  { %2307 = vmatprep.subr.bf16.mxu0 %v6142_v18 }
0x115b   :  { %2308 = vmatpush1.bf16.msra.mxu0 %v6140_v15 }
0x115c   :  { %5725 = vmatpush3.bf16.msra.mxu1 %v6133_v12 }
0x115d   :  { %5726 = vmatprep.subr.bf16.mxu1 %v6800_v1 }
0x1160   :  { %5727 = vmatpush3.bf16.msra.mxu1 %v6134_v13 }
0x1161   :  { %5728 = vmatprep.subr.bf16.mxu1 %v6800_v1 }
0x1164   :  { %5729 = vmatpush3.bf16.msra.mxu1 %v6135_v14 }
0x1165   :  { %5730 = vmatprep.subr.bf16.mxu1 %v6800_v1 }
0x1168   :  { %5731 = vmatpush3.bf16.msra.mxu1 %v6136_v59 }
0x1169   :  { %5732 = vmatprep.subr.bf16.mxu1 %v6800_v1 }
0x116c   :  { %5733 = vmatpush3.bf16.msra.mxu1 %v6137_v56 }
0x116d   :  { %5734 = vmatprep.subr.bf16.mxu1 %v6800_v1 }
0x1170   :  { %5735 = vmatpush3.bf16.msra.mxu1 %v6138_v17 }
0x1171   :  { %5736 = vmatprep.subr.bf16.mxu1 %v6800_v1 }
0x1174   :  { %5737 = vmatpush3.bf16.msra.mxu1 %v6139_v19 }
0x1177   :  { %5739 = vmatmul.mubr.bf16.vlgmr.msra.gmra.mrb[48].mxu1 %v2002_v36 }
0x1178   :  { %5742 = vmatprep.mubr.msk.bf16.mxu1 %vm6801_vm0, %v6800_v1 }
0x122a   :  { %v5720_v21 = vpop.f32.mrb[44].mxu1 }
0x122b   :  { %v1943_v28 = vpop.f32.mrb[45].mxu1 }
0x122c   :  { %v6035_v31 = vpack.i.bf16 %v1943_v28, %v7331_v20  ;;  %v5721_v44 = vpop.f32.mrb[46].mxu1 }
0x122d   :  { %v1946_v24 = vpop.f32.mrb[47].mxu1 }
0x122e   :  { %v6050_v40 = vpack.i.bf16 %v5720_v21, %v1946_v24  ;;  %6036 = vrot.lane.b32.xlu1 %v6035_v31, %s6802_s0 }
0x1230   :  { %6051 = vrot.lane.b32.xlu0 %v6050_v40, %s6802_s0 }
0x1232   :  { %6046 = vrot.lane.b32.xlu1 %v6045_v49, %s6787_s25  ;;  %v6034_v49 = vunpack.i.h.bf16 %v6032_v25 }
0x1234   :  { %v1996_v22 = vsel %vm1288_vm4, %v1993_v58, %v6034_v49  ;;  %v6149_v49 = vld [vmem:[%s8332_s8 + $0x30] ss:$8 sps:$4 sm:$0xff]   ;;  %v6154_v58 = vld [vmem:[%s8332_s8 + $0x44] ss:$8 sps:$4 sm:$0xff]  }
0x124a   :  { %v2093_v7 = vpop.f32.mrb[48].mxu1 }
0x124b   :  { %v5740_v10 = vpop.f32.mrb[49].mxu1  ;;  %v2094_v52 = vadd.f32 %v7503_v11, %v2093_v7 }
0x124c   :  { %v2096_v5 = vpop.f32.mrb[50].mxu1 }
0x124d   :  { %v2097_v23 = vadd.f32 %v7503_v11, %v2096_v5  ;;  %v5741_v20 = vpop.f32.mrb[51].mxu1  ;;  %v2116_v39 = vadd.f32 %v2094_v52, %v7065_v26  ;;  %v1291_v26 = vsel %vm1288_vm4, %v1287_v53, %v6033_v57  ;;  %v6152_v57 = vld [vmem:[%s8332_s8 + $0x40] ss:$8 sps:$4 sm:$0xff]   ;;  %v6157_v53 = vld [vmem:[%s8332_s8 + $0x54] ss:$8 sps:$4 sm:$0xff]  }
0x124f   :  { %v2117_v33 = vadd.f32 %v2097_v23, %v7067_v27 }
0x1251   :  { %2124 = vadd.xlane.f32.xlu0 %v2117_v33 }
0x1256   :  { %2122 = vadd.xlane.f32.xlu1 %v2116_v39 }
0x12a0   :  { %v6037_v27 = vpop.permute.xlu1 %6036 }
0x12a1   :  { %v6039_v55 = vunpack.i.h.bf16 %v6037_v27  ;;  %v6038_v30 = vunpack.i.l.bf16 %v6037_v27  ;;  %v6160_v27 = vld [vmem:[%s8332_s8 + $0x64] ss:$8 sps:$4 sm:$0xff]  }
0x12a2   :  { %v6052_v29 = vpop.permute.xlu0 %6051 }
0x12a3   :  { %v1295_v51 = vsel %vm1292_vm5, %v1291_v26, %v6038_v30  ;;  %v1999_v9 = vsel %vm1292_vm5, %v1996_v22, %v6039_v55  ;;  %v6054_v4 = vunpack.i.h.bf16 %v6052_v29  ;;  %v6053_v36 = vunpack.i.l.bf16 %v6052_v29  ;;  %v6158_v55 = vld [vmem:[%s8332_s8 + $0x60] ss:$8 sps:$4 sm:$0xff]   ;;  %v6163_v30 = vld [vmem:[%s8332_s8 + $0x74] ss:$8 sps:$4 sm:$0xff]  }
0x12a4   :  { %v6047_v60 = vpop.permute.xlu1 %6046  ;;  %v2003_v16 = vpack.c.bf16 %v1999_v9, %v1295_v51 }
0x12a5   :  { %v6049_v62 = vunpack.i.h.bf16 %v6047_v60  ;;  %v6048_v3 = vunpack.i.l.bf16 %v6047_v60 }
0x12a6   :  { %5743 = vmatmul.mubr.bf16.gmra.mrb[52].mxu1 %v2003_v16 }
0x12a7   :  { %5746 = vmatprep.mubr.msk.bf16.mxu1 %vm6801_vm0, %v6800_v1  ;;  %v1997_v50 = vsel %vm1288_vm4, %v1994_v8, %v6048_v3  ;;  %v1998_v2 = vsel %vm1288_vm4, %v1995_v63, %v6049_v62 }
0x12a8   :  { %v2000_v38 = vsel %vm1292_vm5, %v1997_v50, %v6053_v36  ;;  %v2001_v12 = vsel %vm1292_vm5, %v1998_v2, %v6054_v4 }
0x12a9   :  { %v2004_v13 = vpack.c.bf16 %v2001_v12, %v2000_v38 }
0x12ae   :  { %5747 = vmatmul.mubr.bf16.gmra.mrb[56].mxu1 %v2004_v13  ;;  %v7605_v13 = vld [vmem:[#allocation10] ss:$0 sm:$0xff] }
0x12de   :  { %v2125_v59 = vpop.xlane.xlu0 %2124 }
0x12df   :  { %v2136_v19 = vmul.f32 0.0078125, %v2125_v59  ;;  %v7610_v59 = vld [vmem:[#allocation11] ss:$0 sm:$0xff] }
0x12e1   :  { %v7539_v5 = vsub.f32 %v2117_v33, %v2136_v19  ;;  %v6148_v33 = vld [vmem:[%s8332_s8 + $0x24] ss:$8 sps:$4 sm:$0xff]  }
0x12e3   :  { %v2123_v14 = vpop.xlane.xlu1 %2122 }
0x12e4   :  { %v2135_v56 = vmul.f32 0.0078125, %v2123_v14 }
0x12e6   :  { %v7534_v44 = vsub.f32 %v2116_v39, %v2135_v56  ;;  %v2148_v39 = vmul.f32 %v7539_v5, %v7539_v5 }
0x12e8   :  { %v2147_v23 = vmul.f32 %v7534_v44, %v7534_v44 }
0x1379   :  { %v2101_v17 = vpop.f32.mrb[52].mxu1 }
0x137a   :  { %v2102_v21 = vadd.f32 %v7503_v11, %v2101_v17  ;;  %v5744_v28 = vpop.f32.mrb[53].mxu1 }
0x137b   :  { %v2104_v31 = vpop.f32.mrb[54].mxu1  ;;  %v6165_v28 = vld [vmem:[#allocation14] sm:$0xff]  }
0x137c   :  { %v2105_v24 = vadd.f32 %v7503_v11, %v2104_v31  ;;  %v5745_v40 = vpop.f32.mrb[55].mxu1  ;;  %v2118_v7 = vadd.f32 %v2102_v21, %v7082_v34  ;;  %v6145_v34 = vld [vmem:[%s8332_s8 + $0x14] ss:$8 sps:$4 sm:$0xff]  }
0x137d   :  { %2309 = vmatprep.subr.bf16.mxu0 %v6145_v34  ;;  %v6164_v21 = vld [vmem:[#allocation14 + $0x40] sm:$0xff]   ;;  %v6166_v31 = vld [vmem:[#allocation14 + $0x48] sm:$0xff]   ;;  %v6169_v40 = vld [vmem:[#allocation14 + $0x10] sm:$0xff]  }
0x137e   :  { %2126 = vadd.xlane.f32.xlu0 %v2118_v7  ;;  %v2119_v10 = vadd.f32 %v2105_v24, %v7084_v35  ;;  %v6143_v35 = vld [vmem:[%s8332_s8 + $0x10] ss:$8 sps:$4 sm:$0xff]   ;;  %5412 = vmatprep.subr.bf16.mxu1 %v6164_v21  ;;  %v6168_v24 = vld [vmem:[#allocation14 + $0x50] sm:$0xff]   ;;  %v6179_v34 = vld [vmem:[#allocation14 + $0x38] sm:$0xff]  }
0x137f   :  { %2310 = vmatpush1.bf16.msra.mxu0 %v6143_v35  ;;  %5413 = vmatpush3.bf16.msra.mxu1 %v6165_v28 }
0x1380   :  { %2128 = vadd.xlane.f32.xlu1 %v2119_v10  ;;  %2311 = vmatprep.subr.bf16.mxu0 %v6148_v33 }
0x1381   :  { %v2109_v20 = vpop.f32.mrb[56].mxu1  ;;  %5414 = vmatprep.subr.bf16.mxu1 %v6166_v31 }
0x1382   :  { %2153 = vadd.xlane.f32.xlu0 %v2147_v23  ;;  %v5748_v52 = vpop.f32.mrb[57].mxu1  ;;  %v2110_v60 = vadd.f32 %v7503_v11, %v2109_v20  ;;  %v6173_v23 = vld [vmem:[#allocation14 + $0x20] sm:$0xff]   ;;  %v6174_v20 = vld [vmem:[#allocation14 + $0x68] sm:$0xff]  }
0x1383   :  { %v2112_v37 = vpop.f32.mrb[58].mxu1  ;;  %2312 = vmatpush1.bf16.msra.mxu0 %v6146_v43  ;;  %v6175_v52 = vld [vmem:[#allocation14 + $0x28] sm:$0xff]  }
0x1384   :  { %2155 = vadd.xlane.f32.xlu1 %v2148_v39  ;;  %v5749_v25 = vpop.f32.mrb[59].mxu1  ;;  %2313 = vmatprep.subr.bf16.mxu0 %v6151_v32  ;;  %v2113_v8 = vadd.f32 %v7503_v11, %v2112_v37  ;;  %v7598_v2 = vadd.f32 %v2110_v60, %v7097_v41  ;;  %v6176_v39 = vld [vmem:[#allocation14 + $0x70] sm:$0xff]  }
0x1385   :  { %v6177_v37 = vld [vmem:[#allocation14 + $0x30] sm:$0xff]   ;;  %v6178_v25 = vld [vmem:[#allocation14 + $0x78] sm:$0xff]  }
0x1386   :  { %v7601_v12 = vadd.f32 %v2113_v8, %v7099_v42 }
0x1387   :  { %2314 = vmatpush1.bf16.msra.mxu0 %v6149_v49 }
0x1388   :  { %2315 = vmatprep.subr.bf16.mxu0 %v6154_v58 }
0x138b   :  { %2316 = vmatpush1.bf16.msra.mxu0 %v6152_v57 }
0x138c   :  { %2317 = vmatprep.subr.bf16.mxu0 %v6157_v53 }
0x138f   :  { %2318 = vmatpush1.bf16.msra.mxu0 %v6155_v54 }
0x1390   :  { %2319 = vmatprep.subr.bf16.mxu0 %v6160_v27 }
0x1393   :  { %2320 = vmatpush1.bf16.msra.mxu0 %v6158_v55 }
0x1394   :  { %2321 = vmatprep.subr.bf16.mxu0 %v6163_v30 }
0x1397   :  { %2322 = vmatpush1.bf16.msra.mxu0 %v6161_v61 }
0x140b   :  { %v2127_v47 = vpop.xlane.xlu0 %2126 }
0x140c   :  { %v2137_v26 = vmul.f32 0.0078125, %v2127_v47 }
0x140d   :  { %v2129_v22 = vpop.xlane.xlu1 %2128 }
0x140e   :  { %v7587_v29 = vsub.f32 %v2118_v7, %v2137_v26  ;;  %v2138_v51 = vmul.f32 0.0078125, %v2129_v22  ;;  %v6170_v7 = vld [vmem:[#allocation14 + $0x58] sm:$0xff]  }
0x140f   :  { %v2154_v9 = vpop.xlane.xlu0 %2153 }
0x1410   :  { %v7590_v16 = vsub.f32 %v2119_v10, %v2138_v51  ;;  %v2165_v62 = vmul.f32 0.0078125, %v2154_v9  ;;  %v2149_v3 = vmul.f32 %v7587_v29, %v7587_v29  ;;  %v6171_v10 = vld [vmem:[#allocation14 + $0x18] sm:$0xff]  }
0x1411   :  { %v2156_v63 = vpop.xlane.xlu1 %2155 }
0x1412   :  { %v2171_v4 = vadd.f32 1e-05, %v2165_v62  ;;  %v2166_v36 = vmul.f32 0.0078125, %v2156_v63  ;;  %2157 = vadd.xlane.f32.xlu0 %v2149_v3  ;;  %v2150_v50 = vmul.f32 %v7590_v16, %v7590_v16 }
0x1414   :  { %6356 = vrsqrt.f32 %v2171_v4  ;;  %v2172_v38 = vadd.f32 1e-05, %v2166_v36  ;;  %2159 = vadd.xlane.f32.xlu1 %v2150_v50 }
0x1416   :  { %6358 = vrsqrt.f32 %v2172_v38  ;;  %2130 = vadd.xlane.f32.xlu0 %v7598_v2 }
0x1418   :  { %2132 = vadd.xlane.f32.xlu1 %v7601_v12 }
0x141e   :  { %v6357_v11 = vpop.eup %6356 }
0x141f   :  { %v2183_v15 = vmul.f32 %v6357_v11, %v7534_v44  ;;  %v6167_v44 = vld [vmem:[#allocation14 + $0x8] sm:$0xff]  }
0x1420   :  { %v6359_v18 = vpop.eup %6358  ;;  %5415 = vmatpush3.bf16.msra.mxu1 %v6167_v44 }
0x1421   :  { %v2184_v41 = vmul.f32 %v6359_v18, %v7539_v5  ;;  %v2195_v14 = vmul.f32 %v7605_v13, %v2183_v15  ;;  %5416 = vmatprep.subr.bf16.mxu1 %v6168_v24  ;;  %v6172_v5 = vld [vmem:[#allocation14 + $0x60] sm:$0xff]  }
0x1423   :  { %v2196_v42 = vmul.f32 %v7605_v13, %v2184_v41  ;;  %v7614_v56 = vadd.f32 %v7610_v59, %v2195_v14 }
0x1424   :  { %5417 = vmatpush3.bf16.msra.mxu1 %v6169_v40 }
0x1425   :  { %v7617_v17 = vadd.f32 %v7610_v59, %v2196_v42  ;;  %5418 = vmatprep.subr.bf16.mxu1 %v6170_v7 }
0x1427   :  { %v2213_v19 = vpack.c.bf16 %v7617_v17, %v7614_v56 }
0x1428   :  { %5419 = vmatpush3.bf16.msra.mxu1 %v6171_v10 }
0x1429   :  { %2340 = vmatmul.mubr.bf16.vlgmr.msra.gmra.mrb[40].mxu0 %v2213_v19  ;;  %5420 = vmatprep.subr.bf16.mxu1 %v6172_v5 }
0x142a   :  { %2349 = vmatprep.mubr.bf16.mxu0 %v6799_v0 }
0x142c   :  { %5421 = vmatpush3.bf16.msra.mxu1 %v6173_v23 }
0x142d   :  { %5422 = vmatprep.subr.bf16.mxu1 %v6174_v20 }
0x1430   :  { %5423 = vmatpush3.bf16.msra.mxu1 %v6175_v52 }
0x1431   :  { %5424 = vmatprep.subr.bf16.mxu1 %v6176_v39 }
0x1434   :  { %5425 = vmatpush3.bf16.msra.mxu1 %v6177_v37 }
0x1435   :  { %5426 = vmatprep.subr.bf16.mxu1 %v6178_v25 }
0x1438   :  { %5427 = vmatpush3.bf16.msra.mxu1 %v6179_v34 }
0x1439   :  { %5750 = vmatprep.subr.bf16.mxu1 %v6800_v1 }
0x149f   :  { %v2158_v35 = vpop.xlane.xlu0 %2157 }
0x14a0   :  { %v2167_v33 = vmul.f32 0.0078125, %v2158_v35 }
0x14a1   :  { %v2160_v43 = vpop.xlane.xlu1 %2159 }
0x14a2   :  { %v2173_v32 = vadd.f32 1e-05, %v2167_v33  ;;  %v2168_v49 = vmul.f32 0.0078125, %v2160_v43 }
0x14a3   :  { %v2131_v57 = vpop.xlane.xlu0 %2130 }
0x14a4   :  { %6360 = vrsqrt.f32 %v2173_v32  ;;  %v2174_v58 = vadd.f32 1e-05, %v2168_v49  ;;  %v2139_v53 = vmul.f32 0.0078125, %v2131_v57 }
0x14a5   :  { %v2133_v54 = vpop.xlane.xlu1 %2132 }
0x14a6   :  { %6362 = vrsqrt.f32 %v2174_v58  ;;  %v2145_v27 = vsub.f32 %v7598_v2, %v2139_v53  ;;  %v2140_v55 = vmul.f32 0.0078125, %v2133_v54 }
0x14a8   :  { %v2146_v30 = vsub.f32 %v7601_v12, %v2140_v55  ;;  %v2151_v61 = vmul.f32 %v2145_v27, %v2145_v27 }
0x14aa   :  { %2161 = vadd.xlane.f32.xlu0 %v2151_v61  ;;  %v2152_v47 = vmul.f32 %v2146_v30, %v2146_v30 }
0x14ac   :  { %2163 = vadd.xlane.f32.xlu1 %v2152_v47 }
0x14ae   :  { %v6361_v26 = vpop.eup %6360 }
0x14af   :  { %v2185_v22 = vmul.f32 %v6361_v26, %v7587_v29  ;;  %v281_v29 = vld [vmem:[#allocation13] sm:$0x3]  ;;  %v7663_v26 = vld [vmem:[#allocation16] ss:$0 sm:$0xff] }
0x14b0   :  { %v6363_v51 = vpop.eup %6362  ;;  %v7639_v4 = vrot.slane %v281_v29, %v7111_v46 }
0x14b1   :  { %v2186_v9 = vmul.f32 %v6363_v51, %v7590_v16  ;;  %v2197_v60 = vmul.f32 %v7605_v13, %v2185_v22  ;;  %v7642_v16 = vrot.slane %v281_v29, %v7114_v48 }
0x14b3   :  { %v2198_v62 = vmul.f32 %v7605_v13, %v2186_v9  ;;  %v7630_v3 = vadd.f32 %v7610_v59, %v2197_v60 }
0x14b5   :  { %v7633_v63 = vadd.f32 %v7610_v59, %v2198_v62 }
0x14b7   :  { %v2214_v8 = vpack.c.bf16 %v7633_v63, %v7630_v3 }
0x14b9   :  { %2350 = vmatmul.mubr.bf16.gmra.mrb[44].mxu0 %v2214_v8 }
0x14ba   :  { %2359 = vmatprep.mubr.bf16.mxu0 %v6799_v0 }
0x14fc   :  { %v2341_v36 = vpop.f32.mrb[40].mxu0 }
0x14fd   :  { %v2342_v50 = vadd.f32 %v2341_v36, %v7639_v4  ;;  %v2343_v2 = vpop.f32.mrb[41].mxu0 }
0x14fe   :  { %v2344_v38 = vadd.f32 %v2343_v2, %v7642_v16  ;;  %v2345_v12 = vpop.f32.mrb[42].mxu0  ;;  %v6180_v2 = vld [vmem:[#allocation2 + $0xc0] ss:$12 sps:$4 sm:$0xff]  }
0x14ff   :  { %v2346_v11 = vadd.f32 %v2345_v12, %v7639_v4  ;;  %v2347_v15 = vpop.f32.mrb[43].mxu0  ;;  %v2370_v41 = vmax.f32 %v2342_v50, 0.0  ;;  %v6183_v12 = vld [vmem:[#allocation2 + $0xc8] ss:$12 sps:$4 sm:$0xff]  }
0x1500   :  { %v2348_v18 = vadd.f32 %v2347_v15, %v7642_v16  ;;  %v2371_v42 = vmax.f32 %v2344_v38, 0.0  ;;  %v6182_v38 = vld [vmem:[#allocation2 + $0xc4] ss:$12 sps:$4 sm:$0xff]  }
0x1501   :  { %v2372_v14 = vmax.f32 %v2346_v11, 0.0  ;;  %2906 = vmatprep.subr.bf16.mxu0 %v6182_v38 }
0x1502   :  { %v2373_v19 = vmax.f32 %v2348_v18, 0.0  ;;  %2907 = vmatpush1.bf16.msra.mxu0 %v6180_v2  ;;  %v6211_v2 = vld [vmem:[#allocation2 + $0x170] ss:$12 sps:$4 sm:$0xff]  }
0x1503   :  { %v2382_v21 = vpack.c.bf16 %v2372_v14, %v2370_v41 }
0x1504   :  { %v2383_v28 = vpack.c.bf16 %v2373_v19, %v2371_v42 }
0x1506   :  { %2522 = vmatprep.mubr.bf16.mxu1 %v2383_v28 }
0x1507   :  { %2523 = vmatmul.mubr.bf16.vlgmr.msra.gmra.mrb[60].mxu1 %v2382_v21 }
0x1508   :  { %5751 = vmatpush3.bf16.msra.mxu1 %v6183_v12 }
0x1509   :  { %5752 = vmatprep.subr.bf16.mxu1 %v6800_v1 }
0x1537   :  { %v2162_v31 = vpop.xlane.xlu0 %2161 }
0x1538   :  { %v2169_v44 = vmul.f32 0.0078125, %v2162_v31 }
0x1539   :  { %v2164_v24 = vpop.xlane.xlu1 %2163 }
0x153a   :  { %v2175_v40 = vadd.f32 1e-05, %v2169_v44  ;;  %v2170_v7 = vmul.f32 0.0078125, %v2164_v24 }
0x153c   :  { %6364 = vrsqrt.f32 %v2175_v40  ;;  %v2176_v10 = vadd.f32 1e-05, %v2170_v7 }
0x153e   :  { %6366 = vrsqrt.f32 %v2176_v10 }
0x1546   :  { %v6365_v5 = vpop.eup %6364 }
0x1547   :  { %v2187_v23 = vmul.f32 %v6365_v5, %v2145_v27 }
0x1548   :  { %v6367_v20 = vpop.eup %6366 }
0x1549   :  { %v2188_v52 = vmul.f32 %v6367_v20, %v2146_v30  ;;  %v2199_v39 = vmul.f32 %v7605_v13, %v2187_v23 }
0x154b   :  { %v2200_v37 = vmul.f32 %v7605_v13, %v2188_v52  ;;  %v7651_v25 = vadd.f32 %v7610_v59, %v2199_v39 }
0x154d   :  { %v7654_v34 = vadd.f32 %v7610_v59, %v2200_v37 }
0x154f   :  { %v2215_v35 = vpack.c.bf16 %v7654_v34, %v7651_v25 }
0x1551   :  { %2360 = vmatmul.mubr.bf16.gmra.mrb[48].mxu0 %v2215_v35 }
0x1552   :  { %2938 = vmatprep.mubr.bf16.mxu0 %v6799_v0 }
0x158c   :  { %v2351_v33 = vpop.f32.mrb[44].mxu0 }
0x158d   :  { %v2352_v43 = vadd.f32 %v2351_v33, %v7639_v4  ;;  %v2353_v32 = vpop.f32.mrb[45].mxu0 }
0x158e   :  { %v2354_v49 = vadd.f32 %v2353_v32, %v7642_v16  ;;  %v2355_v57 = vpop.f32.mrb[46].mxu0 }
0x158f   :  { %v2356_v13 = vadd.f32 %v2355_v57, %v7639_v4  ;;  %v2357_v58 = vpop.f32.mrb[47].mxu0  ;;  %v2374_v59 = vmax.f32 %v2352_v43, 0.0 }
0x1590   :  { %v2358_v53 = vadd.f32 %v2357_v58, %v7642_v16  ;;  %v2375_v27 = vmax.f32 %v2354_v49, 0.0  ;;  %v6184_v58 = vld [vmem:[#allocation2 + $0xd8] ss:$12 sps:$4 sm:$0xff]  }
0x1591   :  { %v2376_v54 = vmax.f32 %v2356_v13, 0.0  ;;  %v6186_v13 = vld [vmem:[#allocation2 + $0xdc] ss:$12 sps:$4 sm:$0xff]  }
0x1592   :  { %v2377_v55 = vmax.f32 %v2358_v53, 0.0  ;;  %v6187_v53 = vld [vmem:[#allocation2 + $0xe0] ss:$12 sps:$4 sm:$0xff]   ;;  %2908 = vmatprep.subr.bf16.mxu0 %v6186_v13 }
0x1593   :  { %v2384_v30 = vpack.c.bf16 %v2376_v54, %v2374_v59  ;;  %2909 = vmatpush1.bf16.msra.mxu0 %v6184_v58  ;;  %5753 = vmatpush3.bf16.msra.mxu1 %v6187_v53  ;;  %v6188_v59 = vld [vmem:[#allocation2 + $0xf0] ss:$12 sps:$4 sm:$0xff]   ;;  %v6191_v54 = vld [vmem:[#allocation2 + $0xf8] ss:$12 sps:$4 sm:$0xff]  }
0x1594   :  { %v2385_v61 = vpack.c.bf16 %v2377_v55, %v2375_v27  ;;  %5754 = vmatprep.subr.bf16.mxu1 %v6800_v1  ;;  %v6194_v27 = vld [vmem:[#allocation2 + $0x10c] ss:$12 sps:$4 sm:$0xff]   ;;  %v6192_v55 = vld [vmem:[#allocation2 + $0x108] ss:$12 sps:$4 sm:$0xff]  }
0x1596   :  { %2530 = vmatprep.mubr.bf16.mxu1 %v2385_v61  ;;  %v6198_v61 = vld [vmem:[#allocation2 + $0x124] ss:$12 sps:$4 sm:$0xff]  }
0x1597   :  { %2531 = vmatmul.mubr.bf16.gmra.mrb[64].mxu1 %v2384_v30  ;;  %v6195_v30 = vld [vmem:[#allocation2 + $0x110] ss:$12 sps:$4 sm:$0xff]  }
0x1598   :  { %5755 = vmatpush3.bf16.msra.mxu1 %v6191_v54 }
0x1599   :  { %5756 = vmatprep.subr.bf16.mxu1 %v6800_v1 }
0x159c   :  { %5757 = vmatpush3.bf16.msra.mxu1 %v6195_v30 }
0x159d   :  { %5758 = vmatprep.subr.bf16.mxu1 %v6800_v1 }
0x15da   :  { %v5428_v47 = vpop.f32.mrb[60].mxu1 }
0x15db   :  { %v5429_v22 = vpop.f32.mrb[61].mxu1 }
0x15dc   :  { %v5430_v51 = vadd.f32 %v5429_v22, %v5428_v47  ;;  %v5431_v9 = vpop.f32.mrb[62].mxu1  ;;  %v6196_v47 = vld [vmem:[#allocation2 + $0x120] ss:$12 sps:$4 sm:$0xff]   ;;  %v6199_v22 = vld [vmem:[#allocation2 + $0x128] ss:$12 sps:$4 sm:$0xff]  }
0x15dd   :  { %v5432_v60 = vpop.f32.mrb[63].mxu1  ;;  %5759 = vmatpush3.bf16.msra.mxu1 %v6199_v22 }
0x15de   :  { %v2525_v62 = vadd.f32 %v5430_v51, %v7663_v26  ;;  %v5433_v8 = vadd.f32 %v5432_v60, %v5431_v9  ;;  %v6202_v51 = vld [vmem:[#allocation2 + $0x13c] ss:$12 sps:$4 sm:$0xff]   ;;  %5760 = vmatprep.subr.bf16.mxu1 %v6800_v1  ;;  %v6200_v9 = vld [vmem:[#allocation2 + $0x138] ss:$12 sps:$4 sm:$0xff]   ;;  %v6203_v60 = vld [vmem:[#allocation2 + $0x140] ss:$12 sps:$4 sm:$0xff]  }
0x15e0   :  { %v2528_v29 = vadd.f32 %v5433_v8, %v7663_v26  ;;  %v2547_v36 = vadd.f32 %v2525_v62, %v7614_v56  ;;  %v6206_v62 = vld [vmem:[#allocation2 + $0x154] ss:$12 sps:$4 sm:$0xff]   ;;  %v6204_v8 = vld [vmem:[#allocation2 + $0x150] ss:$12 sps:$4 sm:$0xff]  }
0x15e1   :  { %5761 = vmatpush3.bf16.msra.mxu1 %v6203_v60 }
0x15e2   :  { %2553 = vadd.xlane.f32.xlu0 %v2547_v36  ;;  %v2548_v50 = vadd.f32 %v2528_v29, %v7617_v17  ;;  %5762 = vmatprep.subr.bf16.mxu1 %v6800_v1  ;;  %v6207_v29 = vld [vmem:[#allocation2 + $0x158] ss:$12 sps:$4 sm:$0xff]  }
0x15e4   :  { %2555 = vadd.xlane.f32.xlu1 %v2548_v50 }
0x15e5   :  { %5763 = vmatpush3.bf16.msra.mxu1 %v6207_v29 }
0x15e6   :  { %5764 = vmatprep.subr.bf16.mxu1 %v6800_v1 }
0x15e9   :  { %5765 = vmatpush3.bf16.msra.mxu1 %v6211_v2 }
0x1624   :  { %v2361_v11 = vpop.f32.mrb[48].mxu0 }
0x1625   :  { %v2362_v15 = vadd.f32 %v2361_v11, %v7639_v4  ;;  %v2363_v18 = vpop.f32.mrb[49].mxu0 }
0x1626   :  { %v2364_v41 = vadd.f32 %v2363_v18, %v7642_v16  ;;  %v2365_v14 = vpop.f32.mrb[50].mxu0 }
0x1627   :  { %v2366_v56 = vadd.f32 %v2365_v14, %v7639_v4  ;;  %v2367_v42 = vpop.f32.mrb[51].mxu0  ;;  %v2378_v19 = vmax.f32 %v2362_v15, 0.0 }
0x1628   :  { %v2368_v17 = vadd.f32 %v2367_v42, %v7642_v16  ;;  %v2379_v28 = vmax.f32 %v2364_v41, 0.0 }
0x1629   :  { %v2380_v21 = vmax.f32 %v2366_v56, 0.0 }
0x162a   :  { %v2381_v31 = vmax.f32 %v2368_v17, 0.0 }
0x162b   :  { %v2386_v44 = vpack.c.bf16 %v2380_v21, %v2378_v19 }
0x162c   :  { %v2387_v24 = vpack.c.bf16 %v2381_v31, %v2379_v28 }
0x162e   :  { %2538 = vmatprep.mubr.bf16.mxu1 %v2387_v24 }
0x162f   :  { %2539 = vmatmul.mubr.bf16.gmra.mrb[68].mxu1 %v2386_v44 }
0x1630   :  { %5766 = vmatprep.mubr.msk.bf16.mxu1 %vm6801_vm0, %v6800_v1 }
0x166a   :  { %v5434_v40 = vpop.f32.mrb[64].mxu1 }
0x166b   :  { %v5435_v7 = vpop.f32.mrb[65].mxu1 }
0x166c   :  { %v5436_v10 = vadd.f32 %v5435_v7, %v5434_v40  ;;  %v5437_v5 = vpop.f32.mrb[66].mxu1 }
0x166d   :  { %v5438_v23 = vpop.f32.mrb[67].mxu1 }
0x166e   :  { %v2533_v4 = vadd.f32 %v5436_v10, %v7663_v26  ;;  %v5439_v20 = vadd.f32 %v5438_v23, %v5437_v5 }
0x166f   :  { %v2554_v16 = vpop.xlane.xlu0 %2553 }
0x1670   :  { %v2536_v52 = vadd.f32 %v5439_v20, %v7663_v26  ;;  %v2565_v39 = vmul.f32 0.0078125, %v2554_v16  ;;  %v7679_v37 = vadd.f32 %v2533_v4, %v7630_v3 }
0x1671   :  { %v2556_v35 = vpop.xlane.xlu1 %2555 }
0x1672   :  { %v7681_v33 = vsub.f32 %v2547_v36, %v2565_v39  ;;  %v2566_v43 = vmul.f32 0.0078125, %v2556_v35  ;;  %2557 = vadd.xlane.f32.xlu0 %v7679_v37  ;;  %v7685_v32 = vadd.f32 %v2536_v52, %v7633_v63  ;;  %v6190_v63 = vld [vmem:[#allocation2 + $0xf4] ss:$12 sps:$4 sm:$0xff]   ;;  %v7706_v39 = vld [vmem:[#allocation17] ss:$0 sm:$0xff] }
0x1673   :  { %2910 = vmatprep.subr.bf16.mxu0 %v6190_v63  ;;  %v6208_v36 = vld [vmem:[#allocation2 + $0x168] ss:$12 sps:$4 sm:$0xff]  }
0x1674   :  { %v7687_v49 = vsub.f32 %v2548_v50, %v2566_v43  ;;  %2559 = vadd.xlane.f32.xlu1 %v7685_v32  ;;  %v2577_v57 = vmul.f32 %v7681_v33, %v7681_v33  ;;  %2911 = vmatpush1.bf16.msra.mxu0 %v6188_v59  ;;  %v6210_v50 = vld [vmem:[#allocation2 + $0x16c] ss:$12 sps:$4 sm:$0xff]  }
0x1675   :  { %2912 = vmatprep.subr.bf16.mxu0 %v6194_v27 }
0x1676   :  { %2583 = vadd.xlane.f32.xlu0 %v2577_v57  ;;  %v2578_v3 = vmul.f32 %v7687_v49, %v7687_v49 }
0x1678   :  { %2585 = vadd.xlane.f32.xlu1 %v2578_v3  ;;  %2913 = vmatpush1.bf16.msra.mxu0 %v6192_v55 }
0x1679   :  { %2914 = vmatprep.subr.bf16.mxu0 %v6198_v61 }
0x167c   :  { %2915 = vmatpush1.bf16.msra.mxu0 %v6196_v47 }
0x167d   :  { %2916 = vmatprep.subr.bf16.mxu0 %v6202_v51 }
0x1680   :  { %2917 = vmatpush1.bf16.msra.mxu0 %v6200_v9 }
0x1681   :  { %2918 = vmatprep.subr.bf16.mxu0 %v6206_v62 }
0x1684   :  { %2919 = vmatpush1.bf16.msra.mxu0 %v6204_v8 }
0x1685   :  { %2920 = vmatprep.subr.bf16.mxu0 %v6210_v50 }
0x1688   :  { %2921 = vmatpush1.bf16.msra.mxu0 %v6208_v36 }
0x16ff   :  { %v2558_v38 = vpop.xlane.xlu0 %2557 }
0x1700   :  { %v2567_v12 = vmul.f32 0.0078125, %v2558_v38  ;;  %v2677_v38 = vld [vmem:[#allocation5 + $0x3] sm:$0x7] }
0x1701   :  { %v2560_v11 = vpop.xlane.xlu1 %2559 }
0x1702   :  { %v2573_v15 = vsub.f32 %v7679_v37, %v2567_v12  ;;  %v2568_v18 = vmul.f32 0.0078125, %v2560_v11  ;;  %v5440_v41 = vpop.f32.mrb[68].mxu1  ;;  %v7739_v12 = vrot.slane %v2677_v38, %v7111_v46  ;;  %v7743_v11 = vrot.slane %v2677_v38, %v331_v6 }
0x1703   :  { %v5441_v14 = vpop.f32.mrb[69].mxu1  ;;  %v2584_v56 = vpop.xlane.xlu0 %2583 }
0x1704   :  { %v2574_v42 = vsub.f32 %v7685_v32, %v2568_v18  ;;  %v5442_v17 = vadd.f32 %v5441_v14, %v5440_v41  ;;  %v2595_v19 = vmul.f32 0.0078125, %v2584_v56  ;;  %v5443_v21 = vpop.f32.mrb[70].mxu1  ;;  %v2579_v28 = vmul.f32 %v2573_v15, %v2573_v15 }
0x1705   :  { %v5444_v31 = vpop.f32.mrb[71].mxu1  ;;  %v2586_v44 = vpop.xlane.xlu1 %2585  ;;  %v7746_v41 = vrot.slane %v2677_v38, %v7114_v48 }
0x1706   :  { %v2541_v24 = vadd.f32 %v5442_v17, %v7663_v26  ;;  %v2601_v40 = vadd.f32 1e-05, %v2595_v19  ;;  %v5445_v7 = vadd.f32 %v5444_v31, %v5443_v21  ;;  %v2596_v10 = vmul.f32 0.0078125, %v2586_v44  ;;  %2587 = vadd.xlane.f32.xlu0 %v2579_v28 }
0x1707   :  { %v2580_v5 = vmul.f32 %v2574_v42, %v2574_v42 }
0x1708   :  { %6368 = vrsqrt.f32 %v2601_v40  ;;  %v2544_v23 = vadd.f32 %v5445_v7, %v7663_v26  ;;  %v2602_v4 = vadd.f32 1e-05, %v2596_v10  ;;  %v2551_v20 = vadd.f32 %v2541_v24, %v7651_v25  ;;  %v7711_v26 = vld [vmem:[#allocation19] ss:$0 sm:$0xff] }
0x1709   :  { %2589 = vadd.xlane.f32.xlu1 %v2580_v5 }
0x170a   :  { %6370 = vrsqrt.f32 %v2602_v4  ;;  %2561 = vadd.xlane.f32.xlu0 %v2551_v20  ;;  %v2552_v16 = vadd.f32 %v2544_v23, %v7654_v34 }
0x170d   :  { %2563 = vadd.xlane.f32.xlu1 %v2552_v16 }
0x1712   :  { %v6369_v52 = vpop.eup %6368 }
0x1713   :  { %v2613_v37 = vmul.f32 %v6369_v52, %v7681_v33 }
0x1714   :  { %v6371_v35 = vpop.eup %6370 }
0x1715   :  { %v2625_v43 = vmul.f32 %v7706_v39, %v2613_v37  ;;  %v2614_v32 = vmul.f32 %v6371_v35, %v7687_v49 }
0x1717   :  { %v2626_v25 = vmul.f32 %v7706_v39, %v2614_v32  ;;  %v7715_v57 = vadd.f32 %v7711_v26, %v2625_v43 }
0x1719   :  { %v7718_v34 = vadd.f32 %v7711_v26, %v2626_v25 }
0x171b   :  { %v2759_v3 = vpack.c.bf16 %v7718_v34, %v7715_v57 }
0x171d   :  { %2939 = vmatmul.mubr.bf16.vlgmr.msra.gmra.mrb[52].mxu0 %v2759_v3  ;;  %5767 = vmatmul.mubr.bf16.vlgmr.msra.gmra.mrb[72].mxu1 %v2759_v3 }
0x171e   :  { %2948 = vmatprep.mubr.bf16.mxu0 %v6799_v0  ;;  %5770 = vmatprep.mubr.msk.bf16.mxu1 %vm6801_vm0, %v6800_v1 }
0x1793   :  { %v2588_v33 = vpop.xlane.xlu0 %2587 }
0x1794   :  { %v2597_v49 = vmul.f32 0.0078125, %v2588_v33 }
0x1796   :  { %v2603_v13 = vadd.f32 1e-05, %v2597_v49  ;;  %v2590_v58 = vpop.xlane.xlu1 %2589 }
0x1797   :  { %v2598_v53 = vmul.f32 0.0078125, %v2590_v58  ;;  %v2562_v63 = vpop.xlane.xlu0 %2561 }
0x1798   :  { %6372 = vrsqrt.f32 %v2603_v13  ;;  %v2569_v59 = vmul.f32 0.0078125, %v2562_v63 }
0x1799   :  { %v2604_v54 = vadd.f32 1e-05, %v2598_v53 }
0x179a   :  { %v2575_v27 = vsub.f32 %v2551_v20, %v2569_v59  ;;  %v2564_v55 = vpop.xlane.xlu1 %2563 }
0x179b   :  { %6374 = vrsqrt.f32 %v2604_v54  ;;  %v2570_v30 = vmul.f32 0.0078125, %v2564_v55 }
0x179c   :  { %v2581_v61 = vmul.f32 %v2575_v27, %v2575_v27 }
0x179d   :  { %v2576_v47 = vsub.f32 %v2552_v16, %v2570_v30 }
0x179e   :  { %2591 = vadd.xlane.f32.xlu0 %v2581_v61 }
0x179f   :  { %v2582_v22 = vmul.f32 %v2576_v47, %v2576_v47 }
0x17a1   :  { %2593 = vadd.xlane.f32.xlu1 %v2582_v22 }
0x17a2   :  { %v6373_v51 = vpop.eup %6372 }
0x17a3   :  { %v2615_v9 = vmul.f32 %v6373_v51, %v2573_v15 }
0x17a5   :  { %v6375_v60 = vpop.eup %6374  ;;  %v2627_v8 = vmul.f32 %v7706_v39, %v2615_v9 }
0x17a6   :  { %v2616_v62 = vmul.f32 %v6375_v60, %v2574_v42 }
0x17a7   :  { %v7728_v36 = vadd.f32 %v7711_v26, %v2627_v8 }
0x17a8   :  { %v2628_v29 = vmul.f32 %v7706_v39, %v2616_v62 }
0x17aa   :  { %v7731_v50 = vadd.f32 %v7711_v26, %v2628_v29 }
0x17ac   :  { %v2760_v2 = vpack.c.bf16 %v7731_v50, %v7728_v36 }
0x17ae   :  { %2949 = vmatmul.mubr.bf16.gmra.mrb[56].mxu0 %v2760_v2  ;;  %5771 = vmatmul.mubr.bf16.gmra.mrb[76].mxu1 %v2760_v2 }
0x17af   :  { %2958 = vmatprep.mubr.bf16.mxu0 %v6799_v0  ;;  %5774 = vmatprep.mubr.msk.bf16.mxu1 %vm6801_vm0, %v6800_v1 }
0x17f0   :  { %v2940_v15 = vpop.f32.mrb[52].mxu0  ;;  %v3003_v18 = vpop.f32.mrb[72].mxu1 }
0x17f1   :  { %v2942_v14 = vpop.f32.mrb[53].mxu0  ;;  %v5768_v56 = vpop.f32.mrb[73].mxu1  ;;  %v2941_v19 = vadd.f32 %v2940_v15, %v7739_v12  ;;  %v3004_v21 = vadd.f32 %v3003_v18, %v7743_v11 }
0x17f2   :  { %v2944_v42 = vpop.f32.mrb[54].mxu0  ;;  %v3006_v17 = vpop.f32.mrb[74].mxu1  ;;  %v2943_v44 = vadd.f32 %v2942_v14, %v7746_v41 }
0x17f3   :  { %v2945_v28 = vadd.f32 %v2944_v42, %v7739_v12  ;;  %v3007_v31 = vadd.f32 %v3006_v17, %v7743_v11  ;;  %v2946_v45 = vpop.f32.mrb[55].mxu0  ;;  %v5769_v6 = vpop.f32.mrb[75].mxu1 }
0x17f4   :  { %v2947_v24 = vadd.f32 %v2946_v45, %v7746_v41 }
0x17f5   :  { %v7754_v40 = vpack.c.bf16 %v2945_v28, %v2941_v19  ;;  %v7756_v7 = vpack.c.bf16 %v3007_v31, %v3004_v21 }
0x17f6   :  { %v7758_v10 = vpack.c.bf16 %v2947_v24, %v2943_v44 }
0x17f8   :  { %5958 = vmatprep.subr.msk.bf16.mxu0 %vm593_vm1, %v7758_v10  ;;  %v3042_v5 = vsel %vm593_vm1, %v7758_v10, 0 }
0x17f9   :  { %5779 = vmatpush3.bf16.xpose.msra.mxu0 %v3042_v5 }
0x182b   :  { %v2592_v23 = vpop.xlane.xlu0 %2591 }
0x182c   :  { %v2599_v4 = vmul.f32 0.0078125, %v2592_v23 }
0x182e   :  { %v2605_v20 = vadd.f32 1e-05, %v2599_v4  ;;  %v2594_v16 = vpop.xlane.xlu1 %2593 }
0x182f   :  { %v2600_v52 = vmul.f32 0.0078125, %v2594_v16 }
0x1830   :  { %6376 = vrsqrt.f32 %v2605_v20 }
0x1831   :  { %v2606_v37 = vadd.f32 1e-05, %v2600_v52 }
0x1833   :  { %6378 = vrsqrt.f32 %v2606_v37 }
0x183a   :  { %v6377_v35 = vpop.eup %6376 }
0x183b   :  { %v2617_v43 = vmul.f32 %v6377_v35, %v2575_v27 }
0x183d   :  { %v6379_v32 = vpop.eup %6378  ;;  %v2629_v3 = vmul.f32 %v7706_v39, %v2617_v43 }
0x183e   :  { %v2618_v25 = vmul.f32 %v6379_v32, %v2576_v47 }
0x183f   :  { %v7767_v49 = vadd.f32 %v7711_v26, %v2629_v3 }
0x1840   :  { %v2630_v33 = vmul.f32 %v7706_v39, %v2618_v25 }
0x1842   :  { %v7770_v13 = vadd.f32 %v7711_v26, %v2630_v33 }
0x1844   :  { %v2761_v58 = vpack.c.bf16 %v7770_v13, %v7767_v49 }
0x1846   :  { %2959 = vmatmul.mubr.bf16.gmra.mrb[60].mxu0 %v2761_v58  ;;  %5775 = vmatmul.mubr.bf16.gmra.mrb[80].mxu1 %v2761_v58 }
0x1847   :  { %5782 = vmatprep.mubr.msk.bf16.mxu0 %vm593_vm1, %v7754_v40 }
0x1881   :  { %v2950_v53 = vpop.f32.mrb[56].mxu0  ;;  %v3011_v63 = vpop.f32.mrb[76].mxu1 }
0x1882   :  { %v2952_v59 = vpop.f32.mrb[57].mxu0  ;;  %v5772_v54 = vpop.f32.mrb[77].mxu1  ;;  %v2951_v55 = vadd.f32 %v2950_v53, %v7739_v12  ;;  %v3012_v30 = vadd.f32 %v3011_v63, %v7743_v11 }
0x1883   :  { %v2954_v27 = vpop.f32.mrb[58].mxu0  ;;  %v3014_v39 = vpop.f32.mrb[78].mxu1  ;;  %v2953_v51 = vadd.f32 %v2952_v59, %v7746_v41 }
0x1884   :  { %v2955_v26 = vadd.f32 %v2954_v27, %v7739_v12  ;;  %v3015_v61 = vadd.f32 %v3014_v39, %v7743_v11  ;;  %v2956_v47 = vpop.f32.mrb[59].mxu0  ;;  %v5773_v22 = vpop.f32.mrb[79].mxu1 }
0x1885   :  { %v2957_v9 = vadd.f32 %v2956_v47, %v7746_v41 }
0x1886   :  { %v7782_v60 = vpack.c.bf16 %v2955_v26, %v2951_v55  ;;  %v7784_v62 = vpack.c.bf16 %v3015_v61, %v3012_v30 }
0x1887   :  { %v7786_v8 = vpack.c.bf16 %v2957_v9, %v2953_v51 }
0x1888   :  { %v3137_v2 = vsel %vm696_vm2, %v7784_v62, 0 }
0x1889   :  { %5959 = vmatprep.subr.msk.bf16.mxu0 %vm593_vm1, %v7786_v8  ;;  %v3045_v29 = vsel %vm593_vm1, %v7786_v8, 0 }
0x188a   :  { %5781 = vmatpush3.bf16.xpose.msra.mxu0 %v3045_v29 }
0x188b   :  { %5786 = vmatprep.subr.bf16.mxu0 %v7756_v7 }
0x1891   :  { %5783 = vmatmul.mubr.msk.bf16.vlgmr.msra.gmra.mrb[64].mxu0 %vm593_vm1, %v7782_v60 }
0x1892   :  { %5787 = vmatpush3.bf16.msra.mxu0 %v7756_v7 }
0x1893   :  { %5960 = vmatprep.subr.msk.bf16.mxu0 %vm696_vm2, %v7784_v62 }
0x1896   :  { %5789 = vmatpush3.bf16.msra.mxu0 %v3137_v2 }
0x1919   :  { %v2960_v38 = vpop.f32.mrb[60].mxu0  ;;  %v3019_v15 = vpop.f32.mrb[80].mxu1 }
0x191a   :  { %v2962_v18 = vpop.f32.mrb[61].mxu0  ;;  %v5776_v14 = vpop.f32.mrb[81].mxu1  ;;  %v7801_v17 = vadd.f32 %v2960_v38, %v7739_v12  ;;  %v7804_v19 = vadd.f32 %v3019_v15, %v7743_v11 }
0x191b   :  { %v2964_v56 = vpop.f32.mrb[62].mxu0  ;;  %v3022_v42 = vpop.f32.mrb[82].mxu1  ;;  %v7813_v6 = vadd.f32 %v2962_v18, %v7746_v41 }
0x191c   :  { %v7807_v21 = vadd.f32 %v2964_v56, %v7739_v12  ;;  %v7810_v28 = vadd.f32 %v3022_v42, %v7743_v11  ;;  %v2966_v31 = vpop.f32.mrb[63].mxu0  ;;  %v5777_v45 = vpop.f32.mrb[83].mxu1 }
0x191d   :  { %v7816_v44 = vadd.f32 %v2966_v31, %v7746_v41 }
0x191e   :  { %v3028_v24 = vpack.c.bf16 %v7807_v21, %v7801_v17  ;;  %v3034_v5 = vpack.c.bf16 %v7810_v28, %v7804_v19 }
0x191f   :  { %v3031_v12 = vpack.c.bf16 %v7816_v44, %v7813_v6 }
0x1964   :  { %v5784_v23 = vpop.f32.mrb[64].mxu0 }
0x1965   :  { %v3081_v11 = vpop.f32.mrb[65].mxu0  ;;  %v3101_v41 = vsel %vm654_vm3, %v5784_v23, -inf }
0x1966   :  { %v5785_v4 = vpop.f32.mrb[66].mxu0  ;;  %v3095_v20 = vsel %vm654_vm3, %v3081_v11, -inf }
0x1967   :  { %3096 = vmax.xlane.f32.xlu0 %v3095_v20  ;;  %v3084_v16 = vpop.f32.mrb[67].mxu0 }
0x1968   :  { %v3098_v52 = vsel %vm654_vm3, %v3084_v16, -inf }
0x1969   :  { %3099 = vmax.xlane.f32.xlu1 %v3098_v52 }
0x196b   :  { %3102 = vmax.xlane.f32.xlu0 %v3101_v41 }
0x19f4   :  { %v3097_v37 = vpop.xlane.xlu0 %3096 }
0x19f5   :  { %v3104_v35 = vsub.f32 %v3081_v11, %v3097_v37 }
0x19f6   :  { %v3100_v43 = vpop.xlane.xlu1 %3099 }
0x19f7   :  { %v3107_v32 = vmul.f32 1.442695, %v3104_v35  ;;  %v3105_v25 = vsub.f32 %v3084_v16, %v3100_v43 }
0x19f8   :  { %v3103_v3 = vpop.xlane.xlu0 %3102 }
0x19f9   :  { %6380 = vpow2.f32 %v3107_v32  ;;  %v3109_v33 = vmul.f32 1.442695, %v3105_v25  ;;  %v3106_v58 = vsub.f32 %v5784_v23, %v3103_v3 }
0x19fb   :  { %6382 = vpow2.f32 %v3109_v33  ;;  %v3111_v53 = vmul.f32 1.442695, %v3106_v58 }
0x19fd   :  { %6384 = vpow2.f32 %v3111_v53 }
0x1a03   :  { %v6381_v63 = vpop.eup %6380 }
0x1a04   :  { %v3113_v59 = vsel %vm654_vm3, %v6381_v63, 0.0 }
0x1a05   :  { %v6383_v54 = vpop.eup %6382  ;;  %3114 = vadd.xlane.f32.xlu1 %v3113_v59 }
0x1a06   :  { %v3116_v27 = vsel %vm654_vm3, %v6383_v54, 0.0 }
0x1a07   :  { %v6385_v39 = vpop.eup %6384  ;;  %3117 = vadd.xlane.f32.xlu0 %v3116_v27 }
0x1a08   :  { %v3119_v55 = vsel %vm654_vm3, %v6385_v39, 0.0 }
0x1a09   :  { %3120 = vadd.xlane.f32.xlu1 %v3119_v55 }
0x1a1a   :  { %3197 = vrot.lane.b32.xlu1 %v7786_v8, %s6802_s0 }
0x1a1d   :  { %3195 = vrot.lane.b32.xlu0 %v7758_v10, %s6802_s0 }
0x1a1e   :  { %3189 = vrot.lane.b32.xlu1 %v7754_v40, %s6802_s0 }
0x1a21   :  { %3362 = vrot.lane.b32.xlu0 %v7758_v10, %s6787_s25 }
0x1a22   :  { %3191 = vrot.lane.b32.xlu1 %v7782_v60, %s6802_s0 }
0x1a25   :  { %3364 = vrot.lane.b32.xlu0 %v7786_v8, %s6787_s25 }
0x1a26   :  { %3358 = vrot.lane.b32.xlu1 %v7754_v40, %s6787_s25 }
0x1a29   :  { %3360 = vrot.lane.b32.xlu0 %v7782_v60, %s6787_s25 }
0x1a92   :  { %v3115_v30 = vpop.xlane.xlu1 %3114 }
0x1a93   :  { %6386 = vrcp.f32 %v3115_v30 }
0x1a94   :  { %v3118_v26 = vpop.xlane.xlu0 %3117 }
0x1a95   :  { %6388 = vrcp.f32 %v3118_v26 }
0x1a96   :  { %v3121_v61 = vpop.xlane.xlu1 %3120 }
0x1a97   :  { %6390 = vrcp.f32 %v3121_v61 }
0x1a98   :  { %v3196_v47 = vpop.permute.xlu0 %3195 }
0x1a99   :  { %5961 = vmatprep.subr.msk.bf16.mxu0 %vm593_vm1, %v3196_v47  ;;  %v3206_v42 = vsel %vm593_vm1, %v3196_v47, 0 }
0x1a9a   :  { %v3198_v9 = vpop.permute.xlu1 %3197 }
0x1a9b   :  { %v3209_v31 = vsel %vm593_vm1, %v3198_v9, 0 }
0x1a9c   :  { %v3363_v45 = vpop.permute.xlu0 %3362 }
0x1a9d   :  { %v6387_v22 = vpop.eup %6386  ;;  %v3373_v4 = vsel %vm593_vm1, %v3363_v45, 0 }
0x1a9e   :  { %v3125_v29 = vmul.f32 %v6387_v22, %v6381_v63  ;;  %v3190_v56 = vpop.permute.xlu1 %3189 }
0x1a9f   :  { %v6389_v51 = vpop.eup %6388 }
0x1aa0   :  { %v3126_v2 = vmul.f32 %v6389_v51, %v6383_v54  ;;  %v3365_v20 = vpop.permute.xlu0 %3364 }
0x1aa1   :  { %v6391_v38 = vpop.eup %6390  ;;  %v3376_v16 = vsel %vm593_vm1, %v3365_v20, 0 }
0x1aa2   :  { %v3128_v15 = vpack.c.bf16 %v3126_v2, %v3125_v29  ;;  %v3127_v18 = vmul.f32 %v6391_v38, %v6385_v39  ;;  %v3192_v23 = vpop.permute.xlu1 %3191 }
0x1aa4   :  { %5790 = vmatprep.mubr.msk.bf16.mxu0 %vm654_vm3, %v3128_v15  ;;  %v3129_v14 = vpack.c.bf16 %v3127_v18, %v3127_v18  ;;  %v3361_v52 = vpop.permute.xlu0 %3360 }
0x1aa6   :  { %5791 = vmatmul.mubr.msk.bf16.vlgmr.msra.gmra.mrb[68].mxu0 %vm654_vm3, %v3129_v14  ;;  %v3359_v11 = vpop.permute.xlu1 %3358 }
0x1aa7   :  { %5795 = vmatpush3.bf16.xpose.msra.mxu0 %v3206_v42  ;;  %5798 = vmatprep.mubr.msk.bf16.mxu0 %vm593_vm1, %v3190_v56 }
0x1aa8   :  { %5962 = vmatprep.subr.msk.bf16.mxu0 %vm593_vm1, %v3198_v9 }
0x1aaf   :  { %5797 = vmatpush3.bf16.xpose.msra.mxu0 %v3209_v31 }
0x1ab0   :  { %5964 = vmatprep.subr.msk.bf16.mxu0 %vm593_vm1, %v3363_v45 }
0x1ab6   :  { %5799 = vmatmul.mubr.msk.bf16.vlgmr.msra.gmra.mrb[72].mxu0 %vm593_vm1, %v3192_v23 }
0x1ab7   :  { %5811 = vmatpush3.bf16.xpose.msra.mxu0 %v3373_v4  ;;  %5814 = vmatprep.mubr.msk.bf16.mxu0 %vm593_vm1, %v3359_v11 }
0x1ab8   :  { %5965 = vmatprep.subr.msk.bf16.mxu0 %vm593_vm1, %v3365_v20 }
0x1abf   :  { %5813 = vmatpush3.bf16.xpose.msra.mxu0 %v3376_v16 }
0x1ac6   :  { %5815 = vmatmul.mubr.msk.bf16.vlgmr.msra.gmra.mrb[76].mxu0 %vm593_vm1, %v3361_v52 }
0x1b79   :  { %v7860_v41 = vpop.f32.mrb[68].mxu0 }
0x1b7a   :  { %v7862_v37 = vpop.f32.mrb[69].mxu0 }
0x1b7b   :  { %v5793_v35 = vpop.f32.mrb[70].mxu0 }
0x1b7c   :  { %v7864_v43 = vpop.f32.mrb[71].mxu0 }
0x1b89   :  { %v5800_v32 = vpop.f32.mrb[72].mxu0 }
0x1b8a   :  { %v3245_v25 = vpop.f32.mrb[73].mxu0  ;;  %v3265_v63 = vsel %vm654_vm3, %v5800_v32, -inf }
0x1b8b   :  { %v5801_v3 = vpop.f32.mrb[74].mxu0  ;;  %v3259_v33 = vsel %vm654_vm3, %v3245_v25, -inf }
0x1b8c   :  { %3260 = vmax.xlane.f32.xlu1 %v3259_v33  ;;  %v3248_v58 = vpop.f32.mrb[75].mxu0 }
0x1b8d   :  { %v3262_v53 = vsel %vm654_vm3, %v3248_v58, -inf }
0x1b8e   :  { %3263 = vmax.xlane.f32.xlu0 %v3262_v53 }
0x1b92   :  { %3266 = vmax.xlane.f32.xlu0 %v3265_v63 }
0x1b99   :  { %v5816_v59 = vpop.f32.mrb[76].mxu0 }
0x1b9a   :  { %v3412_v54 = vpop.f32.mrb[77].mxu0  ;;  %v3432_v26 = vsel %vm654_vm3, %v5816_v59, -inf }
0x1b9b   :  { %v5817_v27 = vpop.f32.mrb[78].mxu0  ;;  %v3426_v39 = vsel %vm654_vm3, %v3412_v54, -inf }
0x1b9c   :  { %3427 = vmax.xlane.f32.xlu1 %v3426_v39  ;;  %v3415_v55 = vpop.f32.mrb[79].mxu0 }
0x1b9d   :  { %v3429_v30 = vsel %vm654_vm3, %v3415_v55, -inf }
0x1b9e   :  { %3430 = vmax.xlane.f32.xlu0 %v3429_v30 }
0x1ba0   :  { %3433 = vmax.xlane.f32.xlu1 %v3432_v26 }
0x1bb1   :  { %3298 = vrot.lane.b32.xlu1 %v7784_v62, %s6802_s0 }
0x1bb4   :  { %3296 = vrot.lane.b32.xlu0 %v7756_v7, %s6802_s0 }
0x1bb5   :  { %3461 = vrot.lane.b32.xlu1 %v7756_v7, %s6787_s25 }
0x1c19   :  { %v3261_v61 = vpop.xlane.xlu1 %3260 }
0x1c1a   :  { %v3268_v51 = vsub.f32 %v3245_v25, %v3261_v61 }
0x1c1b   :  { %v3264_v47 = vpop.xlane.xlu0 %3263 }
0x1c1c   :  { %v3269_v22 = vsub.f32 %v3248_v58, %v3264_v47  ;;  %v3271_v38 = vmul.f32 1.442695, %v3268_v51 }
0x1c1e   :  { %v3273_v9 = vmul.f32 1.442695, %v3269_v22 }
0x1c1f   :  { %v3267_v29 = vpop.xlane.xlu0 %3266 }
0x1c20   :  { %6392 = vpow2.f32 %v3273_v9  ;;  %v3270_v2 = vsub.f32 %v5800_v32, %v3267_v29 }
0x1c22   :  { %v3275_v15 = vmul.f32 1.442695, %v3270_v2 }
0x1c24   :  { %6394 = vpow2.f32 %v3275_v15 }
0x1c25   :  { %6396 = vpow2.f32 %v3271_v38 }
0x1c29   :  { %v3428_v18 = vpop.xlane.xlu1 %3427 }
0x1c2a   :  { %v6393_v14 = vpop.eup %6392  ;;  %v3435_v31 = vsub.f32 %v3412_v54, %v3428_v18 }
0x1c2b   :  { %v3431_v56 = vpop.xlane.xlu0 %3430  ;;  %v3280_v42 = vsel %vm654_vm3, %v6393_v14, 0.0 }
0x1c2c   :  { %v3436_v45 = vsub.f32 %v3415_v55, %v3431_v56  ;;  %3281 = vadd.xlane.f32.xlu1 %v3280_v42  ;;  %v3438_v32 = vmul.f32 1.442695, %v3435_v31 }
0x1c2d   :  { %v3434_v23 = vpop.xlane.xlu1 %3433 }
0x1c2e   :  { %v6395_v11 = vpop.eup %6394  ;;  %v3440_v4 = vmul.f32 1.442695, %v3436_v45  ;;  %v3437_v20 = vsub.f32 %v5816_v59, %v3434_v23 }
0x1c2f   :  { %v3297_v16 = vpop.permute.xlu0 %3296  ;;  %v3283_v52 = vsel %vm654_vm3, %v6395_v11, 0.0  ;;  %v6397_v35 = vpop.eup %6396 }
0x1c30   :  { %6398 = vpow2.f32 %v3440_v4  ;;  %v3442_v25 = vmul.f32 1.442695, %v3437_v20  ;;  %3284 = vadd.xlane.f32.xlu0 %v3283_v52  ;;  %5802 = vmatprep.subr.bf16.mxu1 %v3297_v16  ;;  %v3277_v33 = vsel %vm654_vm3, %v6397_v35, 0.0 }
0x1c31   :  { %5803 = vmatpush3.bf16.msra.mxu1 %v3297_v16  ;;  %v3299_v3 = vpop.permute.xlu1 %3298 }
0x1c32   :  { %6400 = vpow2.f32 %v3442_v25  ;;  %5963 = vmatprep.subr.msk.bf16.mxu1 %vm696_vm2, %v3299_v3  ;;  %v3308_v58 = vsel %vm696_vm2, %v3299_v3, 0  ;;  %v7909_v3 = vrot.slane %v3034_v5, 4 }
0x1c33   :  { %6402 = vpow2.f32 %v3438_v32 }
0x1c34   :  { %3278 = vadd.xlane.f32.xlu0 %v3277_v33  ;;  %v3837_v33 = vrot.slane %v7784_v62, 4  ;;  %v3848_v19 = vsel %vm696_vm2, %v7909_v3, 0 }
0x1c35   :  { %5805 = vmatpush3.bf16.msra.mxu1 %v3308_v58  ;;  %v3462_v53 = vpop.permute.xlu1 %3461 }
0x1c36   :  { %5818 = vmatprep.subr.bf16.mxu1 %v3462_v53 }
0x1c3a   :  { %v6399_v63 = vpop.eup %6398 }
0x1c3b   :  { %v3447_v59 = vsel %vm654_vm3, %v6399_v63, 0.0 }
0x1c3c   :  { %v6401_v54 = vpop.eup %6400  ;;  %3448 = vadd.xlane.f32.xlu0 %v3447_v59 }
0x1c3d   :  { %v3450_v27 = vsel %vm654_vm3, %v6401_v54, 0.0  ;;  %v6403_v39 = vpop.eup %6402 }
0x1c3e   :  { %3451 = vadd.xlane.f32.xlu1 %v3450_v27  ;;  %v3444_v55 = vsel %vm654_vm3, %v6403_v39, 0.0 }
0x1c42   :  { %3445 = vadd.xlane.f32.xlu1 %v3444_v55 }
0x1c52   :  { %3463 = vrot.lane.b32.xlu0 %v7784_v62, %s6787_s25 }
0x1c53   :  { %3527 = vrot.lane.b32.xlu1 %v7758_v10, %s6795_s6 }
0x1c56   :  { %3529 = vrot.lane.b32.xlu0 %v7786_v8, %s6795_s6 }
0x1c57   :  { %3523 = vrot.lane.b32.xlu1 %v7754_v40, %s6795_s6 }
0x1c5a   :  { %3525 = vrot.lane.b32.xlu0 %v7782_v60, %s6795_s6 }
0x1cb9   :  { %v3282_v30 = vpop.xlane.xlu1 %3281 }
0x1cbd   :  { %v3285_v26 = vpop.xlane.xlu0 %3284 }
0x1cbe   :  { %6404 = vrcp.f32 %v3285_v26 }
0x1cbf   :  { %6406 = vrcp.f32 %v3282_v30 }
0x1cc1   :  { %v3279_v61 = vpop.xlane.xlu0 %3278 }
0x1cc2   :  { %6408 = vrcp.f32 %v3279_v61 }
0x1cc8   :  { %v6405_v47 = vpop.eup %6404 }
0x1cc9   :  { %v6407_v22 = vpop.eup %6406  ;;  %v3449_v51 = vpop.xlane.xlu0 %3448  ;;  %v3291_v29 = vmul.f32 %v6405_v47, %v6395_v11 }
0x1cca   :  { %v3290_v38 = vmul.f32 %v6407_v22, %v6393_v14 }
0x1ccb   :  { %v3452_v9 = vpop.xlane.xlu1 %3451  ;;  %v3293_v18 = vpack.c.bf16 %v3291_v29, %v3291_v29 }
0x1ccc   :  { %v6409_v10 = vpop.eup %6408  ;;  %6410 = vrcp.f32 %v3452_v9 }
0x1ccd   :  { %v3289_v2 = vmul.f32 %v6409_v10, %v6397_v35  ;;  %6412 = vrcp.f32 %v3449_v51  ;;  %v3464_v56 = vpop.permute.xlu0 %3463 }
0x1cce   :  { %v3473_v42 = vsel %vm696_vm2, %v3464_v56, 0 }
0x1ccf   :  { %v3446_v40 = vpop.xlane.xlu1 %3445  ;;  %v3292_v15 = vpack.c.bf16 %v3290_v38, %v3289_v2 }
0x1cd0   :  { %6414 = vrcp.f32 %v3446_v40 }
0x1cd1   :  { %5806 = vmatprep.mubr.msk.bf16.mxu1 %vm654_vm3, %v3292_v15  ;;  %v3530_v25 = vpop.permute.xlu0 %3529 }
0x1cd2   :  { %5807 = vmatmul.mubr.msk.bf16.vlgmr.msra.gmra.mrb[84].mxu1 %vm654_vm3, %v3293_v18  ;;  %v3541_v58 = vsel %vm593_vm1, %v3530_v25, 0 }
0x1cd3   :  { %5819 = vmatpush3.bf16.msra.mxu1 %v3462_v53  ;;  %v3528_v45 = vpop.permute.xlu1 %3527  ;;  %v7915_v53 = vsel %vm696_vm2, %v3837_v33, %v7909_v3 }
0x1cd4   :  { %5966 = vmatprep.subr.msk.bf16.mxu1 %vm696_vm2, %v3464_v56  ;;  %v3538_v35 = vsel %vm593_vm1, %v3528_v45, 0 }
0x1cd6   :  { %v6411_v31 = vpop.eup %6410 }
0x1cd7   :  { %5821 = vmatpush3.bf16.msra.mxu1 %v3473_v42  ;;  %v6413_v23 = vpop.eup %6412  ;;  %v3458_v11 = vmul.f32 %v6411_v31, %v6401_v54  ;;  %v3524_v32 = vpop.permute.xlu1 %3523 }
0x1cd8   :  { %5967 = vmatprep.subr.msk.bf16.mxu1 %vm593_vm1, %v3528_v45  ;;  %v3457_v20 = vmul.f32 %v6413_v23, %v6399_v63  ;;  %v3526_v63 = vpop.permute.xlu0 %3525 }
0x1cd9   :  { %v3460_v52 = vpack.c.bf16 %v3458_v11, %v3458_v11 }
0x1cda   :  { %v6415_v14 = vpop.eup %6414 }
0x1cdb   :  { %v3456_v4 = vmul.f32 %v6415_v14, %v6403_v39 }
0x1cdd   :  { %v3459_v16 = vpack.c.bf16 %v3457_v20, %v3456_v4 }
0x1cdf   :  { %5822 = vmatprep.mubr.msk.bf16.mxu1 %vm654_vm3, %v3459_v16 }
0x1ce0   :  { %5823 = vmatmul.mubr.msk.bf16.vlgmr.msra.gmra.mrb[88].mxu1 %vm654_vm3, %v3460_v52 }
0x1ce1   :  { %5827 = vmatpush3.bf16.xpose.msra.mxu1 %v3538_v35  ;;  %5830 = vmatprep.mubr.msk.bf16.mxu1 %vm593_vm1, %v3524_v32 }
0x1ce2   :  { %5968 = vmatprep.subr.msk.bf16.mxu1 %vm593_vm1, %v3530_v25 }
0x1ce9   :  { %5829 = vmatpush3.bf16.xpose.msra.mxu1 %v3541_v58  ;;  %v7953_v58 = vrot.slane %v3031_v12, 4 }
0x1cea   :  { %5850 = vmatprep.subr.bf16.mxu1 %v7915_v53 }
0x1cf0   :  { %5831 = vmatmul.mubr.msk.bf16.vlgmr.msra.gmra.mrb[92].mxu1 %vm593_vm1, %v3526_v63 }
0x1cf1   :  { %5851 = vmatpush3.bf16.msra.mxu1 %v7915_v53 }
0x1cf2   :  { %5972 = vmatprep.subr.msk.bf16.mxu1 %vm696_vm2, %v7909_v3 }
0x1cf5   :  { %5853 = vmatpush3.bf16.msra.mxu1 %v3848_v19 }
0x1da5   :  { %v7924_v28 = vpop.f32.mrb[84].mxu1 }
0x1da6   :  { %v7926_v5 = vpop.f32.mrb[85].mxu1 }
0x1da7   :  { %v5809_v59 = vpop.f32.mrb[86].mxu1 }
0x1da8   :  { %v7928_v54 = vpop.f32.mrb[87].mxu1 }
0x1da9   :  { %v6055_v27 = vpack.i.bf16 %v7928_v54, %v7926_v5 }
0x1db3   :  { %v7932_v39 = vpop.f32.mrb[88].mxu1 }
0x1db4   :  { %v7934_v55 = vpop.f32.mrb[89].mxu1 }
0x1db5   :  { %v5825_v30 = vpop.f32.mrb[90].mxu1 }
0x1db6   :  { %v7936_v26 = vpop.f32.mrb[91].mxu1 }
0x1db7   :  { %v6060_v61 = vpack.i.bf16 %v7936_v26, %v7934_v55 }
0x1dc3   :  { %v5832_v47 = vpop.f32.mrb[92].mxu1 }
0x1dc4   :  { %v3577_v22 = vpop.f32.mrb[93].mxu1  ;;  %v3597_v2 = vsel %vm654_vm3, %v5832_v47, -inf }
0x1dc5   :  { %v5833_v51 = vpop.f32.mrb[94].mxu1  ;;  %v3591_v9 = vsel %vm654_vm3, %v3577_v22, -inf }
0x1dc6   :  { %3592 = vmax.xlane.f32.xlu1 %v3591_v9  ;;  %v3580_v10 = vpop.f32.mrb[95].mxu1  ;;  %v3734_v9 = vrot.slane %v7782_v60, 4  ;;  %v3751_v60 = vsel %vm593_vm1, %v7953_v58, 0 }
0x1dc7   :  { %v3594_v29 = vsel %vm654_vm3, %v3580_v10, -inf }
0x1dc8   :  { %3595 = vmax.xlane.f32.xlu0 %v3594_v29 }
0x1dcc   :  { %3598 = vmax.xlane.f32.xlu0 %v3597_v2 }
0x1e53   :  { %v3593_v38 = vpop.xlane.xlu1 %3592 }
0x1e54   :  { %v3600_v18 = vsub.f32 %v3577_v22, %v3593_v38 }
0x1e55   :  { %v3596_v40 = vpop.xlane.xlu0 %3595 }
0x1e56   :  { %v3601_v15 = vsub.f32 %v3580_v10, %v3596_v40  ;;  %v3603_v45 = vmul.f32 1.442695, %v3600_v18 }
0x1e58   :  { %v3605_v56 = vmul.f32 1.442695, %v3601_v15 }
0x1e59   :  { %v3599_v42 = vpop.xlane.xlu0 %3598 }
0x1e5a   :  { %6416 = vpow2.f32 %v3605_v56  ;;  %v3602_v31 = vsub.f32 %v5832_v47, %v3599_v42 }
0x1e5c   :  { %v3607_v23 = vmul.f32 1.442695, %v3602_v31 }
0x1e5e   :  { %6418 = vpow2.f32 %v3607_v23 }
0x1e5f   :  { %6420 = vpow2.f32 %v3603_v45 }
0x1e64   :  { %v6417_v14 = vpop.eup %6416 }
0x1e65   :  { %v3612_v11 = vsel %vm654_vm3, %v6417_v14, 0.0 }
0x1e66   :  { %3613 = vadd.xlane.f32.xlu0 %v3612_v11 }
0x1e68   :  { %v6419_v4 = vpop.eup %6418 }
0x1e69   :  { %v3615_v20 = vsel %vm654_vm3, %v6419_v4, 0.0  ;;  %v6421_v16 = vpop.eup %6420 }
0x1e6a   :  { %3616 = vadd.xlane.f32.xlu1 %v3615_v20  ;;  %v3609_v52 = vsel %vm654_vm3, %v6421_v16, 0.0 }
0x1e6e   :  { %3610 = vadd.xlane.f32.xlu1 %v3609_v52 }
0x1e7c   :  { %3626 = vrot.lane.b32.xlu0 %v7756_v7, %s6795_s6  ;;  %v3738_v7 = vrot.slane %v7786_v8, 4  ;;  %v7967_v8 = vrot.slane %v3028_v24, 4 }
0x1e7e   :  { %v7976_v29 = vsel %vm696_vm2, %v3734_v9, %v7967_v8 }
0x1e7f   :  { %3628 = vrot.lane.b32.xlu1 %v7784_v62, %s6795_s6  ;;  %v7960_v62 = vsel %vm696_vm2, %v3738_v7, %v7953_v58 }
0x1e80   :  { %v3748_v10 = vsel %vm593_vm1, %v7960_v62, 0 }
0x1ef3   :  { %v3614_v35 = vpop.xlane.xlu0 %3613 }
0x1ef7   :  { %v3617_v32 = vpop.xlane.xlu1 %3616  ;;  %v3627_v25 = vpop.permute.xlu0 %3626 }
0x1ef8   :  { %5834 = vmatprep.subr.bf16.mxu0 %v3627_v25  ;;  %6422 = vrcp.f32 %v3617_v32 }
0x1ef9   :  { %5835 = vmatpush3.bf16.msra.mxu0 %v3627_v25  ;;  %6424 = vrcp.f32 %v3614_v35 }
0x1efb   :  { %v3611_v33 = vpop.xlane.xlu1 %3610 }
0x1efc   :  { %6426 = vrcp.f32 %v3611_v33 }
0x1eff   :  { %v3629_v63 = vpop.permute.xlu1 %3628 }
0x1f00   :  { %v3638_v19 = vsel %vm696_vm2, %v3629_v63, 0  ;;  %5969 = vmatprep.subr.msk.bf16.mxu0 %vm696_vm2, %v3629_v63 }
0x1f01   :  { %5837 = vmatpush3.bf16.msra.mxu0 %v3638_v19 }
0x1f02   :  { %5970 = vmatprep.subr.msk.bf16.mxu0 %vm593_vm1, %v7960_v62  ;;  %v6423_v59 = vpop.eup %6422 }
0x1f03   :  { %v6425_v30 = vpop.eup %6424  ;;  %v3623_v44 = vmul.f32 %v6423_v59, %v6419_v4 }
0x1f04   :  { %v3622_v47 = vmul.f32 %v6425_v30, %v6417_v14 }
0x1f05   :  { %v3625_v51 = vpack.c.bf16 %v3623_v44, %v3623_v44 }
0x1f06   :  { %v6427_v6 = vpop.eup %6426 }
0x1f07   :  { %v3621_v12 = vmul.f32 %v6427_v6, %v6421_v16 }
0x1f09   :  { %v3624_v22 = vpack.c.bf16 %v3622_v47, %v3621_v12 }
0x1f0b   :  { %5838 = vmatprep.mubr.msk.bf16.mxu0 %vm654_vm3, %v3624_v22 }
0x1f0c   :  { %5839 = vmatmul.mubr.msk.bf16.vlgmr.msra.gmra.mrb[80].mxu0 %vm654_vm3, %v3625_v51 }
0x1f0d   :  { %5843 = vmatpush3.bf16.xpose.msra.mxu0 %v3748_v10  ;;  %5846 = vmatprep.mubr.msk.bf16.mxu0 %vm593_vm1, %v7976_v29 }
0x1f0e   :  { %5971 = vmatprep.subr.msk.bf16.mxu0 %vm593_vm1, %v7953_v58 }
0x1f15   :  { %5845 = vmatpush3.bf16.xpose.msra.mxu0 %v3751_v60 }
0x1f1c   :  { %5847 = vmatmul.mubr.msk.bf16.vlgmr.msra.gmra.mrb[84].mxu0 %vm593_vm1, %v7967_v8 }
0x1fdf   :  { %v7986_v17 = vpop.f32.mrb[80].mxu0 }
0x1fe0   :  { %v7988_v21 = vpop.f32.mrb[81].mxu0 }
0x1fe1   :  { %v5841_v24 = vpop.f32.mrb[82].mxu0 }
0x1fe2   :  { %v7990_v2 = vpop.f32.mrb[83].mxu0 }
0x1fe3   :  { %v6065_v38 = vpack.i.bf16 %v7990_v2, %v7988_v21 }
0x1fef   :  { %v5848_v40 = vpop.f32.mrb[84].mxu0 }
0x1ff0   :  { %v3787_v15 = vpop.f32.mrb[85].mxu0  ;;  %v3807_v45 = vsel %vm654_vm3, %v5848_v40, -inf }
0x1ff1   :  { %v5849_v18 = vpop.f32.mrb[86].mxu0  ;;  %v3801_v56 = vsel %vm654_vm3, %v3787_v15, -inf }
0x1ff2   :  { %3802 = vmax.xlane.f32.xlu1 %v3801_v56  ;;  %v3790_v42 = vpop.f32.mrb[87].mxu0 }
0x1ff3   :  { %v3804_v31 = vsel %vm654_vm3, %v3790_v42, -inf }
0x1ff4   :  { %3805 = vmax.xlane.f32.xlu0 %v3804_v31 }
0x1ff8   :  { %3808 = vmax.xlane.f32.xlu0 %v3807_v45 }
0x207f   :  { %v3803_v23 = vpop.xlane.xlu1 %3802 }
0x2080   :  { %v3810_v14 = vsub.f32 %v3787_v15, %v3803_v23 }
0x2081   :  { %v3806_v11 = vpop.xlane.xlu0 %3805 }
0x2082   :  { %v3813_v4 = vmul.f32 1.442695, %v3810_v14  ;;  %v3811_v20 = vsub.f32 %v3790_v42, %v3806_v11 }
0x2084   :  { %6428 = vpow2.f32 %v3813_v4  ;;  %v3815_v16 = vmul.f32 1.442695, %v3811_v20 }
0x2085   :  { %v3809_v52 = vpop.xlane.xlu0 %3808 }
0x2086   :  { %6430 = vpow2.f32 %v3815_v16  ;;  %v3812_v35 = vsub.f32 %v5848_v40, %v3809_v52 }
0x2088   :  { %v3817_v32 = vmul.f32 1.442695, %v3812_v35 }
0x208a   :  { %6432 = vpow2.f32 %v3817_v32 }
0x208e   :  { %v6429_v25 = vpop.eup %6428 }
0x208f   :  { %v3819_v33 = vsel %vm654_vm3, %v6429_v25, 0.0 }
0x2090   :  { %v6431_v63 = vpop.eup %6430  ;;  %3820 = vadd.xlane.f32.xlu1 %v3819_v33 }
0x2091   :  { %v3822_v7 = vsel %vm654_vm3, %v6431_v63, 0.0 }
0x2092   :  { %3823 = vadd.xlane.f32.xlu0 %v3822_v7 }
0x2094   :  { %v6433_v19 = vpop.eup %6432 }
0x2095   :  { %v3825_v59 = vsel %vm654_vm3, %v6433_v19, 0.0 }
0x2096   :  { %3826 = vadd.xlane.f32.xlu1 %v3825_v59 }
0x20a7   :  { %3904 = vrot.lane.b32.xlu1 %v7953_v58, %s6802_s0 }
0x20a8   :  { %3902 = vrot.lane.b32.xlu0 %v7960_v62, %s6802_s0 }
0x20ab   :  { %3898 = vrot.lane.b32.xlu1 %v7976_v29, %s6802_s0 }
0x20ac   :  { %3900 = vrot.lane.b32.xlu0 %v7967_v8, %s6802_s0 }
0x211d   :  { %v3821_v30 = vpop.xlane.xlu1 %3820 }
0x211e   :  { %6434 = vrcp.f32 %v3821_v30 }
0x211f   :  { %v3824_v6 = vpop.xlane.xlu0 %3823 }
0x2120   :  { %6436 = vrcp.f32 %v3824_v6 }
0x2123   :  { %v3827_v44 = vpop.xlane.xlu1 %3826  ;;  %v3903_v12 = vpop.permute.xlu0 %3902 }
0x2124   :  { %6438 = vrcp.f32 %v3827_v44  ;;  %5973 = vmatprep.subr.msk.bf16.mxu1 %vm593_vm1, %v3903_v12  ;;  %v3913_v18 = vsel %vm593_vm1, %v3903_v12, 0 }
0x2127   :  { %v3905_v10 = vpop.permute.xlu1 %3904  ;;  %v3901_v31 = vpop.permute.xlu0 %3900 }
0x2128   :  { %v6435_v47 = vpop.eup %6434  ;;  %v3916_v42 = vsel %vm593_vm1, %v3905_v10, 0 }
0x2129   :  { %v3831_v51 = vmul.f32 %v6435_v47, %v6429_v25 }
0x212a   :  { %v6437_v22 = vpop.eup %6436 }
0x212b   :  { %v3832_v9 = vmul.f32 %v6437_v22, %v6431_v63  ;;  %v3899_v56 = vpop.permute.xlu1 %3898 }
0x212d   :  { %v3834_v60 = vpack.c.bf16 %v3832_v9, %v3831_v51 }
0x212e   :  { %v6439_v24 = vpop.eup %6438 }
0x212f   :  { %v3833_v40 = vmul.f32 %v6439_v24, %v6433_v19  ;;  %5854 = vmatprep.mubr.msk.bf16.mxu1 %vm654_vm3, %v3834_v60 }
0x2131   :  { %v3835_v15 = vpack.c.bf16 %v3833_v40, %v3833_v40 }
0x2133   :  { %5855 = vmatmul.mubr.msk.bf16.vlgmr.msra.gmra.mrb[96].mxu1 %vm654_vm3, %v3835_v15 }
0x2134   :  { %5859 = vmatpush3.bf16.xpose.msra.mxu1 %v3913_v18  ;;  %5862 = vmatprep.mubr.msk.bf16.mxu1 %vm593_vm1, %v3899_v56 }
0x2135   :  { %5974 = vmatprep.subr.msk.bf16.mxu1 %vm593_vm1, %v3905_v10 }
0x213c   :  { %5861 = vmatpush3.bf16.xpose.msra.mxu1 %v3916_v42 }
0x2143   :  { %5863 = vmatmul.mubr.msk.bf16.vlgmr.msra.gmra.mrb[100].mxu1 %vm593_vm1, %v3901_v31 }
0x2206   :  { %v8016_v45 = vpop.f32.mrb[96].mxu1 }
0x2207   :  { %v8018_v23 = vpop.f32.mrb[97].mxu1 }
0x2208   :  { %v5857_v14 = vpop.f32.mrb[98].mxu1 }
0x2209   :  { %v8020_v11 = vpop.f32.mrb[99].mxu1 }
0x2216   :  { %v5864_v4 = vpop.f32.mrb[100].mxu1 }
0x2217   :  { %v3952_v20 = vpop.f32.mrb[101].mxu1  ;;  %v3972_v25 = vsel %vm654_vm3, %v5864_v4, -inf }
0x2218   :  { %v5865_v16 = vpop.f32.mrb[102].mxu1  ;;  %v3966_v52 = vsel %vm654_vm3, %v3952_v20, -inf }
0x2219   :  { %3967 = vmax.xlane.f32.xlu1 %v3966_v52  ;;  %v3955_v35 = vpop.f32.mrb[103].mxu1 }
0x221a   :  { %v3969_v32 = vsel %vm654_vm3, %v3955_v35, -inf }
0x221b   :  { %3970 = vmax.xlane.f32.xlu0 %v3969_v32 }
0x221f   :  { %3973 = vmax.xlane.f32.xlu0 %v3972_v25 }
0x22a6   :  { %v3968_v33 = vpop.xlane.xlu1 %3967 }
0x22a7   :  { %v3975_v19 = vsub.f32 %v3952_v20, %v3968_v33 }
0x22a8   :  { %v3971_v63 = vpop.xlane.xlu0 %3970 }
0x22a9   :  { %v3976_v7 = vsub.f32 %v3955_v35, %v3971_v63  ;;  %v3978_v44 = vmul.f32 1.442695, %v3975_v19 }
0x22ab   :  { %v3980_v59 = vmul.f32 1.442695, %v3976_v7 }
0x22ac   :  { %v3974_v30 = vpop.xlane.xlu0 %3973 }
0x22ad   :  { %6440 = vpow2.f32 %v3980_v59  ;;  %v3977_v6 = vsub.f32 %v5864_v4, %v3974_v30 }
0x22af   :  { %v3982_v12 = vmul.f32 1.442695, %v3977_v6 }
0x22b1   :  { %6442 = vpow2.f32 %v3982_v12 }
0x22b2   :  { %6444 = vpow2.f32 %v3978_v44 }
0x22b7   :  { %v6441_v47 = vpop.eup %6440 }
0x22b8   :  { %v3987_v22 = vsel %vm654_vm3, %v6441_v47, 0.0 }
0x22b9   :  { %3988 = vadd.xlane.f32.xlu0 %v3987_v22 }
0x22bb   :  { %v6443_v51 = vpop.eup %6442 }
0x22bc   :  { %v3990_v9 = vsel %vm654_vm3, %v6443_v51, 0.0  ;;  %v6445_v10 = vpop.eup %6444 }
0x22bd   :  { %3991 = vadd.xlane.f32.xlu1 %v3990_v9  ;;  %v3984_v60 = vsel %vm654_vm3, %v6445_v10, 0.0 }
0x22c1   :  { %3985 = vadd.xlane.f32.xlu1 %v3984_v60 }
0x22cf   :  { %4001 = vrot.lane.b32.xlu0 %v7915_v53, %s6802_s0 }
0x22d2   :  { %4003 = vrot.lane.b32.xlu1 %v7909_v3, %s6802_s0 }
0x22d3   :  { %4069 = vrot.lane.b32.xlu0 %v7953_v58, %s6787_s25 }
0x22d6   :  { %4067 = vrot.lane.b32.xlu1 %v7960_v62, %s6787_s25 }
0x22d7   :  { %4065 = vrot.lane.b32.xlu0 %v7967_v8, %s6787_s25 }
0x22da   :  { %4063 = vrot.lane.b32.xlu1 %v7976_v29, %s6787_s25 }
0x2346   :  { %v3989_v24 = vpop.xlane.xlu0 %3988 }
0x234a   :  { %v3992_v40 = vpop.xlane.xlu1 %3991  ;;  %v4002_v15 = vpop.permute.xlu0 %4001 }
0x234b   :  { %5866 = vmatprep.subr.bf16.mxu0 %v4002_v15  ;;  %6446 = vrcp.f32 %v3992_v40 }
0x234c   :  { %5867 = vmatpush3.bf16.msra.mxu0 %v4002_v15  ;;  %6448 = vrcp.f32 %v3989_v24 }
0x234e   :  { %v3986_v18 = vpop.xlane.xlu1 %3985  ;;  %v4070_v7 = vpop.permute.xlu0 %4069 }
0x234f   :  { %6450 = vrcp.f32 %v3986_v18  ;;  %v4081_v19 = vsel %vm593_vm1, %v4070_v7, 0 }
0x2352   :  { %v4004_v56 = vpop.permute.xlu1 %4003  ;;  %v4066_v59 = vpop.permute.xlu0 %4065 }
0x2353   :  { %v4013_v42 = vsel %vm696_vm2, %v4004_v56, 0  ;;  %5975 = vmatprep.subr.msk.bf16.mxu0 %vm696_vm2, %v4004_v56 }
0x2354   :  { %5869 = vmatpush3.bf16.msra.mxu0 %v4013_v42 }
0x2355   :  { %v6447_v31 = vpop.eup %6446 }
0x2356   :  { %v4068_v14 = vpop.permute.xlu1 %4067  ;;  %v6449_v4 = vpop.eup %6448  ;;  %v3998_v16 = vmul.f32 %v6447_v31, %v6443_v51 }
0x2357   :  { %5976 = vmatprep.subr.msk.bf16.mxu0 %vm593_vm1, %v4068_v14  ;;  %v3997_v35 = vmul.f32 %v6449_v4, %v6441_v47  ;;  %v4078_v33 = vsel %vm593_vm1, %v4068_v14, 0 }
0x2358   :  { %v4000_v25 = vpack.c.bf16 %v3998_v16, %v3998_v16 }
0x2359   :  { %v6451_v20 = vpop.eup %6450 }
0x235a   :  { %v3996_v52 = vmul.f32 %v6451_v20, %v6445_v10  ;;  %v4064_v63 = vpop.permute.xlu1 %4063 }
0x235c   :  { %v3999_v32 = vpack.c.bf16 %v3997_v35, %v3996_v52 }
0x235e   :  { %5870 = vmatprep.mubr.msk.bf16.mxu0 %vm654_vm3, %v3999_v32 }
0x235f   :  { %5871 = vmatmul.mubr.msk.bf16.vlgmr.msra.gmra.mrb[88].mxu0 %vm654_vm3, %v4000_v25 }
0x2360   :  { %5875 = vmatpush3.bf16.xpose.msra.mxu0 %v4078_v33  ;;  %5878 = vmatprep.mubr.msk.bf16.mxu0 %vm593_vm1, %v4064_v63 }
0x2361   :  { %5977 = vmatprep.subr.msk.bf16.mxu0 %vm593_vm1, %v4070_v7 }
0x2368   :  { %5877 = vmatpush3.bf16.xpose.msra.mxu0 %v4081_v19 }
0x236f   :  { %5879 = vmatmul.mubr.msk.bf16.vlgmr.msra.gmra.mrb[92].mxu0 %vm593_vm1, %v4066_v59 }
0x2432   :  { %v8050_v30 = vpop.f32.mrb[88].mxu0 }
0x2433   :  { %v8052_v6 = vpop.f32.mrb[89].mxu0 }
0x2434   :  { %v6070_v44 = vpack.i.bf16 %v8052_v6, %v7924_v28  ;;  %v5873_v12 = vpop.f32.mrb[90].mxu0 }
0x2435   :  { %v8056_v47 = vpop.f32.mrb[91].mxu0 }
0x2436   :  { %v6085_v22 = vpack.i.bf16 %v8050_v30, %v8056_v47 }
0x2442   :  { %v5880_v51 = vpop.f32.mrb[92].mxu0 }
0x2443   :  { %v4117_v9 = vpop.f32.mrb[93].mxu0  ;;  %v4137_v15 = vsel %vm654_vm3, %v5880_v51, -inf }
0x2444   :  { %v5881_v10 = vpop.f32.mrb[94].mxu0  ;;  %v4131_v60 = vsel %vm654_vm3, %v4117_v9, -inf }
0x2445   :  { %4132 = vmax.xlane.f32.xlu1 %v4131_v60  ;;  %v4120_v24 = vpop.f32.mrb[95].mxu0 }
0x2446   :  { %v4134_v40 = vsel %vm654_vm3, %v4120_v24, -inf }
0x2447   :  { %4135 = vmax.xlane.f32.xlu0 %v4134_v40 }
0x244b   :  { %4138 = vmax.xlane.f32.xlu0 %v4137_v15 }
0x24d2   :  { %v4133_v18 = vpop.xlane.xlu1 %4132 }
0x24d3   :  { %v4140_v31 = vsub.f32 %v4117_v9, %v4133_v18 }
0x24d4   :  { %v4136_v56 = vpop.xlane.xlu0 %4135 }
0x24d5   :  { %v4141_v42 = vsub.f32 %v4120_v24, %v4136_v56  ;;  %v4143_v16 = vmul.f32 1.442695, %v4140_v31 }
0x24d7   :  { %v4145_v14 = vmul.f32 1.442695, %v4141_v42 }
0x24d8   :  { %v4139_v4 = vpop.xlane.xlu0 %4138 }
0x24d9   :  { %6452 = vpow2.f32 %v4145_v14  ;;  %v4142_v20 = vsub.f32 %v5880_v51, %v4139_v4 }
0x24db   :  { %v4147_v52 = vmul.f32 1.442695, %v4142_v20 }
0x24dd   :  { %6454 = vpow2.f32 %v4147_v52 }
0x24de   :  { %6456 = vpow2.f32 %v4143_v16 }
0x24e3   :  { %v6453_v35 = vpop.eup %6452 }
0x24e4   :  { %v4152_v32 = vsel %vm654_vm3, %v6453_v35, 0.0 }
0x24e5   :  { %4153 = vadd.xlane.f32.xlu0 %v4152_v32 }
0x24e7   :  { %v6455_v25 = vpop.eup %6454 }
0x24e8   :  { %v4155_v33 = vsel %vm654_vm3, %v6455_v25, 0.0  ;;  %v6457_v63 = vpop.eup %6456 }
0x24e9   :  { %4156 = vadd.xlane.f32.xlu1 %v4155_v33  ;;  %v4149_v7 = vsel %vm654_vm3, %v6457_v63, 0.0 }
0x24ed   :  { %4150 = vadd.xlane.f32.xlu1 %v4149_v7 }
0x24fb   :  { %4166 = vrot.lane.b32.xlu0 %v7915_v53, %s6787_s25 }
0x24fe   :  { %4168 = vrot.lane.b32.xlu1 %v7909_v3, %s6787_s25 }
0x24ff   :  { %4234 = vrot.lane.b32.xlu0 %v7953_v58, %s6795_s6 }
0x2502   :  { %4232 = vrot.lane.b32.xlu1 %v7960_v62, %s6795_s6 }
0x2503   :  { %4230 = vrot.lane.b32.xlu0 %v7967_v8, %s6795_s6 }
0x2506   :  { %4228 = vrot.lane.b32.xlu1 %v7976_v29, %s6795_s6 }
0x2572   :  { %v4154_v19 = vpop.xlane.xlu0 %4153 }
0x2576   :  { %v4157_v59 = vpop.xlane.xlu1 %4156  ;;  %v4167_v12 = vpop.permute.xlu0 %4166 }
0x2577   :  { %5882 = vmatprep.subr.bf16.mxu1 %v4167_v12  ;;  %6458 = vrcp.f32 %v4157_v59 }
0x2578   :  { %5883 = vmatpush3.bf16.msra.mxu1 %v4167_v12  ;;  %6460 = vrcp.f32 %v4154_v19 }
0x257a   :  { %v4151_v51 = vpop.xlane.xlu1 %4150  ;;  %v4235_v31 = vpop.permute.xlu0 %4234 }
0x257b   :  { %6462 = vrcp.f32 %v4151_v51  ;;  %v4246_v14 = vsel %vm593_vm1, %v4235_v31, 0 }
0x257e   :  { %v4169_v9 = vpop.permute.xlu1 %4168  ;;  %v4231_v4 = vpop.permute.xlu0 %4230 }
0x257f   :  { %v4178_v58 = vsel %vm696_vm2, %v4169_v9, 0  ;;  %5978 = vmatprep.subr.msk.bf16.mxu1 %vm696_vm2, %v4169_v9 }
0x2580   :  { %5885 = vmatpush3.bf16.msra.mxu1 %v4178_v58 }
0x2581   :  { %v6459_v62 = vpop.eup %6458 }
0x2582   :  { %v4233_v8 = vpop.permute.xlu1 %4232  ;;  %v6461_v10 = vpop.eup %6460  ;;  %v4163_v60 = vmul.f32 %v6459_v62, %v6455_v25 }
0x2583   :  { %5979 = vmatprep.subr.msk.bf16.mxu1 %vm593_vm1, %v4233_v8  ;;  %v4162_v40 = vmul.f32 %v6461_v10, %v6453_v35  ;;  %v4243_v56 = vsel %vm593_vm1, %v4233_v8, 0 }
0x2584   :  { %v4165_v18 = vpack.c.bf16 %v4163_v60, %v4163_v60 }
0x2585   :  { %v6463_v29 = vpop.eup %6462 }
0x2586   :  { %v4161_v24 = vmul.f32 %v6463_v29, %v6457_v63  ;;  %v4229_v42 = vpop.permute.xlu1 %4228 }
0x2588   :  { %v4164_v15 = vpack.c.bf16 %v4162_v40, %v4161_v24 }
0x258a   :  { %5886 = vmatprep.mubr.msk.bf16.mxu1 %vm654_vm3, %v4164_v15 }
0x258b   :  { %5887 = vmatmul.mubr.msk.bf16.vlgmr.msra.gmra.mrb[104].mxu1 %vm654_vm3, %v4165_v18 }
0x258c   :  { %5891 = vmatpush3.bf16.xpose.msra.mxu1 %v4243_v56  ;;  %5894 = vmatprep.mubr.msk.bf16.mxu1 %vm593_vm1, %v4229_v42 }
0x258d   :  { %5980 = vmatprep.subr.msk.bf16.mxu1 %vm593_vm1, %v4235_v31 }
0x2594   :  { %5893 = vmatpush3.bf16.xpose.msra.mxu1 %v4246_v14 }
0x259b   :  { %5895 = vmatmul.mubr.msk.bf16.vlgmr.msra.gmra.mrb[108].mxu1 %vm593_vm1, %v4231_v4 }
0x259c   :  { %4774 = vmatprep.mubr.bf16.mxu1 %v6799_v0 }
0x265e   :  { %v8089_v20 = vpop.f32.mrb[104].mxu1 }
0x265f   :  { %v4214_v16 = vpop.f32.mrb[105].mxu1 }
0x2660   :  { %v6075_v52 = vpack.i.bf16 %v4214_v16, %v7932_v39  ;;  %v5889_v35 = vpop.f32.mrb[106].mxu1 }
0x2661   :  { %v8092_v32 = vpop.f32.mrb[107].mxu1 }
0x2662   :  { %v6090_v25 = vpack.i.bf16 %v8089_v20, %v8092_v32 }
0x266e   :  { %v5896_v33 = vpop.f32.mrb[108].mxu1 }
0x266f   :  { %v4282_v63 = vpop.f32.mrb[109].mxu1  ;;  %v4302_v51 = vsel %vm654_vm3, %v5896_v33, -inf }
0x2670   :  { %v5897_v7 = vpop.f32.mrb[110].mxu1  ;;  %v4296_v19 = vsel %vm654_vm3, %v4282_v63, -inf }
0x2671   :  { %4297 = vmax.xlane.f32.xlu1 %v4296_v19  ;;  %v4285_v59 = vpop.f32.mrb[111].mxu1 }
0x2672   :  { %v4299_v12 = vsel %vm654_vm3, %v4285_v59, -inf }
0x2673   :  { %4300 = vmax.xlane.f32.xlu0 %v4299_v12 }
0x2677   :  { %4303 = vmax.xlane.f32.xlu0 %v4302_v51 }
0x26fe   :  { %v4298_v39 = vpop.xlane.xlu1 %4297 }
0x26ff   :  { %v4305_v62 = vsub.f32 %v4282_v63, %v4298_v39 }
0x2700   :  { %v4301_v9 = vpop.xlane.xlu0 %4300 }
0x2701   :  { %v4306_v58 = vsub.f32 %v4285_v59, %v4301_v9  ;;  %v4308_v60 = vmul.f32 1.442695, %v4305_v62  ;;  %v6212_v59 = vld [vmem:[#allocation7 + $0x40] sm:$0xff]   ;;  %v6214_v9 = vld [vmem:[#allocation7 + $0x50] sm:$0xff]  }
0x2702   :  { %v6216_v62 = vld [vmem:[#allocation7 + $0x60] sm:$0xff]  }
0x2703   :  { %v4310_v8 = vmul.f32 1.442695, %v4306_v58  ;;  %v6215_v58 = vld [vmem:[#allocation7 + $0x58] sm:$0xff]  }
0x2704   :  { %v4304_v10 = vpop.xlane.xlu0 %4303 }
0x2705   :  { %6464 = vpow2.f32 %v4310_v8  ;;  %v4307_v29 = vsub.f32 %v5896_v33, %v4304_v10  ;;  %v6217_v8 = vld [vmem:[#allocation7 + $0x68] sm:$0xff]   ;;  %v6218_v10 = vld [vmem:[#allocation7 + $0x70] sm:$0xff]  }
0x2707   :  { %v4312_v24 = vmul.f32 1.442695, %v4307_v29  ;;  %v6219_v29 = vld [vmem:[#allocation7 + $0x78] sm:$0xff]  }
0x2709   :  { %6466 = vpow2.f32 %v4312_v24 }
0x270a   :  { %6468 = vpow2.f32 %v4308_v60 }
0x270f   :  { %v6465_v40 = vpop.eup %6464 }
0x2710   :  { %v4317_v15 = vsel %vm654_vm3, %v6465_v40, 0.0 }
0x2711   :  { %4318 = vadd.xlane.f32.xlu0 %v4317_v15 }
0x2713   :  { %v6467_v18 = vpop.eup %6466 }
0x2714   :  { %v4320_v56 = vsel %vm654_vm3, %v6467_v18, 0.0  ;;  %v6469_v42 = vpop.eup %6468 }
0x2715   :  { %4321 = vadd.xlane.f32.xlu1 %v4320_v56  ;;  %v4314_v31 = vsel %vm654_vm3, %v6469_v42, 0.0 }
0x2719   :  { %4315 = vadd.xlane.f32.xlu1 %v4314_v31 }
0x2727   :  { %4331 = vrot.lane.b32.xlu0 %v7915_v53, %s6795_s6 }
0x272a   :  { %4333 = vrot.lane.b32.xlu1 %v7909_v3, %s6795_s6 }
0x272b   :  { %6061 = vrot.lane.b32.xlu0 %v6060_v61, %s6787_s25 }
0x272e   :  { %6056 = vrot.lane.b32.xlu1 %v6055_v27, %s6795_s6 }
0x272f   :  { %6071 = vrot.lane.b32.xlu0 %v6070_v44, %s6795_s6 }
0x2732   :  { %6066 = vrot.lane.b32.xlu1 %v6065_v38, %s6802_s0 }
0x2736   :  { %6076 = vrot.lane.b32.xlu1 %v6075_v52, %s6787_s25 }
0x273a   :  { %6086 = vrot.lane.b32.xlu1 %v6085_v22, %s6795_s6 }
0x279e   :  { %v4319_v3 = vpop.xlane.xlu0 %4318 }
0x27a2   :  { %v4322_v53 = vpop.xlane.xlu1 %4321  ;;  %v4332_v5 = vpop.permute.xlu0 %4331 }
0x27a3   :  { %5898 = vmatprep.subr.bf16.mxu0 %v4332_v5  ;;  %6470 = vrcp.f32 %v4322_v53 }
0x27a4   :  { %5899 = vmatpush3.bf16.msra.mxu0 %v4332_v5  ;;  %6472 = vrcp.f32 %v4319_v3 }
0x27a6   :  { %v4316_v28 = vpop.xlane.xlu1 %4315  ;;  %v6062_v21 = vpop.permute.xlu0 %6061 }
0x27a7   :  { %6474 = vrcp.f32 %v4316_v28  ;;  %v6064_v22 = vunpack.i.h.bf16 %v6062_v21  ;;  %v6063_v14 = vunpack.i.l.bf16 %v6062_v21 }
0x27aa   :  { %v4334_v54 = vpop.permute.xlu1 %4333 }
0x27ab   :  { %v4343_v27 = vsel %vm696_vm2, %v4334_v54, 0  ;;  %5981 = vmatprep.subr.msk.bf16.mxu0 %vm696_vm2, %v4334_v54 }
0x27ac   :  { %5901 = vmatpush3.bf16.msra.mxu0 %v4343_v27 }
0x27ad   :  { %5906 = vmatprep.subr.bf16.mxu0 %v6800_v1  ;;  %v6471_v55 = vpop.eup %6470 }
0x27ae   :  { %v6057_v26 = vpop.permute.xlu1 %6056  ;;  %v6473_v61 = vpop.eup %6472  ;;  %v4328_v6 = vmul.f32 %v6471_v55, %v6467_v18 }
0x27af   :  { %v6059_v2 = vunpack.i.h.bf16 %v6057_v26  ;;  %v6058_v38 = vunpack.i.l.bf16 %v6057_v26  ;;  %v4327_v52 = vmul.f32 %v6473_v61, %v6465_v40  ;;  %v6072_v26 = vpop.permute.xlu0 %6071 }
0x27b0   :  { %v4330_v51 = vpack.c.bf16 %v4328_v6, %v4328_v6  ;;  %v6074_v20 = vunpack.i.h.bf16 %v6072_v26  ;;  %v6073_v32 = vunpack.i.l.bf16 %v6072_v26  ;;  %v6231_v26 = vld [vmem:[%s8332_s8 + $0xb4] ss:$8 sps:$4 sm:$0xff]  }
0x27b1   :  { %v6475_v30 = vpop.eup %6474  ;;  %v3725_v44 = vsel %vm593_vm1, %v7864_v43, %v6059_v2  ;;  %v3724_v47 = vsel %vm593_vm1, %v7862_v37, %v6058_v38  ;;  %v6213_v37 = vld [vmem:[#allocation7 + $0x48] sm:$0xff]  }
0x27b2   :  { %v6067_v4 = vpop.permute.xlu1 %6066  ;;  %v4326_v16 = vmul.f32 %v6475_v30, %v6469_v42  ;;  %v3727_v63 = vsel %vm1288_vm4, %v3724_v47, %v6063_v14  ;;  %v3728_v7 = vsel %vm1288_vm4, %v3725_v44, %v6064_v22  ;;  %v8158_v42 = vld [vmem:[#allocation8 + $0x1] ss:$0 sm:$0xff]  ;;  %v4429_v38 = vsel %vm593_vm1, %v8018_v23, %v6074_v20  ;;  %v6229_v20 = vld [vmem:[%s8332_s8 + $0xb0] ss:$8 sps:$4 sm:$0xff]  }
0x27b3   :  { %v6069_v35 = vunpack.i.h.bf16 %v6067_v4  ;;  %v6068_v33 = vunpack.i.l.bf16 %v6067_v4  ;;  %v3726_v30 = vsel %vm593_vm1, %v7860_v41, %v6073_v32  ;;  %v6234_v32 = vld [vmem:[%s8332_s8 + $0xc4] ss:$8 sps:$4 sm:$0xff]  }
0x27b4   :  { %v4329_v19 = vpack.c.bf16 %v4327_v52, %v4326_v16 }
0x27b5   :  { %v3730_v12 = vsel %vm1292_vm5, %v3727_v63, %v6068_v33  ;;  %v3731_v43 = vsel %vm1292_vm5, %v3728_v7, %v6069_v35 }
0x27b6   :  { %v4438_v39 = vpack.c.bf16 %v3731_v43, %v3730_v12  ;;  %5902 = vmatprep.mubr.msk.bf16.mxu0 %vm654_vm3, %v4329_v19  ;;  %v6077_v55 = vpop.permute.xlu1 %6076 }
0x27b7   :  { %5903 = vmatmul.mubr.msk.bf16.vlgmr.msra.gmra.mrb[96].mxu0 %vm654_vm3, %v4330_v51  ;;  %v6078_v61 = vunpack.i.l.bf16 %v6077_v55 }
0x27b8   :  { %5907 = vmatpush3.bf16.msra.mxu0 %v6212_v59  ;;  %5922 = vmatprep.mubr.msk.bf16.mxu0 %vm6801_vm0, %v6800_v1 }
0x27b9   :  { %5908 = vmatprep.subr.bf16.mxu0 %v6800_v1  ;;  %v3729_v44 = vsel %vm1288_vm4, %v3726_v30, %v6078_v61  ;;  %v6237_v61 = vld [vmem:[%s8332_s8 + $0xd4] ss:$8 sps:$4 sm:$0xff]  }
0x27ba   :  { %v6087_v21 = vpop.permute.xlu1 %6086  ;;  %v6243_v30 = vld [vmem:[%s8332_s8 + $0xf4] ss:$8 sps:$4 sm:$0xff]  }
0x27bb   :  { %v6089_v47 = vunpack.i.h.bf16 %v6087_v21  ;;  %v6088_v22 = vunpack.i.l.bf16 %v6087_v21  ;;  %v6235_v21 = vld [vmem:[%s8332_s8 + $0xd0] ss:$8 sps:$4 sm:$0xff]  }
0x27bc   :  { %5909 = vmatpush3.bf16.msra.mxu0 %v6213_v37 }
0x27bd   :  { %5910 = vmatprep.subr.bf16.mxu0 %v6800_v1  ;;  %v4431_v41 = vsel %vm593_vm1, %v8016_v45, %v6089_v47  ;;  %v4430_v63 = vsel %vm593_vm1, %v8020_v11, %v6088_v22 }
0x27c0   :  { %5911 = vmatpush3.bf16.msra.mxu0 %v6214_v9 }
0x27c1   :  { %5912 = vmatprep.subr.bf16.mxu0 %v6800_v1 }
0x27c4   :  { %5913 = vmatpush3.bf16.msra.mxu0 %v6215_v58 }
0x27c5   :  { %5914 = vmatprep.subr.bf16.mxu0 %v6800_v1 }
0x27c8   :  { %5915 = vmatpush3.bf16.msra.mxu0 %v6216_v62 }
0x27c9   :  { %5916 = vmatprep.subr.bf16.mxu0 %v6800_v1 }
0x27cc   :  { %5917 = vmatpush3.bf16.msra.mxu0 %v6217_v8 }
0x27cd   :  { %5918 = vmatprep.subr.bf16.mxu0 %v6800_v1 }
0x27d0   :  { %5919 = vmatpush3.bf16.msra.mxu0 %v6218_v10 }
0x27d1   :  { %5920 = vmatprep.subr.bf16.mxu0 %v6800_v1 }
0x27d4   :  { %5921 = vmatpush3.bf16.msra.mxu0 %v6219_v29 }
0x27d7   :  { %5923 = vmatmul.mubr.bf16.vlgmr.msra.gmra.mrb[100].mxu0 %v4438_v39 }
0x27d8   :  { %5926 = vmatprep.mubr.msk.bf16.mxu0 %vm6801_vm0, %v6800_v1 }
0x288a   :  { %v5904_v60 = vpop.f32.mrb[96].mxu0 }
0x288b   :  { %v4379_v24 = vpop.f32.mrb[97].mxu0 }
0x288c   :  { %v6080_v40 = vpack.i.bf16 %v4379_v24, %v7986_v17  ;;  %v5905_v15 = vpop.f32.mrb[98].mxu0 }
0x288d   :  { %v4382_v18 = vpop.f32.mrb[99].mxu0 }
0x288e   :  { %v6095_v56 = vpack.i.bf16 %v5904_v60, %v4382_v18  ;;  %6081 = vrot.lane.b32.xlu0 %v6080_v40, %s6802_s0 }
0x2890   :  { %6096 = vrot.lane.b32.xlu1 %v6095_v56, %s6802_s0 }
0x2892   :  { %6091 = vrot.lane.b32.xlu0 %v6090_v25, %s6787_s25  ;;  %v6079_v25 = vunpack.i.h.bf16 %v6077_v55  ;;  %v6226_v55 = vld [vmem:[%s8332_s8 + $0xa0] ss:$8 sps:$4 sm:$0xff]  }
0x28aa   :  { %v4529_v31 = vpop.f32.mrb[100].mxu0 }
0x28ab   :  { %v4530_v3 = vadd.f32 %v8158_v42, %v4529_v31  ;;  %v5924_v53 = vpop.f32.mrb[101].mxu0 }
0x28ac   :  { %v4532_v5 = vpop.f32.mrb[102].mxu0 }
0x28ad   :  { %v5925_v17 = vpop.f32.mrb[103].mxu0  ;;  %v4533_v28 = vadd.f32 %v8158_v42, %v4532_v5  ;;  %v4552_v54 = vadd.f32 %v4530_v3, %v7715_v57 }
0x28af   :  { %v4553_v27 = vadd.f32 %v4533_v28, %v7718_v34  ;;  %v4432_v34 = vsel %vm1288_vm4, %v4429_v38, %v6079_v25  ;;  %v6232_v25 = vld [vmem:[%s8332_s8 + $0xc0] ss:$8 sps:$4 sm:$0xff]  }
0x28b0   :  { %v6238_v38 = vld [vmem:[%s8332_s8 + $0xe0] ss:$8 sps:$4 sm:$0xff]  }
0x28b1   :  { %4558 = vadd.xlane.f32.xlu0 %v4552_v54 }
0x28b4   :  { %4560 = vadd.xlane.f32.xlu1 %v4553_v27 }
0x2900   :  { %v6082_v2 = vpop.permute.xlu0 %6081 }
0x2901   :  { %v6084_v6 = vunpack.i.h.bf16 %v6082_v2  ;;  %v6083_v57 = vunpack.i.l.bf16 %v6082_v2  ;;  %v6240_v2 = vld [vmem:[%s8332_s8 + $0xe4] ss:$8 sps:$4 sm:$0xff]  }
0x2902   :  { %v6097_v14 = vpop.permute.xlu1 %6096 }
0x2903   :  { %v3732_v4 = vsel %vm1292_vm5, %v3729_v44, %v6083_v57  ;;  %v4435_v16 = vsel %vm1292_vm5, %v4432_v34, %v6084_v6  ;;  %v6099_v7 = vunpack.i.h.bf16 %v6097_v14  ;;  %v6098_v19 = vunpack.i.l.bf16 %v6097_v14  ;;  %v6241_v6 = vld [vmem:[%s8332_s8 + $0xf0] ss:$8 sps:$4 sm:$0xff]  }
0x2904   :  { %v6092_v52 = vpop.permute.xlu0 %6091  ;;  %v4439_v35 = vpack.c.bf16 %v4435_v16, %v3732_v4 }
0x2905   :  { %v6094_v33 = vunpack.i.h.bf16 %v6092_v52  ;;  %v6093_v23 = vunpack.i.l.bf16 %v6092_v52 }
0x2906   :  { %5927 = vmatmul.mubr.bf16.gmra.mrb[104].mxu0 %v4439_v35 }
0x2907   :  { %v4434_v59 = vsel %vm1288_vm4, %v4431_v41, %v6094_v33  ;;  %v4433_v12 = vsel %vm1288_vm4, %v4430_v63, %v6093_v23  ;;  %5930 = vmatprep.mubr.msk.bf16.mxu0 %vm6801_vm0, %v6800_v1 }
0x2908   :  { %v4436_v43 = vsel %vm1292_vm5, %v4433_v12, %v6098_v19  ;;  %v4437_v51 = vsel %vm1292_vm5, %v4434_v59, %v6099_v7 }
0x2909   :  { %v4440_v39 = vpack.c.bf16 %v4437_v51, %v4436_v43 }
0x290e   :  { %5931 = vmatmul.mubr.bf16.gmra.mrb[108].mxu0 %v4440_v39 }
0x293e   :  { %v4559_v10 = vpop.xlane.xlu0 %4558 }
0x293f   :  { %v4570_v1 = vmul.f32 0.0078125, %v4559_v10  ;;  %v8267_v10 = vld [vmem:[#allocation11 + $0x1] ss:$0 sm:$0xff] }
0x2941   :  { %v4561_v29 = vpop.xlane.xlu1 %4560  ;;  %v8187_v31 = vsub.f32 %v4552_v54, %v4570_v1  ;;  %v6223_v54 = vld [vmem:[%s8332_s8 + $0x90] ss:$8 sps:$4 sm:$0xff]  }
0x2942   :  { %v4571_v40 = vmul.f32 0.0078125, %v4561_v29 }
0x2944   :  { %v8191_v5 = vsub.f32 %v4553_v27, %v4571_v40  ;;  %v6228_v27 = vld [vmem:[%s8332_s8 + $0xa4] ss:$8 sps:$4 sm:$0xff]   ;;  %v6244_v40 = vld [vmem:[#allocation14 + $0xc0] sm:$0xff]  }
0x2945   :  { %5532 = vmatprep.subr.bf16.mxu0 %v6244_v40 }
0x2946   :  { %v4583_v28 = vmul.f32 %v8191_v5, %v8191_v5 }
0x29d9   :  { %v4537_v45 = vpop.f32.mrb[104].mxu0 }
0x29da   :  { %v4538_v37 = vadd.f32 %v8158_v42, %v4537_v45  ;;  %v5928_v11 = vpop.f32.mrb[105].mxu0 }
0x29db   :  { %v4540_v9 = vpop.f32.mrb[106].mxu0  ;;  %v8262_v11 = vld [vmem:[#allocation10 + $0x1] ss:$0 sm:$0xff] }
0x29dc   :  { %v4554_v58 = vadd.f32 %v4538_v37, %v7728_v36  ;;  %v4541_v62 = vadd.f32 %v8158_v42, %v4540_v9  ;;  %v5929_v8 = vpop.f32.mrb[107].mxu0 }
0x29de   :  { %4562 = vadd.xlane.f32.xlu0 %v4554_v58  ;;  %v4555_v60 = vadd.f32 %v4541_v62, %v7731_v50  ;;  %v4582_v50 = vmul.f32 %v8187_v31, %v8187_v31 }
0x29e1   :  { %v4545_v24 = vpop.f32.mrb[108].mxu0 }
0x29e2   :  { %v4546_v15 = vadd.f32 %v8158_v42, %v4545_v24  ;;  %4564 = vadd.xlane.f32.xlu0 %v4555_v60  ;;  %v5932_v18 = vpop.f32.mrb[109].mxu0 }
0x29e3   :  { %v4548_v56 = vpop.f32.mrb[110].mxu0  ;;  %v6246_v18 = vld [vmem:[#allocation14 + $0xc8] sm:$0xff]  }
0x29e4   :  { %v4556_v36 = vadd.f32 %v4546_v15, %v7767_v49  ;;  %v4549_v3 = vadd.f32 %v8158_v42, %v4548_v56  ;;  %v5933_v53 = vpop.f32.mrb[111].mxu0  ;;  %v6222_v49 = vld [vmem:[%s8332_s8 + $0x84] ss:$8 sps:$4 sm:$0xff]   ;;  %v6220_v42 = vld [vmem:[%s8332_s8 + $0x80] ss:$8 sps:$4 sm:$0xff]   ;;  %v6245_v15 = vld [vmem:[#allocation14 + $0x80] sm:$0xff]  }
0x29e5   :  { %4742 = vmatprep.subr.bf16.mxu1 %v6222_v49  ;;  %5533 = vmatpush3.bf16.msra.mxu0 %v6245_v15  ;;  %v6247_v56 = vld [vmem:[#allocation14 + $0x88] sm:$0xff]   ;;  %v6251_v53 = vld [vmem:[#allocation14 + $0x98] sm:$0xff]   ;;  %v6256_v49 = vld [vmem:[#allocation14 + $0xf0] sm:$0xff]  }
0x29e6   :  { %v4557_v17 = vadd.f32 %v4549_v3, %v7770_v13  ;;  %4566 = vadd.xlane.f32.xlu1 %v4556_v36  ;;  %4743 = vmatpush1.bf16.msra.mxu1 %v6220_v42  ;;  %v6225_v13 = vld [vmem:[%s8332_s8 + $0x94] ss:$8 sps:$4 sm:$0xff]   ;;  %v6250_v3 = vld [vmem:[#allocation14 + $0xd8] sm:$0xff]   ;;  %v6257_v42 = vld [vmem:[#allocation14 + $0xb0] sm:$0xff]   ;;  %s6803_s8 = smov [#allocation20]  }
0x29e7   :  { %4744 = vmatprep.subr.bf16.mxu1 %v6225_v13  ;;  %5534 = vmatprep.subr.bf16.mxu0 %v6246_v18  ;;  %v6258_v13 = vld [vmem:[#allocation14 + $0xf8] sm:$0xff]   ;;  %s5089_s11 = sshll.u32 %s6803_s8, 4  ;;  %s5090_s11 = int_to_ptr.vmem [resolvable:$true] %s5089_s11 }
0x29e8   :  { %4568 = vadd.xlane.f32.xlu0 %v4557_v17  ;;  %s6742_s15 = scalar_lea.vmem %s5090_s11, 768  ;;  %p6747_p5 = scmp.lt.s32.totalorder %s5090_s11, %s5090_s11 }
0x29e9   :  { %5535 = vmatpush3.bf16.msra.mxu0 %v6247_v56  ;;  %p6743_p4 = scmp.ne.s32.totalorder %s5090_s11, %s6742_s15  ;;  %p6748_p6 = scmp.lt.s32.totalorder %s6742_s15, %s6742_s15 }
0x29ea   :  { %4588 = vadd.xlane.f32.xlu1 %v4582_v50  ;;  %4745 = vmatpush1.bf16.msra.mxu1 %v6223_v54  ;;  %v6254_v50 = vld [vmem:[#allocation14 + $0xe8] sm:$0xff]   ;;  %v6259_v54 = vld [vmem:[#allocation14 + $0xb8] sm:$0xff]  }
0x29eb   :  { %4746 = vmatprep.subr.bf16.mxu1 %v6228_v27  ;;  %p6749_p7 = por %p6748_p6, %p6747_p5 }
0x29ec   :  { %4590 = vadd.xlane.f32.xlu0 %v4583_v28  ;;  %v6255_v28 = vld [vmem:[#allocation14 + $0xa8] sm:$0xff]  }
0x29ed   :  { %p6750_p8 = pnand %p6749_p7, %p6743_p4 }
0x29ee   :  { %4747 = vmatpush1.bf16.msra.mxu1 %v6226_v55 }
0x29ef   :  { %4748 = vmatprep.subr.bf16.mxu1 %v6231_v26 }
0x29f2   :  { %4749 = vmatpush1.bf16.msra.mxu1 %v6229_v20 }
0x29f3   :  { %4750 = vmatprep.subr.bf16.mxu1 %v6234_v32 }
0x29f6   :  { %4751 = vmatpush1.bf16.msra.mxu1 %v6232_v25 }
0x29f7   :  { %4752 = vmatprep.subr.bf16.mxu1 %v6237_v61 }
0x29fa   :  { %4753 = vmatpush1.bf16.msra.mxu1 %v6235_v21 }
0x29fb   :  { %4754 = vmatprep.subr.bf16.mxu1 %v6240_v2 }
0x29fe   :  { %4755 = vmatpush1.bf16.msra.mxu1 %v6238_v38 }
0x29ff   :  { %4756 = vmatprep.subr.bf16.mxu1 %v6243_v30 }
0x2a02   :  { %4757 = vmatpush1.bf16.msra.mxu1 %v6241_v6 }
0x2a6b   :  { %v4563_v57 = vpop.xlane.xlu0 %4562 }
0x2a6c   :  { %v4572_v44 = vmul.f32 0.0078125, %v4563_v57 }
0x2a6e   :  { %v8246_v34 = vsub.f32 %v4554_v58, %v4572_v44 }
0x2a6f   :  { %v4565_v47 = vpop.xlane.xlu0 %4564 }
0x2a70   :  { %v4573_v22 = vmul.f32 0.0078125, %v4565_v47  ;;  %v4584_v14 = vmul.f32 %v8246_v34, %v8246_v34 }
0x2a72   :  { %v8250_v4 = vsub.f32 %v4555_v60, %v4573_v22  ;;  %4592 = vadd.xlane.f32.xlu1 %v4584_v14 }
0x2a73   :  { %v4567_v16 = vpop.xlane.xlu1 %4566 }
0x2a74   :  { %v4574_v52 = vmul.f32 0.0078125, %v4567_v16  ;;  %v4585_v35 = vmul.f32 %v8250_v4, %v8250_v4 }
0x2a75   :  { %v4569_v33 = vpop.xlane.xlu0 %4568 }
0x2a76   :  { %v8254_v23 = vsub.f32 %v4556_v36, %v4574_v52  ;;  %v4575_v41 = vmul.f32 0.0078125, %v4569_v33  ;;  %4594 = vadd.xlane.f32.xlu0 %v4585_v35  ;;  %v6249_v36 = vld [vmem:[#allocation14 + $0x90] sm:$0xff]  }
0x2a77   :  { %v4589_v63 = vpop.xlane.xlu1 %4588 }
0x2a78   :  { %v8256_v7 = vsub.f32 %v4557_v17, %v4575_v41  ;;  %v4600_v19 = vmul.f32 0.0078125, %v4589_v63  ;;  %v4586_v59 = vmul.f32 %v8254_v23, %v8254_v23  ;;  %v6253_v17 = vld [vmem:[#allocation14 + $0xa0] sm:$0xff]  }
0x2a79   :  { %v4591_v12 = vpop.xlane.xlu0 %4590 }
0x2a7a   :  { %v4606_v43 = vadd.f32 1e-05, %v4600_v19  ;;  %v4601_v51 = vmul.f32 0.0078125, %v4591_v12  ;;  %4596 = vadd.xlane.f32.xlu1 %v4586_v59  ;;  %v4587_v39 = vmul.f32 %v8256_v7, %v8256_v7 }
0x2a7c   :  { %6476 = vrsqrt.f32 %v4606_v43  ;;  %v4607_v45 = vadd.f32 1e-05, %v4601_v51  ;;  %4598 = vadd.xlane.f32.xlu0 %v4587_v39  ;;  %v2719_v51 = vld [vmem:[#allocation13 + $0x2] sm:$0x3] }
0x2a7d   :  { %v4659_v39 = vrot.slane %v2719_v51, %v7114_v48 }
0x2a7e   :  { %6478 = vrsqrt.f32 %v4607_v45 }
0x2a86   :  { %v6477_v37 = vpop.eup %6476 }
0x2a87   :  { %v4618_v9 = vmul.f32 %v6477_v37, %v8187_v31  ;;  %v6248_v31 = vld [vmem:[#allocation14 + $0xd0] sm:$0xff]  }
0x2a88   :  { %v6479_v58 = vpop.eup %6478  ;;  %5536 = vmatprep.subr.bf16.mxu0 %v6248_v31 }
0x2a89   :  { %v4619_v62 = vmul.f32 %v6479_v58, %v8191_v5  ;;  %v4630_v8 = vmul.f32 %v8262_v11, %v4618_v9  ;;  %5537 = vmatpush3.bf16.msra.mxu0 %v6249_v36  ;;  %v6252_v5 = vld [vmem:[#allocation14 + $0xe0] sm:$0xff]  }
0x2a8a   :  { %5538 = vmatprep.subr.bf16.mxu0 %v6250_v3 }
0x2a8b   :  { %v4631_v29 = vmul.f32 %v8262_v11, %v4619_v62  ;;  %v8271_v1 = vadd.f32 %v8267_v10, %v4630_v8 }
0x2a8d   :  { %v8274_v60 = vadd.f32 %v8267_v10, %v4631_v29  ;;  %5539 = vmatpush3.bf16.msra.mxu0 %v6251_v53 }
0x2a8e   :  { %5540 = vmatprep.subr.bf16.mxu0 %v6252_v5 }
0x2a8f   :  { %v4648_v24 = vpack.c.bf16 %v8274_v60, %v8271_v1 }
0x2a91   :  { %4775 = vmatmul.mubr.bf16.vlgmr.msra.gmra.mrb[112].mxu1 %v4648_v24  ;;  %5541 = vmatpush3.bf16.msra.mxu0 %v6253_v17 }
0x2a92   :  { %4784 = vmatprep.mubr.bf16.mxu1 %v6799_v0  ;;  %5542 = vmatprep.subr.bf16.mxu0 %v6254_v50 }
0x2a95   :  { %5543 = vmatpush3.bf16.msra.mxu0 %v6255_v28 }
0x2a96   :  { %5544 = vmatprep.subr.bf16.mxu0 %v6256_v49 }
0x2a99   :  { %5545 = vmatpush3.bf16.msra.mxu0 %v6257_v42 }
0x2a9a   :  { %5546 = vmatprep.subr.bf16.mxu0 %v6258_v13 }
0x2a9d   :  { %5547 = vmatpush3.bf16.msra.mxu0 %v6259_v54 }
0x2aff   :  { %v4593_v27 = vpop.xlane.xlu1 %4592 }
0x2b00   :  { %v4602_v55 = vmul.f32 0.0078125, %v4593_v27 }
0x2b02   :  { %v4608_v26 = vadd.f32 1e-05, %v4602_v55 }
0x2b03   :  { %v4595_v20 = vpop.xlane.xlu0 %4594 }
0x2b04   :  { %6480 = vrsqrt.f32 %v4608_v26  ;;  %v4603_v32 = vmul.f32 0.0078125, %v4595_v20 }
0x2b06   :  { %v4609_v25 = vadd.f32 1e-05, %v4603_v32 }
0x2b07   :  { %v4597_v61 = vpop.xlane.xlu1 %4596 }
0x2b08   :  { %6482 = vrsqrt.f32 %v4609_v25  ;;  %v4604_v21 = vmul.f32 0.0078125, %v4597_v61 }
0x2b09   :  { %v4599_v2 = vpop.xlane.xlu0 %4598 }
0x2b0a   :  { %v4610_v38 = vadd.f32 1e-05, %v4604_v21  ;;  %v4605_v30 = vmul.f32 0.0078125, %v4599_v2 }
0x2b0c   :  { %6484 = vrsqrt.f32 %v4610_v38  ;;  %v4611_v6 = vadd.f32 1e-05, %v4605_v30 }
0x2b0e   :  { %v6481_v57 = vpop.eup %6480  ;;  %6486 = vrsqrt.f32 %v4611_v6 }
0x2b0f   :  { %v4620_v44 = vmul.f32 %v6481_v57, %v8246_v34 }
0x2b11   :  { %v4632_v14 = vmul.f32 %v8262_v11, %v4620_v44 }
0x2b12   :  { %v6483_v47 = vpop.eup %6482 }
0x2b13   :  { %v4621_v22 = vmul.f32 %v6483_v47, %v8250_v4  ;;  %v8284_v35 = vadd.f32 %v8267_v10, %v4632_v14  ;;  %v5307_v47 = vld [vmem:[#allocation16 + $0x1] ss:$0 sm:$0xff] }
0x2b15   :  { %v4633_v16 = vmul.f32 %v8262_v11, %v4621_v22 }
0x2b16   :  { %v6485_v52 = vpop.eup %6484 }
0x2b17   :  { %v8287_v33 = vadd.f32 %v8267_v10, %v4633_v16  ;;  %v4622_v41 = vmul.f32 %v6485_v52, %v8254_v23 }
0x2b18   :  { %v6487_v63 = vpop.eup %6486 }
0x2b19   :  { %v4649_v34 = vpack.c.bf16 %v8287_v33, %v8284_v35  ;;  %v4623_v19 = vmul.f32 %v6487_v63, %v8256_v7  ;;  %v4634_v4 = vmul.f32 %v8262_v11, %v4622_v41  ;;  %v4655_v7 = vrot.slane %v2719_v51, %v7111_v46 }
0x2b1b   :  { %4785 = vmatmul.mubr.bf16.gmra.mrb[116].mxu1 %v4649_v34  ;;  %v4635_v59 = vmul.f32 %v8262_v11, %v4623_v19  ;;  %v8300_v43 = vadd.f32 %v8267_v10, %v4634_v4 }
0x2b1c   :  { %4794 = vmatprep.mubr.bf16.mxu1 %v6799_v0 }
0x2b1d   :  { %v8297_v12 = vadd.f32 %v8267_v10, %v4635_v59 }
0x2b1f   :  { %v4650_v23 = vpack.c.bf16 %v8297_v12, %v8300_v43 }
0x2b23   :  { %4795 = vmatmul.mubr.bf16.gmra.mrb[120].mxu1 %v4650_v23 }
0x2b64   :  { %v4776_v45 = vpop.f32.mrb[112].mxu1 }
0x2b65   :  { %v4777_v37 = vadd.f32 %v4776_v45, %v4655_v7  ;;  %v4778_v11 = vpop.f32.mrb[113].mxu1 }
0x2b66   :  { %v4779_v9 = vadd.f32 %v4778_v11, %v4659_v39  ;;  %v4780_v0 = vpop.f32.mrb[114].mxu1 }
0x2b67   :  { %v4781_v58 = vadd.f32 %v4780_v0, %v4655_v7  ;;  %v4782_v62 = vpop.f32.mrb[115].mxu1  ;;  %v4805_v29 = vmax.f32 %v4777_v37, 0.0 }
0x2b68   :  { %v4783_v8 = vadd.f32 %v4782_v62, %v4659_v39  ;;  %v4806_v24 = vmax.f32 %v4779_v9, 0.0 }
0x2b69   :  { %v4807_v10 = vmax.f32 %v4781_v58, 0.0 }
0x2b6a   :  { %v4808_v40 = vmax.f32 %v4783_v8, 0.0 }
0x2b6b   :  { %v4817_v15 = vpack.c.bf16 %v4807_v10, %v4805_v29 }
0x2b6c   :  { %v4818_v18 = vpack.c.bf16 %v4808_v40, %v4806_v24 }
0x2b6e   :  { %4957 = vmatprep.mubr.bf16.mxu0 %v4818_v18 }
0x2b6f   :  { %4958 = vmatmul.mubr.bf16.vlgmr.msra.gmra.mrb[112].mxu0 %v4817_v15 }
0x2bee   :  { %v4786_v56 = vpop.f32.mrb[116].mxu1 }
0x2bef   :  { %v4787_v46 = vadd.f32 %v4786_v56, %v4655_v7  ;;  %v4788_v31 = vpop.f32.mrb[117].mxu1 }
0x2bf0   :  { %v4789_v48 = vadd.f32 %v4788_v31, %v4659_v39  ;;  %v4790_v36 = vpop.f32.mrb[118].mxu1 }
0x2bf1   :  { %v4791_v3 = vadd.f32 %v4790_v36, %v4655_v7  ;;  %v4792_v53 = vpop.f32.mrb[119].mxu1  ;;  %v4809_v17 = vmax.f32 %v4787_v46, 0.0 }
0x2bf2   :  { %v4793_v5 = vadd.f32 %v4792_v53, %v4659_v39  ;;  %v4810_v28 = vmax.f32 %v4789_v48, 0.0 }
0x2bf3   :  { %v4811_v50 = vmax.f32 %v4791_v3, 0.0 }
0x2bf4   :  { %v4812_v49 = vmax.f32 %v4793_v5, 0.0 }
0x2bf5   :  { %v4819_v42 = vpack.c.bf16 %v4811_v50, %v4809_v17 }
0x2bf6   :  { %v4820_v13 = vpack.c.bf16 %v4812_v49, %v4810_v28  ;;  %v4796_v54 = vpop.f32.mrb[120].mxu1 }
0x2bf7   :  { %v4797_v27 = vadd.f32 %v4796_v54, %v4655_v7  ;;  %v4798_v55 = vpop.f32.mrb[121].mxu1 }
0x2bf8   :  { %v4799_v26 = vadd.f32 %v4798_v55, %v4659_v39  ;;  %v4800_v20 = vpop.f32.mrb[122].mxu1  ;;  %4965 = vmatprep.mubr.bf16.mxu0 %v4820_v13 }
0x2bf9   :  { %v4801_v32 = vadd.f32 %v4800_v20, %v4655_v7  ;;  %v4802_v25 = vpop.f32.mrb[123].mxu1  ;;  %4966 = vmatmul.mubr.bf16.gmra.mrb[116].mxu0 %v4819_v42  ;;  %v4813_v21 = vmax.f32 %v4797_v27, 0.0 }
0x2bfa   :  { %v4803_v61 = vadd.f32 %v4802_v25, %v4659_v39  ;;  %v4814_v38 = vmax.f32 %v4799_v26, 0.0 }
0x2bfb   :  { %v4815_v2 = vmax.f32 %v4801_v32, 0.0 }
0x2bfc   :  { %v4816_v30 = vmax.f32 %v4803_v61, 0.0 }
0x2bfd   :  { %v4821_v6 = vpack.c.bf16 %v4815_v2, %v4813_v21 }
0x2bfe   :  { %v4822_v57 = vpack.c.bf16 %v4816_v30, %v4814_v38 }
0x2c00   :  { %4973 = vmatprep.mubr.bf16.mxu0 %v4822_v57 }
0x2c01   :  { %4974 = vmatmul.mubr.bf16.gmra.mrb[120].mxu0 %v4821_v6  ;;  %v5324_v6 = vld [vmem:[#allocation17 + $0x1] ss:$0 sm:$0xff] }
0x2c42   :  { %v5548_v44 = vpop.f32.mrb[112].mxu0 }
0x2c43   :  { %v5549_v22 = vpop.f32.mrb[113].mxu0 }
0x2c44   :  { %v5550_v14 = vadd.f32 %v5549_v22, %v5548_v44  ;;  %v5551_v16 = vpop.f32.mrb[114].mxu0 }
0x2c45   :  { %v5552_v52 = vpop.f32.mrb[115].mxu0 }
0x2c46   :  { %v4960_v41 = vadd.f32 %v5550_v14, %v5307_v47  ;;  %v5553_v63 = vadd.f32 %v5552_v52, %v5551_v16 }
0x2c48   :  { %v4963_v34 = vadd.f32 %v5553_v63, %v5307_v47  ;;  %v4982_v19 = vadd.f32 %v4960_v41, %v8271_v1 }
0x2c4a   :  { %4988 = vadd.xlane.f32.xlu1 %v4982_v19  ;;  %v4983_v4 = vadd.f32 %v4963_v34, %v8274_v60 }
0x2c4c   :  { %4990 = vadd.xlane.f32.xlu0 %v4983_v4 }
0x2ccc   :  { %v5554_v59 = vpop.f32.mrb[116].mxu0 }
0x2ccd   :  { %v5555_v23 = vpop.f32.mrb[117].mxu0 }
0x2cce   :  { %v5556_v51 = vadd.f32 %v5555_v23, %v5554_v59  ;;  %v5557_v7 = vpop.f32.mrb[118].mxu0 }
0x2ccf   :  { %v5558_v39 = vpop.f32.mrb[119].mxu0 }
0x2cd0   :  { %v4968_v45 = vadd.f32 %v5556_v51, %v5307_v47  ;;  %v5559_v37 = vadd.f32 %v5558_v39, %v5557_v7 }
0x2cd2   :  { %v4971_v11 = vadd.f32 %v5559_v37, %v5307_v47  ;;  %v4984_v9 = vadd.f32 %v4968_v45, %v8284_v35 }
0x2cd4   :  { %v5560_v0 = vpop.f32.mrb[120].mxu0  ;;  %4992 = vadd.xlane.f32.xlu1 %v4984_v9  ;;  %v4985_v58 = vadd.f32 %v4971_v11, %v8287_v33 }
0x2cd5   :  { %v5561_v62 = vpop.f32.mrb[121].mxu0 }
0x2cd6   :  { %v5562_v1 = vadd.f32 %v5561_v62, %v5560_v0  ;;  %v5563_v8 = vpop.f32.mrb[122].mxu0  ;;  %4994 = vadd.xlane.f32.xlu0 %v4985_v58 }
0x2cd7   :  { %v5564_v60 = vpop.f32.mrb[123].mxu0  ;;  %v4989_v29 = vpop.xlane.xlu1 %4988 }
0x2cd8   :  { %v4976_v10 = vadd.f32 %v5562_v1, %v5307_v47  ;;  %v5565_v24 = vadd.f32 %v5564_v60, %v5563_v8  ;;  %v5000_v40 = vmul.f32 0.0078125, %v4989_v29 }
0x2cd9   :  { %v4991_v15 = vpop.xlane.xlu0 %4990 }
0x2cda   :  { %v4979_v18 = vadd.f32 %v5565_v24, %v5307_v47  ;;  %v5006_v56 = vsub.f32 %v4982_v19, %v5000_v40  ;;  %v5001_v46 = vmul.f32 0.0078125, %v4991_v15  ;;  %v4986_v31 = vadd.f32 %v4976_v10, %v8300_v43  ;;  %v5325_v47 = vld [vmem:[#allocation19 + $0x1] ss:$0 sm:$0xff] }
0x2cdc   :  { %v5007_v35 = vsub.f32 %v4983_v4, %v5001_v46  ;;  %4996 = vadd.xlane.f32.xlu1 %v4986_v31  ;;  %v4987_v48 = vadd.f32 %v4979_v18, %v8297_v12  ;;  %v5012_v33 = vmul.f32 %v5006_v56, %v5006_v56 }
0x2cde   :  { %4998 = vadd.xlane.f32.xlu0 %v4987_v48  ;;  %v5013_v36 = vmul.f32 %v5007_v35, %v5007_v35 }
0x2ce0   :  { %5018 = vadd.xlane.f32.xlu1 %v5012_v33 }
0x2ce2   :  { %5020 = vadd.xlane.f32.xlu0 %v5013_v36 }
0x2d61   :  { %v4993_v3 = vpop.xlane.xlu1 %4992 }
0x2d62   :  { %v5002_v53 = vmul.f32 0.0078125, %v4993_v3 }
0x2d63   :  { %v4995_v5 = vpop.xlane.xlu0 %4994 }
0x2d64   :  { %v5008_v17 = vsub.f32 %v4984_v9, %v5002_v53  ;;  %v5003_v50 = vmul.f32 0.0078125, %v4995_v5 }
0x2d66   :  { %v5009_v28 = vsub.f32 %v4985_v58, %v5003_v50  ;;  %v5014_v49 = vmul.f32 %v5008_v17, %v5008_v17 }
0x2d68   :  { %5022 = vadd.xlane.f32.xlu1 %v5014_v49  ;;  %v5015_v42 = vmul.f32 %v5009_v28, %v5009_v28 }
0x2d69   :  { %v4997_v13 = vpop.xlane.xlu1 %4996 }
0x2d6a   :  { %v5004_v43 = vmul.f32 0.0078125, %v4997_v13  ;;  %5024 = vadd.xlane.f32.xlu0 %v5015_v42 }
0x2d6b   :  { %v4999_v54 = vpop.xlane.xlu0 %4998 }
0x2d6c   :  { %v5010_v27 = vsub.f32 %v4986_v31, %v5004_v43  ;;  %v5005_v12 = vmul.f32 0.0078125, %v4999_v54 }
0x2d6d   :  { %v5019_v55 = vpop.xlane.xlu1 %5018 }
0x2d6e   :  { %v5011_v26 = vsub.f32 %v4987_v48, %v5005_v12  ;;  %v5030_v20 = vmul.f32 0.0078125, %v5019_v55  ;;  %v5016_v32 = vmul.f32 %v5010_v27, %v5010_v27 }
0x2d6f   :  { %v5021_v25 = vpop.xlane.xlu0 %5020 }
0x2d70   :  { %v5036_v61 = vadd.f32 1e-05, %v5030_v20  ;;  %v5031_v21 = vmul.f32 0.0078125, %v5021_v25  ;;  %5026 = vadd.xlane.f32.xlu1 %v5016_v32  ;;  %v5017_v2 = vmul.f32 %v5011_v26, %v5011_v26 }
0x2d72   :  { %6488 = vrsqrt.f32 %v5036_v61  ;;  %v5037_v38 = vadd.f32 1e-05, %v5031_v21  ;;  %5028 = vadd.xlane.f32.xlu0 %v5017_v2 }
0x2d74   :  { %6490 = vrsqrt.f32 %v5037_v38 }
0x2d7c   :  { %v6489_v30 = vpop.eup %6488 }
0x2d7d   :  { %v5048_v57 = vmul.f32 %v6489_v30, %v5006_v56 }
0x2d7e   :  { %v6491_v44 = vpop.eup %6490 }
0x2d7f   :  { %v5060_v22 = vmul.f32 %v5324_v6, %v5048_v57  ;;  %v5049_v14 = vmul.f32 %v6491_v44, %v5007_v35 }
0x2d81   :  { %v5072_v16 = vadd.f32 %v5325_v47, %v5060_v22  ;;  %v5061_v52 = vmul.f32 %v5324_v6, %v5049_v14 }
0x2d83   :  { %5078 = vst [vmem:[#allocation20] sm:$0xff] %v5072_v16  ;;  %v5073_v41 = vadd.f32 %v5325_v47, %v5061_v52 }
0x2d85   :  { %5079 = vst [vmem:[#allocation20 + $0x8] sm:$0xff] %v5073_v41 }
0x2df5   :  { %v5023_v63 = vpop.xlane.xlu1 %5022 }
0x2df6   :  { %v5032_v34 = vmul.f32 0.0078125, %v5023_v63 }
0x2df7   :  { %v5025_v19 = vpop.xlane.xlu0 %5024 }
0x2df8   :  { %v5038_v4 = vadd.f32 1e-05, %v5032_v34  ;;  %v5033_v59 = vmul.f32 0.0078125, %v5025_v19 }
0x2dfa   :  { %6492 = vrsqrt.f32 %v5038_v4  ;;  %v5039_v23 = vadd.f32 1e-05, %v5033_v59 }
0x2dfc   :  { %6494 = vrsqrt.f32 %v5039_v23 }
0x2dfd   :  { %v5027_v51 = vpop.xlane.xlu1 %5026 }
0x2dfe   :  { %v5034_v7 = vmul.f32 0.0078125, %v5027_v51 }
0x2dff   :  { %v5029_v39 = vpop.xlane.xlu0 %5028 }
0x2e00   :  { %v5040_v45 = vadd.f32 1e-05, %v5034_v7  ;;  %v5035_v37 = vmul.f32 0.0078125, %v5029_v39 }
0x2e02   :  { %6496 = vrsqrt.f32 %v5040_v45  ;;  %v5041_v11 = vadd.f32 1e-05, %v5035_v37 }
0x2e04   :  { %v6493_v9 = vpop.eup %6492  ;;  %6498 = vrsqrt.f32 %v5041_v11 }
0x2e05   :  { %v5050_v0 = vmul.f32 %v6493_v9, %v5008_v17 }
0x2e06   :  { %v6495_v58 = vpop.eup %6494 }
0x2e07   :  { %v5062_v62 = vmul.f32 %v5324_v6, %v5050_v0  ;;  %v5051_v1 = vmul.f32 %v6495_v58, %v5009_v28 }
0x2e09   :  { %v5074_v8 = vadd.f32 %v5325_v47, %v5062_v62  ;;  %v5063_v60 = vmul.f32 %v5324_v6, %v5051_v1 }
0x2e0b   :  { %5080 = vst [vmem:[#allocation20 + $0x10] sm:$0xff] %v5074_v8  ;;  %v5075_v29 = vadd.f32 %v5325_v47, %v5063_v60 }
0x2e0c   :  { %v6497_v10 = vpop.eup %6496 }
0x2e0d   :  { %5081 = vst [vmem:[#allocation20 + $0x18] sm:$0xff] %v5075_v29  ;;  %v5052_v24 = vmul.f32 %v6497_v10, %v5010_v27 }
0x2e0e   :  { %v6499_v40 = vpop.eup %6498 }
0x2e0f   :  { %v5064_v15 = vmul.f32 %v5324_v6, %v5052_v24  ;;  %v5053_v18 = vmul.f32 %v6499_v40, %v5011_v26 }
0x2e11   :  { %v5076_v56 = vadd.f32 %v5325_v47, %v5064_v15  ;;  %v5065_v46 = vmul.f32 %v5324_v6, %v5053_v18 }
0x2e13   :  { %5082 = vst [vmem:[#allocation20 + $0x20] sm:$0xff] %v5076_v56  ;;  %v5077_v31 = vadd.f32 %v5325_v47, %v5065_v46 }
0x2e15   :  { %5083 = vst [vmem:[#allocation20 + $0x28] sm:$0xff] %v5077_v31 }
0x2e16   :  { %6753 = shalt.err (!%p6750_p8)
}
0x2e17   :  { %s6754_s30 = scalar_lea.hbm %s8338_s14, 768 }
0x2e18   :  { %p6755_p9 = scmp.ne.s32.totalorder %s8338_s14, %s6754_s30  ;;  %p6758_p10 = scmp.lt.u32.totalorder %s6754_s30, %s8338_s14 }
0x2e1a   :  { %p6760_p11 = pnand %p6758_p10, %p6755_p9 }
0x2e1c   :  { %6763 = shalt.err (!%p6760_p11)
}
0x2e1d   :  { %s6804_s18 = smov 128   ;;  %s6805_s10 = smov 8  }
0x2e1e   :  { %5095 = dma.vmem_to_hbm [thread:$0]  %s5090_s11, 768, %s8338_s14, [#allocation4], %s6804_s18, %s6804_s18, %s6805_s10  }
0x2e1f   :  { %6776 = dma.done.wait [#allocation4], 768  }
0x2e20   :  { %6777 = vsyncadd [#allocation4], 4294966528 }
0x2e21   :  { %5099 = vsyncpa [#allocation3], 1 }
0x2e22   :  { %5100 = vsyncpa [#allocation6], 1 }
0x2e23   :  { %5101 = vsyncpa [#allocation9], 1 }
0x2e24   :  { %5102 = vsyncpa [#allocation12], 1 }
0x2e25   :  { %5103 = vsyncpa [#allocation15], 1 }
0x2e26   :  { %5104 = vsyncpa [#allocation18], 1 }
0x2e27   :  { %5105 = vsyncpa [#allocation4], 1 }

</bundles_post_ra>
